<compile_context>
chip_gen: v7x
topology: tpu7x:2x2x1
jax: 0.10.0
libtpu: 0.0.40
codegen_flags: <defaults>
</compile_context>

<pallas_src>
import jax
import jax.numpy as jnp
from jax.experimental import pallas as pl
from jax.experimental.pallas import tpu as pltpu


# --------------------------------------------------------------------------- #
# Kernels
# --------------------------------------------------------------------------- #
def _ae_kernel_full(h_ref, wenc_ref, wdec_ref, benc_ref, bdec_ref,
                    acts_ref, hrec_ref, loss_ref):
    """One (instance, batch-tile) step; weights stay resident across batch tiles."""
    h = h_ref[...]                          # (TB, n_in)   f32
    benc = benc_ref[...]                    # (1, n_hid)   f32
    bdec = bdec_ref[...]                    # (1, n_in)    f32
    wenc = wenc_ref[...]                    # (n_in, n_hid)
    wdec = wdec_ref[...]                    # (n_hid, n_in)

    # Encoder: MXU matmul in the weight dtype, f32 accumulation.
    h_cent = h - bdec
    acts = jnp.dot(h_cent.astype(wenc.dtype), wenc,
                   preferred_element_type=jnp.float32)
    acts = jnp.maximum(acts + benc, 0.0)    # bias + ReLU in f32

    # Decoder; the low-precision cast is reused for both the matmul input and
    # (when dtypes match) the acts store.
    acts_lp = acts.astype(wdec.dtype)
    hrec = jnp.dot(acts_lp, wdec, preferred_element_type=jnp.float32) + bdec

    if acts_ref.dtype == acts_lp.dtype:
        acts_ref[...] = acts_lp
    else:
        acts_ref[...] = acts.astype(acts_ref.dtype)
    hrec_ref[...] = hrec.astype(hrec_ref.dtype)

    # Per-sample losses, one lane-dense (2, TB) store: row 0 = L1, row 1 = L2.
    diff = hrec - h
    l1 = jnp.sum(acts, axis=-1)             # acts is post-ReLU -> abs() redundant
    l2 = jnp.mean(diff * diff, axis=-1)
    loss_ref[...] = jnp.stack([l1, l2], axis=0)


def _ae_kernel_loss_only(h_ref, wenc_ref, wdec_ref, benc_ref, bdec_ref, loss_ref):
    """Loss-only variant: no acts / h_reconstructed HBM writeback at all."""
    h = h_ref[...]
    benc = benc_ref[...]
    bdec = bdec_ref[...]
    wenc = wenc_ref[...]
    wdec = wdec_ref[...]

    h_cent = h - bdec
    acts = jnp.dot(h_cent.astype(wenc.dtype), wenc,
                   preferred_element_type=jnp.float32)
    acts = jnp.maximum(acts + benc, 0.0)
    hrec = jnp.dot(acts.astype(wdec.dtype), wdec,
                   preferred_element_type=jnp.float32) + bdec

    diff = hrec - h
    l1 = jnp.sum(acts, axis=-1)
    l2 = jnp.mean(diff * diff, axis=-1)
    loss_ref[...] = jnp.stack([l1, l2], axis=0)


# --------------------------------------------------------------------------- #
# VMEM budget / tile selection
# --------------------------------------------------------------------------- #
def _vmem_budget_bytes():
    """Generation-aware VMEM budget (~3/4 of physical capacity)."""
    cap = None
    try:
        cap = getattr(pltpu.get_tpu_info(), "vmem_capacity_bytes", None)
    except Exception:
        cap = None
    if not cap:
        cap = 128 << 20   # v5e/v6e default; v7x reports 64 MiB when queryable
    return int(cap * 3 // 4)


def _select_tb(batch, requested, per_tb_bytes, fixed_bytes, budget):
    """Largest lane-dense batch tile (multiple of 128, or full batch) that fits."""
    if requested is None:
        requested = 1024                     # amortize per-step overhead (v6e/v5e)
    if requested >= batch:
        tb = batch
    else:
        tb = max(128, (requested // 128) * 128)
        if tb >= batch:
            tb = batch
    slack = 4 << 20
    while tb > 128 and fixed_bytes + per_tb_bytes(tb) + slack > budget:
        if tb == batch and batch % 128 != 0:
            tb = max(128, (batch // 128) * 128)
        else:
            tb = max(128, tb - 128)
    return tb


# --------------------------------------------------------------------------- #
# pallas_call builder (with single-buffered resident weights + fallback)
# --------------------------------------------------------------------------- #
def _build_call(kernel, n_inst, n_btiles, batch_p, tb, n_in, n_hid, out_dtype,
                compute_outputs, single_buffer_weights, vmem_limit, cost):
    wkw = {"pipeline_mode": pl.Buffered(1)} if single_buffer_weights else {}

    in_specs = [
        pl.BlockSpec((None, tb, n_in), lambda i, b: (i, b, 0)),
        # Weights/biases ignore the batch index -> resident in VMEM across all
        # batch tiles of an instance; single-buffered since they never re-DMA.
        pl.BlockSpec((None, n_in, n_hid), lambda i, b: (i, 0, 0), **wkw),
        pl.BlockSpec((None, n_hid, n_in), lambda i, b: (i, 0, 0), **wkw),
        pl.BlockSpec((None, 1, n_hid), lambda i, b: (i, 0, 0), **wkw),
        pl.BlockSpec((None, 1, n_in), lambda i, b: (i, 0, 0), **wkw),
    ]
    loss_spec = pl.BlockSpec((None, 2, tb), lambda i, b: (i, 0, b))

    if compute_outputs:
        out_shape = (
            jax.ShapeDtypeStruct((n_inst, batch_p, n_hid), out_dtype),   # acts
            jax.ShapeDtypeStruct((n_inst, batch_p, n_in), out_dtype),    # h_rec
            jax.ShapeDtypeStruct((n_inst, 2, batch_p), jnp.float32),     # [l1; l2]
        )
        out_specs = [
            pl.BlockSpec((None, tb, n_hid), lambda i, b: (i, b, 0)),
            pl.BlockSpec((None, tb, n_in), lambda i, b: (i, b, 0)),
            loss_spec,
        ]
    else:
        out_shape = jax.ShapeDtypeStruct((n_inst, 2, batch_p), jnp.float32)
        out_specs = loss_spec

    return pl.pallas_call(
        kernel,
        out_shape=out_shape,
        grid_spec=pltpu.PrefetchScalarGridSpec(
            num_scalar_prefetch=0,
            grid=(n_inst, n_btiles),            # instance outer, batch tiles inner
            in_specs=in_specs,
            out_specs=out_specs,
        ),
        compiler_params=pltpu.CompilerParams(
            dimension_semantics=("parallel", "parallel"),
            vmem_limit_bytes=vmem_limit),
        cost_estimate=cost,
    )


# --------------------------------------------------------------------------- #
# Forward wrapper
# --------------------------------------------------------------------------- #
def autoencoder_forward(h, W_enc, W_dec, b_enc, b_dec, l1_coeff=0.5, *,
                        block_batch=None,
                        matmul_dtype=jnp.bfloat16,
                        out_dtype=jnp.bfloat16,
                        compute_outputs=True,
                        torch_layout_outputs=True,
                        instance_major_input=False):
    """Forward pass matching the torch AutoEncoder module.

    h: [batch, n_instances, n_input_ae] (PyTorch convention), or
       [n_instances, batch, n_input_ae] if instance_major_input=True.
    Returns (l1_loss, l2_loss, loss, acts, h_reconstructed).  Losses are always
    f32 [batch, n_inst]; acts/h_rec are stored as `out_dtype` (bf16 default) and
    are None when compute_outputs=False.  torch_layout_outputs=False returns
    acts/h_rec instance-major ([n_inst, batch, ...]) to skip two large HBM
    relayouts. n_input_ae / n_hidden_ae that are not multiples of 128 are legal
    (full-extent blocks) but lower to masked vector ops.
    """
    if instance_major_input:
        n_inst, batch, n_in = h.shape
    else:
        batch, n_inst, n_in = h.shape
    n_hid = W_enc.shape[-1]

    w_item = jnp.dtype(matmul_dtype).itemsize
    o_item = jnp.dtype(out_dtype).itemsize

    # ---- VMEM budget & batch-tile selection ----------------------------------
    budget = _vmem_budget_bytes()
    # Resident (single-buffered) weights + biases.
    fixed_bytes = w_item * 2 * n_in * n_hid + 4 * (n_in + n_hid)

    def per_tb_bytes(tb):
        b = 2 * 4 * tb * n_in                         # h block (double-buffered)
        b += 2 * 4 * 2 * tb                           # loss block
        if compute_outputs:
            b += 2 * o_item * tb * (n_hid + n_in)     # acts + hrec blocks
        return b

    tb = _select_tb(batch, block_batch, per_tb_bytes, fixed_bytes, budget)
    n_btiles = (batch + tb - 1) // tb
    batch_p = n_btiles * tb
    vmem_limit = int(budget)

    # ---- relayout to instance-major, pad batch, cast matmul operands ---------
    if instance_major_input:
        h_t = h.astype(jnp.float32)
    else:
        h_t = jnp.transpose(h.astype(jnp.float32), (1, 0, 2))   # (n_inst, batch, n_in)
    if batch_p != batch:
        h_t = jnp.pad(h_t, ((0, 0), (0, batch_p - batch), (0, 0)))
    wenc = W_enc.astype(matmul_dtype)
    wdec = W_dec.astype(matmul_dtype)
    benc = b_enc.astype(jnp.float32)[:, None, :]                 # (n_inst, 1, n_hid)
    bdec = b_dec.astype(jnp.float32)[:, None, :]                 # (n_inst, 1, n_in)

    # ---- cost hint -------------------------------------------------------------
    in_bytes = (4 * h_t.size + w_item * (wenc.size + wdec.size)
                + 4 * (benc.size + bdec.size))
    out_bytes = 4 * n_inst * 2 * batch_p
    if compute_outputs:
        out_bytes += o_item * n_inst * batch_p * (n_hid + n_in)
    cost = pl.CostEstimate(
        flops=4 * batch_p * n_inst * n_in * n_hid,               # two matmuls
        transcendentals=0,
        bytes_accessed=int(in_bytes + out_bytes))

    kernel = _ae_kernel_full if compute_outputs else _ae_kernel_loss_only
    try:
        call = _build_call(kernel, n_inst, n_btiles, batch_p, tb, n_in, n_hid,
                           out_dtype, compute_outputs,
                           single_buffer_weights=True,
                           vmem_limit=vmem_limit, cost=cost)
        outs = call(h_t, wenc, wdec, benc, bdec)
    except Exception:
        # Fallback for Pallas versions that reject pl.Buffered(1) on a BlockSpec.
        call = _build_call(kernel, n_inst, n_btiles, batch_p, tb, n_in, n_hid,
                           out_dtype, compute_outputs,
                           single_buffer_weights=False,
                           vmem_limit=vmem_limit, cost=cost)
        outs = call(h_t, wenc, wdec, benc, bdec)

    if compute_outputs:
        acts_t, hrec_t, loss_t = outs
    else:
        loss_t = outs
        acts_t = hrec_t = None

    # ---- losses (tiny) + final scalar loss in plain JAX glue -------------------
    l1_loss = jnp.transpose(loss_t[:, 0, :batch], (1, 0))        # (batch, n_inst)
    l2_loss = jnp.transpose(loss_t[:, 1, :batch], (1, 0))        # (batch, n_inst)
    loss = jnp.sum(jnp.mean(l1_coeff * l1_loss + l2_loss, axis=0))

    if compute_outputs:
        acts_t = acts_t[:, :batch]
        hrec_t = hrec_t[:, :batch]
        if torch_layout_outputs:
            # NOTE: these transposes are full HBM read+write passes.
            acts = jnp.transpose(acts_t, (1, 0, 2))              # (batch, n_inst, n_hid)
            h_rec = jnp.transpose(hrec_t, (1, 0, 2))             # (batch, n_inst, n_in)
        else:
            acts, h_rec = acts_t, hrec_t                         # instance-major
    else:
        acts = h_rec = None
    return l1_loss, l2_loss, loss, acts, h_rec


# --------------------------------------------------------------------------- #
# Reference + demo
# --------------------------------------------------------------------------- #
def _reference_forward(h, W_enc, W_dec, b_enc, b_dec, l1_coeff=0.5):
    hp = jax.lax.Precision.HIGHEST
    h_cent = h - b_dec[None, :, :]
    acts = jnp.einsum('bni,nih->bnh', h_cent, W_enc, precision=hp)
    acts = jax.nn.relu(acts + b_enc[None, :, :])
    h_rec = jnp.einsum('bnh,nhi->bni', acts, W_dec, precision=hp) + b_dec[None, :, :]
    l2 = jnp.mean((h_rec - h) ** 2, axis=-1)
    l1 = jnp.sum(jnp.abs(acts), axis=-1)
    loss = jnp.sum(jnp.mean(l1_coeff * l1 + l2, axis=0))
    return l1, l2, loss, acts, h_rec


if __name__ == "__main__":
    # Small, MXU/lane-aligned demo shapes consistent with the module's forward.
    batch = 256
    n_instances = 2
    n_input_ae = 128
    n_hidden_ae = 256
    l1_coeff = 0.5

    key = jax.random.PRNGKey(0)
    k_h, k_enc, k_dec = jax.random.split(key, 3)

    xavier_std = (2.0 / (n_input_ae + n_hidden_ae)) ** 0.5
    W_enc = xavier_std * jax.random.normal(
        k_enc, (n_instances, n_input_ae, n_hidden_ae), dtype=jnp.float32)
    W_dec = xavier_std * jax.random.normal(
        k_dec, (n_instances, n_hidden_ae, n_input_ae), dtype=jnp.float32)
    b_enc = jnp.zeros((n_instances, n_hidden_ae), dtype=jnp.float32)
    b_dec = jnp.zeros((n_instances, n_input_ae), dtype=jnp.float32)
    h = jax.random.normal(
        k_h, (batch, n_instances, n_input_ae), dtype=jnp.float32)

    refs = _reference_forward(h, W_enc, W_dec, b_enc, b_dec, l1_coeff)

    # 1) Exact-math path (f32 MXU, f32 outputs) with a 2x2 grid to exercise tiling.
    outs_f32 = autoencoder_forward(h, W_enc, W_dec, b_enc, b_dec, l1_coeff,
                                   block_batch=128,
                                   matmul_dtype=jnp.float32,
                                   out_dtype=jnp.float32)
    outs_f32 = jax.block_until_ready(outs_f32)
    for o, r in zip(outs_f32, refs):
        assert o.shape == r.shape, "shape mismatch vs reference (f32 path)"
        assert jnp.allclose(o, r, atol=1e-3, rtol=1e-3), "f32 kernel mismatch"

    # 2) Performance path (bf16 MXU inputs + bf16 stored outputs, f32 losses).
    outs_bf16 = autoencoder_forward(h, W_enc, W_dec, b_enc, b_dec, l1_coeff)
    outs_bf16 = jax.block_until_ready(outs_bf16)
    for o, r in zip(outs_bf16, refs):
        assert o.shape == r.shape, "shape mismatch vs reference (bf16 path)"
        assert jnp.allclose(o.astype(jnp.float32), r, atol=5e-2, rtol=5e-2), \
            "bf16 kernel mismatch"

    # 3) Loss-only path (no acts/h_rec HBM writeback).
    l1_o, l2_o, loss_o, acts_o, hrec_o = jax.block_until_ready(
        autoencoder_forward(h, W_enc, W_dec, b_enc, b_dec, l1_coeff,
                            compute_outputs=False))
    assert acts_o is None and hrec_o is None
    assert jnp.allclose(l1_o, refs[0], atol=5e-2, rtol=5e-2), "loss-only l1 mismatch"
    assert jnp.allclose(l2_o, refs[1], atol=5e-2, rtol=5e-2), "loss-only l2 mismatch"
    assert jnp.allclose(loss_o, refs[2], atol=5e-2, rtol=5e-2), "loss-only loss mismatch"

    print("KERNEL_OK")
</pallas_src>

<mosaic_0001>
module attributes {stable_mosaic.version = 11 : i64} {
  func.func @_ae_kernel_full(%arg0: i32, %arg1: i32, %arg2: memref<1x128x128xf32, #tpu.memory_space<vmem>>, %arg3: memref<1x128x256xf32, #tpu.memory_space<vmem>>, %arg4: memref<1x256x128xf32, #tpu.memory_space<vmem>>, %arg5: memref<1x1x256xf32, #tpu.memory_space<vmem>>, %arg6: memref<1x1x128xf32, #tpu.memory_space<vmem>>, %arg7: memref<1x128x256xf32, #tpu.memory_space<vmem>>, %arg8: memref<1x128x128xf32, #tpu.memory_space<vmem>>, %arg9: memref<1x2x128xf32, #tpu.memory_space<vmem>>) attributes {dimension_semantics = [#tpu.dimension_semantics<parallel>, #tpu.dimension_semantics<parallel>], iteration_bounds = array<i64: 2, 2>, scalar_prefetch = 0 : i64, scratch_operands = 0 : i64, tpu.core_type = #tpu.core_type<tc>, window_params = [{transform_indices = @transform_0, window_bounds = array<i64: 1, 128, 128>}, {pipeline_mode = #tpu.pipeline_mode<synchronous>, transform_indices = @transform_1, window_bounds = array<i64: 1, 128, 256>}, {pipeline_mode = #tpu.pipeline_mode<synchronous>, transform_indices = @transform_2, window_bounds = array<i64: 1, 256, 128>}, {pipeline_mode = #tpu.pipeline_mode<synchronous>, transform_indices = @transform_3, window_bounds = array<i64: 1, 1, 256>}, {pipeline_mode = #tpu.pipeline_mode<synchronous>, transform_indices = @transform_4, window_bounds = array<i64: 1, 1, 128>}, {transform_indices = @transform_5, window_bounds = array<i64: 1, 128, 256>}, {transform_indices = @transform_6, window_bounds = array<i64: 1, 128, 128>}, {transform_indices = @transform_7, window_bounds = array<i64: 1, 2, 128>}]} {
    %c0 = arith.constant 0 : index
    %c0_0 = arith.constant 0 : index
    %c0_1 = arith.constant 0 : index
    %0 = vector.load %arg2[%c0, %c0_0, %c0_1] : memref<1x128x128xf32, #tpu.memory_space<vmem>>, vector<1x128x128xf32>
    %1 = vector.shape_cast %0 : vector<1x128x128xf32> to vector<128x128xf32>
    %c0_2 = arith.constant 0 : index
    %c0_3 = arith.constant 0 : index
    %c0_4 = arith.constant 0 : index
    %2 = vector.load %arg5[%c0_2, %c0_3, %c0_4] : memref<1x1x256xf32, #tpu.memory_space<vmem>>, vector<1x1x256xf32>
    %3 = vector.shape_cast %2 : vector<1x1x256xf32> to vector<1x256xf32>
    %c0_5 = arith.constant 0 : index
    %c0_6 = arith.constant 0 : index
    %c0_7 = arith.constant 0 : index
    %4 = vector.load %arg6[%c0_5, %c0_6, %c0_7] : memref<1x1x128xf32, #tpu.memory_space<vmem>>, vector<1x1x128xf32>
    %5 = vector.shape_cast %4 : vector<1x1x128xf32> to vector<1x128xf32>
    %c0_8 = arith.constant 0 : index
    %c0_9 = arith.constant 0 : index
    %c0_10 = arith.constant 0 : index
    %6 = vector.load %arg3[%c0_8, %c0_9, %c0_10] : memref<1x128x256xf32, #tpu.memory_space<vmem>>, vector<1x128x256xf32>
    %7 = vector.shape_cast %6 : vector<1x128x256xf32> to vector<128x256xf32>
    %c0_11 = arith.constant 0 : index
    %c0_12 = arith.constant 0 : index
    %c0_13 = arith.constant 0 : index
    %8 = vector.load %arg4[%c0_11, %c0_12, %c0_13] : memref<1x256x128xf32, #tpu.memory_space<vmem>>, vector<1x256x128xf32>
    %9 = vector.shape_cast %8 : vector<1x256x128xf32> to vector<256x128xf32>
    %10 = vector.broadcast %5 : vector<1x128xf32> to vector<128x128xf32>
    %11 = arith.subf %1, %10 : vector<128x128xf32>
    %cst = arith.constant dense<0.000000e+00> : vector<128x256xf32>
    %12 = tpu.matmul %11, %7, %cst {dimension_numbers = #tpu.dot_dimension_numbers<[1], [0], [0], [1], [0, 0, 1, 1], [], []>} : vector<128x128xf32>, vector<128x256xf32>, vector<128x256xf32> -> vector<128x256xf32>
    %13 = vector.broadcast %3 : vector<1x256xf32> to vector<128x256xf32>
    %14 = arith.addf %12, %13 : vector<128x256xf32>
    %cst_14 = arith.constant 0.000000e+00 : f32
    %15 = vector.broadcast %cst_14 : f32 to vector<128x256xf32>
    %16 = arith.maximumf %14, %15 : vector<128x256xf32>
    %cst_15 = arith.constant dense<0.000000e+00> : vector<128x128xf32>
    %17 = tpu.matmul %16, %9, %cst_15 {dimension_numbers = #tpu.dot_dimension_numbers<[1], [0], [0], [1], [0, 0, 1, 1], [], []>} : vector<128x256xf32>, vector<256x128xf32>, vector<128x128xf32> -> vector<128x128xf32>
    %18 = vector.broadcast %5 : vector<1x128xf32> to vector<128x128xf32>
    %19 = arith.addf %17, %18 : vector<128x128xf32>
    %c0_16 = arith.constant 0 : index
    %c0_17 = arith.constant 0 : index
    %c0_18 = arith.constant 0 : index
    %20 = vector.load %arg7[%c0_16, %c0_17, %c0_18] : memref<1x128x256xf32, #tpu.memory_space<vmem>>, vector<1x128x256xf32>
    %21 = vector.shape_cast %20 : vector<1x128x256xf32> to vector<128x256xf32>
    %22 = vector.shape_cast %16 : vector<128x256xf32> to vector<1x128x256xf32>
    tpu.vector_store %arg7[%c0_16, %c0_17, %c0_18], %22 {strides = array<i32>} : memref<1x128x256xf32, #tpu.memory_space<vmem>>, vector<1x128x256xf32>,
    %c0_19 = arith.constant 0 : index
    %c0_20 = arith.constant 0 : index
    %c0_21 = arith.constant 0 : index
    %23 = vector.load %arg8[%c0_19, %c0_20, %c0_21] : memref<1x128x128xf32, #tpu.memory_space<vmem>>, vector<1x128x128xf32>
    %24 = vector.shape_cast %23 : vector<1x128x128xf32> to vector<128x128xf32>
    %25 = vector.shape_cast %19 : vector<128x128xf32> to vector<1x128x128xf32>
    tpu.vector_store %arg8[%c0_19, %c0_20, %c0_21], %25 {strides = array<i32>} : memref<1x128x128xf32, #tpu.memory_space<vmem>>, vector<1x128x128xf32>,
    %26 = arith.subf %19, %1 : vector<128x128xf32>
    %cst_22 = arith.constant dense<0.000000e+00> : vector<128xf32>
    %27 = vector.multi_reduction <add>, %16, %cst_22 [1] : vector<128x256xf32> to vector<128xf32>
    %28 = arith.mulf %26, %26 : vector<128x128xf32>
    %cst_23 = arith.constant dense<0.000000e+00> : vector<128xf32>
    %29 = vector.multi_reduction <add>, %28, %cst_23 [1] : vector<128x128xf32> to vector<128xf32>
    %cst_24 = arith.constant 1.280000e+02 : f32
    %30 = vector.broadcast %cst_24 : f32 to vector<128xf32>
    %31 = arith.divf %29, %30 : vector<128xf32>
    %32 = vector.shape_cast %27 : vector<128xf32> to vector<1x128xf32>
    %33 = vector.shape_cast %31 : vector<128xf32> to vector<1x128xf32>
    %34 = tpu.concatenate %32, %33 in 0 : vector<1x128xf32>, vector<1x128xf32> -> vector<2x128xf32>
    %c0_25 = arith.constant 0 : index
    %c0_26 = arith.constant 0 : index
    %c0_27 = arith.constant 0 : index
    %35 = vector.load %arg9[%c0_25, %c0_26, %c0_27] : memref<1x2x128xf32, #tpu.memory_space<vmem>>, vector<1x2x128xf32>
    %36 = vector.shape_cast %35 : vector<1x2x128xf32> to vector<2x128xf32>
    %37 = vector.shape_cast %34 : vector<2x128xf32> to vector<1x2x128xf32>
    tpu.vector_store %arg9[%c0_25, %c0_26, %c0_27], %37 {strides = array<i32>} : memref<1x2x128xf32, #tpu.memory_space<vmem>>, vector<1x2x128xf32>,
    return
  }
  func.func @transform_0(%arg0: i32, %arg1: i32) -> (i32, i32, i32) {
    %c0_i32 = arith.constant 0 : i32
    %c0_i32_0 = arith.constant 0 : i32
    return %arg0, %arg1, %c0_i32 : i32, i32, i32
  }
  func.func @transform_1(%arg0: i32, %arg1: i32) -> (i32, i32, i32) {
    %c0_i32 = arith.constant 0 : i32
    %c0_i32_0 = arith.constant 0 : i32
    %c0_i32_1 = arith.constant 0 : i32
    return %arg0, %c0_i32, %c0_i32_0 : i32, i32, i32
  }
  func.func @transform_2(%arg0: i32, %arg1: i32) -> (i32, i32, i32) {
    %c0_i32 = arith.constant 0 : i32
    %c0_i32_0 = arith.constant 0 : i32
    %c0_i32_1 = arith.constant 0 : i32
    return %arg0, %c0_i32, %c0_i32_0 : i32, i32, i32
  }
  func.func @transform_3(%arg0: i32, %arg1: i32) -> (i32, i32, i32) {
    %c0_i32 = arith.constant 0 : i32
    %c0_i32_0 = arith.constant 0 : i32
    %c0_i32_1 = arith.constant 0 : i32
    return %arg0, %c0_i32, %c0_i32_0 : i32, i32, i32
  }
  func.func @transform_4(%arg0: i32, %arg1: i32) -> (i32, i32, i32) {
    %c0_i32 = arith.constant 0 : i32
    %c0_i32_0 = arith.constant 0 : i32
    %c0_i32_1 = arith.constant 0 : i32
    return %arg0, %c0_i32, %c0_i32_0 : i32, i32, i32
  }
  func.func @transform_5(%arg0: i32, %arg1: i32) -> (i32, i32, i32) {
    %c0_i32 = arith.constant 0 : i32
    %c0_i32_0 = arith.constant 0 : i32
    return %arg0, %arg1, %c0_i32 : i32, i32, i32
  }
  func.func @transform_6(%arg0: i32, %arg1: i32) -> (i32, i32, i32) {
    %c0_i32 = arith.constant 0 : i32
    %c0_i32_0 = arith.constant 0 : i32
    return %arg0, %arg1, %c0_i32 : i32, i32, i32
  }
  func.func @transform_7(%arg0: i32, %arg1: i32) -> (i32, i32, i32) {
    %c0_i32 = arith.constant 0 : i32
    %c0_i32_0 = arith.constant 0 : i32
    return %arg0, %c0_i32, %arg1 : i32, i32, i32
  }
}

module attributes {stable_mosaic.version = 11 : i64} {
  func.func @_ae_kernel_full(%arg0: i32, %arg1: i32, %arg2: memref<1x128x128xf32, #tpu.memory_space<vmem>>, %arg3: memref<1x128x256xf32, #tpu.memory_space<vmem>>, %arg4: memref<1x256x128xf32, #tpu.memory_space<vmem>>, %arg5: memref<1x1x256xf32, #tpu.memory_space<vmem>>, %arg6: memref<1x1x128xf32, #tpu.memory_space<vmem>>, %arg7: memref<1x128x256xf32, #tpu.memory_space<vmem>>, %arg8: memref<1x128x128xf32, #tpu.memory_space<vmem>>, %arg9: memref<1x2x128xf32, #tpu.memory_space<vmem>>) attributes {dimension_semantics = [#tpu.dimension_semantics<parallel>, #tpu.dimension_semantics<parallel>], iteration_bounds = array<i64: 2, 2>, scalar_prefetch = 0 : i64, scratch_operands = 0 : i64, tpu.core_type = #tpu.core_type<tc>, window_params = [{transform_indices = @transform_0, window_bounds = array<i64: 1, 128, 128>}, {transform_indices = @transform_1, window_bounds = array<i64: 1, 128, 256>}, {transform_indices = @transform_2, window_bounds = array<i64: 1, 256, 128>}, {transform_indices = @transform_3, window_bounds = array<i64: 1, 1, 256>}, {transform_indices = @transform_4, window_bounds = array<i64: 1, 1, 128>}, {transform_indices = @transform_5, window_bounds = array<i64: 1, 128, 256>}, {transform_indices = @transform_6, window_bounds = array<i64: 1, 128, 128>}, {transform_indices = @transform_7, window_bounds = array<i64: 1, 2, 128>}]} {
    %c0 = arith.constant 0 : index
    %c0_0 = arith.constant 0 : index
    %c0_1 = arith.constant 0 : index
    %0 = vector.load %arg2[%c0, %c0_0, %c0_1] : memref<1x128x128xf32, #tpu.memory_space<vmem>>, vector<1x128x128xf32>
    %1 = vector.shape_cast %0 : vector<1x128x128xf32> to vector<128x128xf32>
    %c0_2 = arith.constant 0 : index
    %c0_3 = arith.constant 0 : index
    %c0_4 = arith.constant 0 : index
    %2 = vector.load %arg5[%c0_2, %c0_3, %c0_4] : memref<1x1x256xf32, #tpu.memory_space<vmem>>, vector<1x1x256xf32>
    %3 = vector.shape_cast %2 : vector<1x1x256xf32> to vector<1x256xf32>
    %c0_5 = arith.constant 0 : index
    %c0_6 = arith.constant 0 : index
    %c0_7 = arith.constant 0 : index
    %4 = vector.load %arg6[%c0_5, %c0_6, %c0_7] : memref<1x1x128xf32, #tpu.memory_space<vmem>>, vector<1x1x128xf32>
    %5 = vector.shape_cast %4 : vector<1x1x128xf32> to vector<1x128xf32>
    %c0_8 = arith.constant 0 : index
    %c0_9 = arith.constant 0 : index
    %c0_10 = arith.constant 0 : index
    %6 = vector.load %arg3[%c0_8, %c0_9, %c0_10] : memref<1x128x256xf32, #tpu.memory_space<vmem>>, vector<1x128x256xf32>
    %7 = vector.shape_cast %6 : vector<1x128x256xf32> to vector<128x256xf32>
    %c0_11 = arith.constant 0 : index
    %c0_12 = arith.constant 0 : index
    %c0_13 = arith.constant 0 : index
    %8 = vector.load %arg4[%c0_11, %c0_12, %c0_13] : memref<1x256x128xf32, #tpu.memory_space<vmem>>, vector<1x256x128xf32>
    %9 = vector.shape_cast %8 : vector<1x256x128xf32> to vector<256x128xf32>
    %10 = vector.broadcast %5 : vector<1x128xf32> to vector<128x128xf32>
    %11 = arith.subf %1, %10 : vector<128x128xf32>
    %cst = arith.constant dense<0.000000e+00> : vector<128x256xf32>
    %12 = tpu.matmul %11, %7, %cst {dimension_numbers = #tpu.dot_dimension_numbers<[1], [0], [0], [1], [0, 0, 1, 1], [], []>} : vector<128x128xf32>, vector<128x256xf32>, vector<128x256xf32> -> vector<128x256xf32>
    %13 = vector.broadcast %3 : vector<1x256xf32> to vector<128x256xf32>
    %14 = arith.addf %12, %13 : vector<128x256xf32>
    %cst_14 = arith.constant 0.000000e+00 : f32
    %15 = vector.broadcast %cst_14 : f32 to vector<128x256xf32>
    %16 = arith.maximumf %14, %15 : vector<128x256xf32>
    %cst_15 = arith.constant dense<0.000000e+00> : vector<128x128xf32>
    %17 = tpu.matmul %16, %9, %cst_15 {dimension_numbers = #tpu.dot_dimension_numbers<[1], [0], [0], [1], [0, 0, 1, 1], [], []>} : vector<128x256xf32>, vector<256x128xf32>, vector<128x128xf32> -> vector<128x128xf32>
    %18 = vector.broadcast %5 : vector<1x128xf32> to vector<128x128xf32>
    %19 = arith.addf %17, %18 : vector<128x128xf32>
    %c0_16 = arith.constant 0 : index
    %c0_17 = arith.constant 0 : index
    %c0_18 = arith.constant 0 : index
    %20 = vector.load %arg7[%c0_16, %c0_17, %c0_18] : memref<1x128x256xf32, #tpu.memory_space<vmem>>, vector<1x128x256xf32>
    %21 = vector.shape_cast %20 : vector<1x128x256xf32> to vector<128x256xf32>
    %22 = vector.shape_cast %16 : vector<128x256xf32> to vector<1x128x256xf32>
    tpu.vector_store %arg7[%c0_16, %c0_17, %c0_18], %22 {strides = array<i32>} : memref<1x128x256xf32, #tpu.memory_space<vmem>>, vector<1x128x256xf32>,
    %c0_19 = arith.constant 0 : index
    %c0_20 = arith.constant 0 : index
    %c0_21 = arith.constant 0 : index
    %23 = vector.load %arg8[%c0_19, %c0_20, %c0_21] : memref<1x128x128xf32, #tpu.memory_space<vmem>>, vector<1x128x128xf32>
    %24 = vector.shape_cast %23 : vector<1x128x128xf32> to vector<128x128xf32>
    %25 = vector.shape_cast %19 : vector<128x128xf32> to vector<1x128x128xf32>
    tpu.vector_store %arg8[%c0_19, %c0_20, %c0_21], %25 {strides = array<i32>} : memref<1x128x128xf32, #tpu.memory_space<vmem>>, vector<1x128x128xf32>,
    %26 = arith.subf %19, %1 : vector<128x128xf32>
    %cst_22 = arith.constant dense<0.000000e+00> : vector<128xf32>
    %27 = vector.multi_reduction <add>, %16, %cst_22 [1] : vector<128x256xf32> to vector<128xf32>
    %28 = arith.mulf %26, %26 : vector<128x128xf32>
    %cst_23 = arith.constant dense<0.000000e+00> : vector<128xf32>
    %29 = vector.multi_reduction <add>, %28, %cst_23 [1] : vector<128x128xf32> to vector<128xf32>
    %cst_24 = arith.constant 1.280000e+02 : f32
    %30 = vector.broadcast %cst_24 : f32 to vector<128xf32>
    %31 = arith.divf %29, %30 : vector<128xf32>
    %32 = vector.shape_cast %27 : vector<128xf32> to vector<1x128xf32>
    %33 = vector.shape_cast %31 : vector<128xf32> to vector<1x128xf32>
    %34 = tpu.concatenate %32, %33 in 0 : vector<1x128xf32>, vector<1x128xf32> -> vector<2x128xf32>
    %c0_25 = arith.constant 0 : index
    %c0_26 = arith.constant 0 : index
    %c0_27 = arith.constant 0 : index
    %35 = vector.load %arg9[%c0_25, %c0_26, %c0_27] : memref<1x2x128xf32, #tpu.memory_space<vmem>>, vector<1x2x128xf32>
    %36 = vector.shape_cast %35 : vector<1x2x128xf32> to vector<2x128xf32>
    %37 = vector.shape_cast %34 : vector<2x128xf32> to vector<1x2x128xf32>
    tpu.vector_store %arg9[%c0_25, %c0_26, %c0_27], %37 {strides = array<i32>} : memref<1x2x128xf32, #tpu.memory_space<vmem>>, vector<1x2x128xf32>,
    return
  }
  func.func @transform_0(%arg0: i32, %arg1: i32) -> (i32, i32, i32) {
    %c0_i32 = arith.constant 0 : i32
    %c0_i32_0 = arith.constant 0 : i32
    return %arg0, %arg1, %c0_i32 : i32, i32, i32
  }
  func.func @transform_1(%arg0: i32, %arg1: i32) -> (i32, i32, i32) {
    %c0_i32 = arith.constant 0 : i32
    %c0_i32_0 = arith.constant 0 : i32
    %c0_i32_1 = arith.constant 0 : i32
    return %arg0, %c0_i32, %c0_i32_0 : i32, i32, i32
  }
  func.func @transform_2(%arg0: i32, %arg1: i32) -> (i32, i32, i32) {
    %c0_i32 = arith.constant 0 : i32
    %c0_i32_0 = arith.constant 0 : i32
    %c0_i32_1 = arith.constant 0 : i32
    return %arg0, %c0_i32, %c0_i32_0 : i32, i32, i32
  }
  func.func @transform_3(%arg0: i32, %arg1: i32) -> (i32, i32, i32) {
    %c0_i32 = arith.constant 0 : i32
    %c0_i32_0 = arith.constant 0 : i32
    %c0_i32_1 = arith.constant 0 : i32
    return %arg0, %c0_i32, %c0_i32_0 : i32, i32, i32
  }
  func.func @transform_4(%arg0: i32, %arg1: i32) -> (i32, i32, i32) {
    %c0_i32 = arith.constant 0 : i32
    %c0_i32_0 = arith.constant 0 : i32
    %c0_i32_1 = arith.constant 0 : i32
    return %arg0, %c0_i32, %c0_i32_0 : i32, i32, i32
  }
  func.func @transform_5(%arg0: i32, %arg1: i32) -> (i32, i32, i32) {
    %c0_i32 = arith.constant 0 : i32
    %c0_i32_0 = arith.constant 0 : i32
    return %arg0, %arg1, %c0_i32 : i32, i32, i32
  }
  func.func @transform_6(%arg0: i32, %arg1: i32) -> (i32, i32, i32) {
    %c0_i32 = arith.constant 0 : i32
    %c0_i32_0 = arith.constant 0 : i32
    return %arg0, %arg1, %c0_i32 : i32, i32, i32
  }
  func.func @transform_7(%arg0: i32, %arg1: i32) -> (i32, i32, i32) {
    %c0_i32 = arith.constant 0 : i32
    %c0_i32_0 = arith.constant 0 : i32
    return %arg0, %c0_i32, %arg1 : i32, i32, i32
  }
}

</mosaic_0001>

<bundles_post_ra>
// kernel: tpu_custom_call.1
= control target key start
LH: loop header
LB: loop body
LE: loop exit
PB: predicated region body
PF: predicated region fallthrough
CT: control target
= control target key end

     0   :  { %s3108_s0 = inlined_call_operand.hbm [shape: f32[2,256,128], index: 0, kind: input, shape index: {}]   ;;  %s3109_s1 = inlined_call_operand.hbm [shape: f32[2,128,256], index: 1, kind: input, shape index: {}]   ;;  %s3110_s2 = inlined_call_operand.hbm [shape: f32[2,256,128], index: 2, kind: input, shape index: {}]   ;;  %s3111_s3 = inlined_call_operand.hbm [shape: f32[2,1,256], index: 3, kind: input, shape index: {}]   ;;  %s3112_s4 = inlined_call_operand.hbm [shape: f32[2,1,128], index: 4, kind: input, shape index: {}]   ;;  %s3113_s5 = inlined_call_operand.hbm [shape: f32[2,256,256], index: 5, kind: output, shape index: {0}]   ;;  %s3114_s6 = inlined_call_operand.hbm [shape: f32[2,256,128], index: 6, kind: output, shape index: {1}]   ;;  %s3115_s7 = inlined_call_operand.hbm [shape: f32[2,2,256], index: 7, kind: output, shape index: {2}]  }
   0x1   :  { %3138 = sst [smem:[#allocation27_spill]] %s3108_s0 }
   0x2   :  { %3139 = sst [smem:[#allocation28_spill]] %s3109_s1 }
   0x3   :  { %3140 = sst [smem:[#allocation29_spill]] %s3110_s2 }
   0x4   :  { %3141 = sst [smem:[#allocation30_spill]] %s3111_s3 }
   0x5   :  { %3142 = sst [smem:[#allocation31_spill]] %s3112_s4 }
   0x6   :  { %3143 = sst [smem:[#allocation32_spill]] %s3113_s5 }
   0x7   :  { %3144 = sst [smem:[#allocation33_spill]] %s3114_s6 }
   0x8   :  { %3145 = sst [smem:[#allocation34_spill]] %s3115_s7 }
   0x9   :  { %13 = vsyncpa [#allocation3], 0 }
   0xa   :  { %15 = vsyncpa [#allocation3 + $0x1], 0 }
   0xb   :  { %16 = vsyncpa [#allocation6], 0 }
   0xc   :  { %17 = vsyncpa [#allocation9], 0 }
   0xd   :  { %18 = vsyncpa [#allocation4], 0 }
   0xe   :  { %20 = vsyncpa [#allocation4 + $0x1], 0 }
   0xf   :  { %21 = vsyncpa [#allocation13], 0 }
  0x10   :  { %23 = vsyncpa [#allocation13 + $0x1], 0  ;;  %s2272_s24 = smov 0   ;;  %s2274_s25 = smov 0  }
  0x11   :  { %s2276_s26 = smov 0   ;;  %s2278_s27 = smov 0  }
  0x12   :  { %s2280_s28 = smov 0   ;;  %s2282_s29 = smov 0  }
  0x13   :  { %s2284_s30 = smov 0   ;;  %s2286_s8 = smov 0  }
  0x14   :  { %s2288_s9 = smov 0   ;;  %s2290_s10 = smov 0  }
  0x15   :  { %s2292_s11 = smov 0  }
  0x16 LB: > { %3146 = sst [smem:[#allocation20_spill]] %s2177_s25  ;;  %s2326_s12 = sadd.s32 4294967295, %s2213_s11   ;;  %s2213_s11 = sphi %s2292_s11, %s29_s11   ;;  %s2209_s10 = sphi %s2290_s10, %s3199_s10   ;;  %s2205_s9 = sphi %s2288_s9, %s3198_s9   ;;  %s2201_s8 = sphi %s2286_s8, %s3197_s8   ;;  %s2197_s30 = sphi %s2284_s30, %s3196_s30   ;;  %s2193_s29 = sphi %s2282_s29, %s3195_s29   ;;  %s2189_s28 = sphi %s2280_s28, %s3194_s28   ;;  %s2185_s27 = sphi %s2278_s27, %s3193_s27   ;;  %s2181_s26 = sphi %s2276_s26, %s3192_s26   ;;  %s2177_s25 = sphi %s2274_s25, %s3191_s25   ;;  %s2173_s24 = sphi %s2272_s24, %s3188_s24  }
  0x17   : > { %3147 = sst [smem:[#allocation21_spill]] %s2185_s27  ;;  %s3116_s13 = sadd.s32 4294967294, %s2213_s11  }
  0x18   : > { %3148 = sst [smem:[#allocation22_spill]] %s2197_s30  ;;  %p63_p0 = scmp.ne.s32.totalorder %s2189_s28, %s2185_s27 }
  0x19   : > { %p64_p1 = scmp.eq.s32.totalorder %s2326_s12, 0  ;;  %p89_p2 = scmp.ne.s32.totalorder %s2177_s25, %s2173_s24 }
  0x1a   : > { %p199_p5 = scmp.eq.s32.totalorder %s3116_s13, 3  ;;  %p1546_p7 = scmp.ge.s32.totalorder %s2213_s11, 1 }
  0x1b   : > { %p2334_p4 = por %p64_p1, %p63_p0  ;;  %p2340_p6 = por %p89_p2, %p64_p1 }
  0x1c   : > { %p2345_p8 = por %p199_p5, %p63_p0  ;;  %p262_p9 = scmp.lt.s32.totalorder %s2213_s11, 5 }
  0x1d   : > { %s3149_s14 = scalar_select %p2334_p4, 1, 0 }
  0x1e   : > { %s3151_s15 = scalar_select %p2340_p6, 1, 0 }
  0x1f   : > { %3150 = sst [smem:[#allocation23_spill]] %s3149_s14  ;;  %s1579_s17 = sshll.u32 %s2201_s8, 12 }
  0x20   : > { %3152 = sst [smem:[#allocation24_spill]] %s3151_s15  ;;  %p2351_p10 = pnand %p1546_p7, %p262_p9 }
  0x21   : > { %s3153_s16 = scalar_select %p2345_p8, 1, 0 }
  0x22   : > { %s3155_s18 = scalar_select %p2351_p10, 1, 0 }
  0x23   : > { %3154 = sst [smem:[#allocation25_spill]] %s3153_s16  ;;  %s3156_s1 = sld [smem:[#allocation28_spill]] }
  0x24   : > { %s2215_s22 = smov [#allocation5]   ;;  %p1743_p11 = pneg %p2351_p10 }
  0x25   : > { %s277_s23 = sshll.u32 %s2215_s22, 4  ;;  %s3157_s2 = sld [smem:[#allocation29_spill]]  ;;  %s2362_s23 = int_to_ptr.vmem [resolvable:$true] %s277_s23 }
  0x26   : > { %p2371_p12 = pnand %p1743_p11, %p2340_p6  ;;  %s3130_s20 = sshll.u32 %s2201_s8, 5 }
  0x27   : > { %s3159_s3 = sld [smem:[#allocation30_spill]] }
  0x28   : > { %s3158_s19 = scalar_select %p2371_p12, 1, 0 }
  0x29   : > { %s2358_s21 = scalar_lea.hbm %s3156_s1, %s1579_s17  ;;  %p2387_p0 = pneg %p2371_p12 }
  0x2a   : > { %s1873_s7 = scalar_lea.hbm %s2358_s21, 4096  ;;  %s1878_s5 = scalar_lea.hbm %s3156_s1, 8192 }
  0x2b   : > { %s2367_s25 = scalar_lea.hbm %s3157_s2, %s1579_s17  ;;  %p1874_p13 = scmp.ne.s32.totalorder %s2358_s21, %s1873_s7 }
  0x2c   : > { %p1879_p5 = scmp.lt.u32.totalorder %s2358_s21, %s3156_s1  ;;  %p1880_p7 = scmp.lt.u32.totalorder %s1878_s5, %s1873_s7 }
  0x2d   : > { %s2381_s27 = scalar_lea.hbm %s3159_s3, %s3130_s20  ;;  %p1876_p1 = pnand %p2387_p0, %p1874_p13 }
  0x2e   : > { %p1881_p9 = por %p1880_p7, %p1879_p5  ;;  %p1882_p11 = scmp.lt.u32.totalorder %s1873_s7, %s2358_s21 }
  0x2f   : > { %p1877_p2 = pneg %p1876_p1 }
  0x30   : > { %p1883_p3 = por %p1882_p11, %p1881_p9 }
  0x32   : > { %p1884_p8 = pnand %p1883_p3, %p1877_p2 }
  0x34   : > { %1887 = shalt.err (!%p1884_p8)
}
  0x35   : > { %s1888_s16 = scalar_lea.vmem %s2362_s23, 4096  ;;  %p1896_p4 = scmp.lt.s32.totalorder %s2362_s23, %s2362_s23 }
  0x36   : > { %p1889_p13 = scmp.ne.s32.totalorder %s2362_s23, %s1888_s16  ;;  %p1897_p10 = scmp.lt.s32.totalorder %s1888_s16, %s1888_s16 }
  0x38   : > { %p1891_p1 = pnand %p1889_p13, %p2387_p0  ;;  %p1898_p12 = por %p1897_p10, %p1896_p4 }
  0x3a   : > { %p1892_p6 = pneg %p1891_p1 }
  0x3c   : > { %p1899_p5 = pnand %p1898_p12, %p1892_p6 }
  0x3e   : > { %1902 = shalt.err (!%p1899_p5)
}
  0x3f   : > { %s2216_s5 = smov 256   ;;  %s2217_s6 = smov 16  }
  0x40   : > { %p3161_p3 = scmp.ne.s32.totalorder %s3158_s19, 0  ;;  %s2218_s7 = smov [#allocation8]  }
  0x41   : > { %s310_s30 = sshll.u32 %s2218_s7, 4  ;;  %s2219_s22 = smov [#allocation7]   ;;  %s311_s30 = int_to_ptr.vmem [resolvable:$true] %s310_s30 }
  0x42   : > { %1746 = dma.hbm_to_vmem [thread:$0]  (!%p3161_p3), %s2358_s21, 4096, %s2362_s23, [#allocation6], %s2216_s5, %s2216_s5, %s2217_s6  }
  0x43   : > { %s293_s17 = sshll.u32 %s2219_s22, 4  ;;  %s1903_s24 = scalar_lea.hbm %s2381_s27, 32  ;;  %s294_s17 = int_to_ptr.vmem [resolvable:$true] %s293_s17 }
  0x44   : > { %p1904_p4 = scmp.ne.s32.totalorder %s2381_s27, %s1903_s24  ;;  %s1908_s1 = scalar_lea.hbm %s3159_s3, 64 }
  0x45   : > { %p1909_p10 = scmp.lt.u32.totalorder %s2381_s27, %s3159_s3  ;;  %p1910_p12 = scmp.lt.u32.totalorder %s1908_s1, %s1903_s24 }
  0x46   : > { %p1906_p6 = pnand %p1904_p4, %p2387_p0  ;;  %p1912_p7 = scmp.lt.u32.totalorder %s1903_s24, %s2381_s27 }
  0x47   : > { %p1911_p2 = por %p1910_p12, %p1909_p10 }
  0x48   : > { %p1907_p8 = pneg %p1906_p6 }
  0x49   : > { %p1913_p9 = por %p1912_p7, %p1911_p2 }
  0x4b   : > { %p1914_p11 = pnand %p1913_p9, %p1907_p8 }
  0x4d   : > { %1917 = shalt.err (!%p1914_p11)
}
  0x4e   : > { %s1918_s21 = scalar_lea.vmem %s311_s30, 32  ;;  %p1926_p4 = scmp.lt.s32.totalorder %s311_s30, %s311_s30 }
  0x4f   : > { %p1919_p13 = scmp.ne.s32.totalorder %s311_s30, %s1918_s21  ;;  %p1927_p6 = scmp.lt.s32.totalorder %s1918_s21, %s1918_s21 }
  0x51   : > { %p1921_p1 = pnand %p1919_p13, %p2387_p0  ;;  %p1928_p3 = por %p1927_p6, %p1926_p4 }
  0x53   : > { %p1922_p5 = pneg %p1921_p1 }
  0x55   : > { %p1929_p10 = pnand %p1928_p3, %p1922_p5 }
  0x57   : > { %1932 = shalt.err (!%p1929_p10)
}
  0x58   : > { %p3162_p12 = scmp.ne.s32.totalorder %s3158_s19, 0  ;;  %s1553_s1 = sshll.u32 %s2201_s8, 4 }
  0x59   : > { %s1933_s14 = scalar_lea.hbm %s2367_s25, 4096  ;;  %s1938_s20 = scalar_lea.hbm %s3157_s2, 8192 }
  0x5a   : > { %1752 = dma.hbm_to_vmem [thread:$0]  (!%p3162_p12), %s2381_s27, 32, %s311_s30, [#allocation9]  }
  0x5b   : > { %p1934_p8 = scmp.ne.s32.totalorder %s2367_s25, %s1933_s14  ;;  %p1939_p3 = scmp.lt.u32.totalorder %s2367_s25, %s3157_s2 }
  0x5c   : > { %p1940_p9 = scmp.lt.u32.totalorder %s1938_s20, %s1933_s14  ;;  %p1942_p13 = scmp.lt.u32.totalorder %s1933_s14, %s2367_s25 }
  0x5d   : > { %p1936_p2 = pnand %p1934_p8, %p2387_p0 }
  0x5e   : > { %p1941_p11 = por %p1940_p9, %p1939_p3 }
  0x5f   : > { %p1937_p7 = pneg %p1936_p2 }
  0x60   : > { %p1943_p1 = por %p1942_p13, %p1941_p11 }
  0x62   : > { %p1944_p5 = pnand %p1943_p1, %p1937_p7 }
  0x64   : > { %1947 = shalt.err (!%p1944_p5)
}
  0x65   : > { %s1948_s27 = scalar_lea.vmem %s294_s17, 4096  ;;  %p1956_p8 = scmp.lt.s32.totalorder %s294_s17, %s294_s17 }
  0x66   : > { %p1949_p4 = scmp.ne.s32.totalorder %s294_s17, %s1948_s27  ;;  %p1957_p2 = scmp.lt.s32.totalorder %s1948_s27, %s1948_s27 }
  0x68   : > { %p1951_p6 = pnand %p1949_p4, %p2387_p0  ;;  %p1958_p12 = por %p1957_p2, %p1956_p8 }
  0x6a   : > { %p1952_p10 = pneg %p1951_p6 }
  0x6c   : > { %p1959_p3 = pnand %p1958_p12, %p1952_p10 }
  0x6e   : > { %1962 = shalt.err (!%p1959_p3)
}
  0x6f   : > { %s3135_s7 = smov 128   ;;  %s3136_s30 = smov 8  }
  0x70   : > { %p3163_p9 = scmp.ne.s32.totalorder %s3158_s19, 0  ;;  %s3164_s4 = sld [smem:[#allocation31_spill]] }
  0x71   : > { %s2222_s21 = smov [#allocation10]  }
  0x72   : > { %1749 = dma.hbm_to_vmem [thread:$0]  (!%p3163_p9), %s2367_s25, 4096, %s294_s17, [#allocation6], %s3135_s7, %s3135_s7, %s3136_s30  }
  0x73   : > { %s323_s14 = sshll.u32 %s2222_s21, 4  ;;  %s324_s14 = int_to_ptr.vmem [resolvable:$true] %s323_s14 }
  0x76   : > { %s321_s16 = scalar_lea.hbm %s3164_s4, %s1553_s1  ;;  %s1968_s5 = scalar_lea.hbm %s3164_s4, 32 }
  0x77   : > { %s1963_s15 = scalar_lea.hbm %s321_s16, 16  ;;  %p1969_p13 = scmp.lt.u32.totalorder %s321_s16, %s3164_s4 }
  0x78   : > { %p1964_p12 = scmp.ne.s32.totalorder %s321_s16, %s1963_s15  ;;  %p1970_p1 = scmp.lt.u32.totalorder %s1968_s5, %s1963_s15 }
  0x79   : > { %p1972_p4 = scmp.lt.u32.totalorder %s1963_s15, %s321_s16 }
  0x7a   : > { %p1966_p7 = pnand %p1964_p12, %p2387_p0  ;;  %p1971_p5 = por %p1970_p1, %p1969_p13 }
  0x7c   : > { %p1967_p11 = pneg %p1966_p7  ;;  %p1973_p6 = por %p1972_p4, %p1971_p5 }
  0x7e   : > { %p1974_p10 = pnand %p1973_p6, %p1967_p11 }
  0x80   : > { %1977 = shalt.err (!%p1974_p10)
}
  0x81   : > { %s1978_s25 = scalar_lea.vmem %s324_s14, 16  ;;  %s1985_s17 = scalar_lea.vmem %s324_s14, 32 }
  0x82   : > { %p1979_p8 = scmp.ne.s32.totalorder %s324_s14, %s1978_s25  ;;  %p1986_p12 = scmp.lt.s32.totalorder %s324_s14, %s324_s14 }
  0x83   : > { %p1987_p7 = scmp.lt.s32.totalorder %s1985_s17, %s1978_s25 }
  0x84   : > { %p1981_p2 = pnand %p1979_p8, %p2387_p0 }
  0x85   : > { %p1988_p9 = por %p1987_p7, %p1986_p12 }
  0x86   : > { %p1982_p3 = pneg %p1981_p2 }
  0x88   : > { %p1989_p1 = pnand %p1988_p9, %p1982_p3 }
  0x8a   : > { %1992 = shalt.err (!%p1989_p1)
}
  0x8b   : > { %p3165_p13 = scmp.ne.s32.totalorder %s3158_s19, 0  ;;  %s38_s13 = sadd.s32 1, %s2205_s9 }
  0x8c   : > { %s41_s1 = sadd.s32 1, %s2209_s10  ;;  %p39_p0 = scmp.ge.s32.totalorder %s38_s13, 2 }
  0x8d   : > { %1755 = dma.hbm_to_vmem [thread:$0]  (!%p3165_p13), %s321_s16, 16, %s324_s14, [#allocation9]  }
  0x8e   : > { %s50_s22 = sadd.s32 1, %s2193_s29  ;;  %p57_p9 = scmp.ne.s32.totalorder %s2193_s29, %s2189_s28 }
  0x8f   : > { %p58_p11 = scmp.eq.s32.totalorder %s2213_s11, 0  ;;  %s3201_s13 = smov (%p39_p0, %s38_s13), 0 }
  0x90   : > { %3166 = sst [smem:[#allocation26_spill]] %s3201_s13  ;;  %s3203_s1 = smov (!%p39_p0, %s41_s1), %s2209_s10 }
  0x91   : > { %s46_s19 = ssub.s32 %s2205_s9, %s3201_s13  ;;  %p2475_p5 = por %p58_p11, %p57_p9 }
  0x92   : > { %p43_p4 = scmp.ge.s32.totalorder %s3203_s1, 2  ;;  %s76_s16 = sadd.s32 1, %s2181_s26 }
  0x93   : > { %p3168_p6 = scmp.eq.s32.totalorder %s2326_s12, 3  ;;  %p1770_p8 = scmp.lt.s32.totalorder %s2213_s11, 4 }
  0x94   : > { %s3205_s1 = smov (%p43_p4, %s3203_s1), 0  ;;  %s334_s14 = sand.u32 1, %s2193_s29  }
  0x95   : > { %p2482_p10 = por %p3168_p6, %p57_p9  ;;  %s1556_s15 = sshll.u32 %s2205_s9, 4 }
  0x96   : > { %s45_s23 = ssub.s32 %s2209_s10, %s3205_s1  ;;  %s1555_s5 = sshll.u32 %s334_s14, 7 }
  0x97   : > { %s47_s20 = sor.u32 %s46_s19, %s45_s23  ;;  %p74_p2 = scmp.eq.s32.totalorder %s45_s23, 0 }
  0x98   : > { %p48_p3 = scmp.eq.s32.totalorder %s47_s20, 0  ;;  %s1557_s25 = sshll.u32 %s2209_s10, 5 }
  0x99   : > { %s2494_s6 = scalar_select %p74_p2, %s2181_s26, %s76_s16  }
  0x9a   : > { %s2497_s27 = scalar_select %p48_p3, %s2193_s29, %s50_s22  }
  0x9b   : > { %s344_s17 = sadd.s32 %s1557_s25, %s1556_s15  ;;  %s338_s7 = scalar_lea.vmem [#allocation2], %s1555_s5 }
  0x9c   : > { %s347_s30 = sshll.u32 %s338_s7, 4  ;;  %s1558_s2 = sshll.u32 %s344_s17, 7  ;;  %s2500_s30 = int_to_ptr.vmem [resolvable:$true] %s347_s30 }
  0x9d   : > { %s3170_s0 = sld [smem:[#allocation27_spill]]  ;;  %p2511_p12 = pnand %p1770_p8, %p2475_p5 }
  0x9e   : > { %s2515_s7 = scalar_lea.sflag [#allocation3], %s334_s14 }
  0x9f   : > { %p1995_p1 = pneg %p2511_p12 }
  0xa3   : > { %s2505_s13 = scalar_lea.hbm %s3170_s0, %s1558_s2  ;;  %s1998_s4 = scalar_lea.hbm %s3170_s0, 8192 }
  0xa4   : > { %s1993_s19 = scalar_lea.hbm %s2505_s13, 2048  ;;  %p1999_p9 = scmp.lt.u32.totalorder %s2505_s13, %s3170_s0 }
  0xa5   : > { %p1994_p7 = scmp.ne.s32.totalorder %s2505_s13, %s1993_s19  ;;  %p2000_p11 = scmp.lt.u32.totalorder %s1998_s4, %s1993_s19 }
  0xa6   : > { %p2002_p4 = scmp.lt.u32.totalorder %s1993_s19, %s2505_s13 }
  0xa7   : > { %p1996_p13 = pnand %p1995_p1, %p1994_p7  ;;  %p2001_p5 = por %p2000_p11, %p1999_p9 }
  0xa9   : > { %p1997_p0 = pneg %p1996_p13  ;;  %p2003_p6 = por %p2002_p4, %p2001_p5 }
  0xab   : > { %p2004_p8 = pnand %p2003_p6, %p1997_p0 }
  0xad   : > { %2007 = shalt.err (!%p2004_p8)
}
  0xae   : > { %s2008_s14 = scalar_lea.vmem %s2500_s30, 2048  ;;  %s2223_s15 = smov [#allocation2]  }
  0xaf   : > { %p2009_p2 = scmp.ne.s32.totalorder %s2500_s30, %s2008_s14  ;;  %s2013_s23 = sshll.u32 %s2223_s15, 4  ;;  %s2014_s23 = int_to_ptr.vmem [resolvable:$false] %s2013_s23 }
  0xb0   : > { %s2015_s20 = scalar_lea.vmem %s2014_s23, 4096  ;;  %p2016_p13 = scmp.lt.s32.totalorder %s2500_s30, %s2014_s23 }
  0xb1   : > { %p2011_p3 = pnand %p2009_p2, %p1995_p1  ;;  %p2017_p9 = scmp.lt.s32.totalorder %s2015_s20, %s2008_s14 }
  0xb3   : > { %p2012_p7 = pneg %p2011_p3  ;;  %p2018_p11 = por %p2017_p9, %p2016_p13 }
  0xb5   : > { %p2019_p5 = pnand %p2018_p11, %p2012_p7 }
  0xb7   : > { %2022 = shalt.err (!%p2019_p5)
}
  0xb8   : > { %s3172_s5 = smov 8   ;;  %s3173_s25 = smov 128  }
  0xb9   : > { %1759 = dma.hbm_to_vmem [thread:$0]  (!%p2511_p12), %s2505_s13, 2048, %s2500_s30, %s2515_s7, %s3173_s25, %s3173_s25, %s3172_s5  }
  0xba   : > { %p3174_p1 = scmp.ne.s32.totalorder %s3155_s18, 0 }
  0xbb   : > { %s3175_s17 = sld [smem:[#allocation23_spill]] (!%p3174_p1)  ;;  %s2549_s19 = sand.u32 (!%p3174_p1), 1, %s2189_s28  }
  0xbc   : > { %359 = sbr.rel (%p3174_p1) target bundleno = 905 (0x389), region = 40  ;;  %s1560_s2 = sshll.u32 (!%p3174_p1), %s2549_s19, 7 }
  0xbd   : > { %s362_s3 = scalar_lea.sflag (!%p3174_p1), [#allocation3], %s2549_s19  ;;  %s2555_s22 = scalar_lea.vmem (!%p3174_p1), [#allocation2], %s1560_s2 }
  0xc1   : > { %p3176_p0 = scmp.ne.s32.totalorder (!%p3174_p1), %s3175_s17, 0 }
  0xc3   : > { %2152 = dma.done.wait (%p3176_p0), %s362_s3, 2048  }
  0xc4   : > { %2154 = vsyncadd (%p3176_p0), %s362_s3, 4294965248  ;;  %s3177_s30 = sld [smem:[#allocation24_spill]] }
  0xca   : > { %p3178_p12 = scmp.ne.s32.totalorder %s3177_s30, 0 }
  0xcc   : > { %2156 = dma.done.wait (%p3178_p12), [#allocation6], 8192  }
  0xcd   : > { %2158 = vsyncadd (%p3178_p12), [#allocation6], 4294959104 }
  0xce   : > { %2160 = dma.done.wait (%p3178_p12), [#allocation9], 48  }
  0xcf   : > { %2162 = vsyncadd (%p3178_p12), [#allocation9], 4294967248  ;;  %v2224_v0 = vmov 0.0   ;;  %v444_v1 = vld [vmem:[#allocation5 + $0x8] sm:$0xff]  ;;  %v446_v2 = vld [vmem:[#allocation5 + $0x18] sm:$0xff]  ;;  %s1561_s18 = sshll.u32 %s2549_s19, 8 }
  0xd0   : > { %604 = vmatprep.mubr.f32.mxu0 %v2224_v0  ;;  %v443_v3 = vld [vmem:[#allocation5] sm:$0xff]  ;;  %v1663_v4 = vpack.c.bf16 %v446_v2, %v444_v1  ;;  %v445_v5 = vld [vmem:[#allocation5 + $0x10] sm:$0xff]  ;;  %v448_v6 = vld [vmem:[#allocation5 + $0x28] sm:$0xff]  ;;  %s2679_s13 = scalar_lea.vmem [#allocation11], %s1561_s18  ;;  %s2756_s7 = scalar_lea.vmem [#allocation12], %s1560_s2 }
  0xd1   : > { %v450_v7 = vld [vmem:[#allocation5 + $0x38] sm:$0xff]  ;;  %v1665_v8 = vpack.c.bf16 %v445_v5, %v443_v3  ;;  %v447_v10 = vld [vmem:[#allocation5 + $0x20] sm:$0xff]  ;;  %v449_v11 = vld [vmem:[#allocation5 + $0x30] sm:$0xff]  ;;  %s3179_s4 = sld [smem:[#allocation22_spill]]  ;;  %s3180_s16 = sshll.u32 %s2201_s8, 5 }
  0xd2   : > { %v1667_v9 = vpack.c.bf16 %v450_v7, %v448_v6  ;;  %v452_v12 = vld [vmem:[#allocation5 + $0x48] sm:$0xff]  ;;  %1664 = vmatprep.subr.bf16.mxu0 %v1663_v4  ;;  %v454_v13 = vld [vmem:[#allocation5 + $0x58] sm:$0xff]  ;;  %v1669_v14 = vpack.c.bf16 %v449_v11, %v447_v10  ;;  %v451_v16 = vld [vmem:[#allocation5 + $0x40] sm:$0xff]  ;;  %s1287_s23 = sand.u32 1, %s2326_s12   ;;  %s3181_s17 = sld [smem:[#allocation33_spill]] }
  0xd3   : > { %1666 = vmatpush1.bf16.msra.mxu0 %v1665_v8  ;;  %v1671_v15 = vpack.c.bf16 %v454_v13, %v452_v12  ;;  %v453_v17 = vld [vmem:[#allocation5 + $0x50] sm:$0xff]  ;;  %v456_v18 = vld [vmem:[#allocation5 + $0x68] sm:$0xff]  ;;  %v458_v19 = vld [vmem:[#allocation5 + $0x78] sm:$0xff]  ;;  %s1327_s3 = sshll.u32 %s2756_s7, 4  ;;  %s2225_s12 = smov [#allocation12]   ;;  %s2821_s3 = int_to_ptr.vmem [resolvable:$true] %s1327_s3 }
  0xd4   : > { %1668 = vmatprep.subr.bf16.mxu0 %v1667_v9  ;;  %v1673_v20 = vpack.c.bf16 %v453_v17, %v451_v16  ;;  %v1675_v21 = vpack.c.bf16 %v458_v19, %v456_v18  ;;  %v455_v22 = vld [vmem:[#allocation5 + $0x60] sm:$0xff]  ;;  %v457_v23 = vld [vmem:[#allocation5 + $0x70] sm:$0xff]  ;;  %v460_v24 = vld [vmem:[#allocation5 + $0x88] sm:$0xff]  ;;  %s2023_s30 = scalar_lea.vmem %s2821_s3, 2048  ;;  %s2027_s18 = sshll.u32 %s2225_s12, 4  ;;  %s2028_s18 = int_to_ptr.vmem [resolvable:$false] %s2027_s18 }
  0xd5   : > { %v462_v25 = vld [vmem:[#allocation5 + $0x98] sm:$0xff]  ;;  %v1677_v26 = vpack.c.bf16 %v457_v23, %v455_v22  ;;  %v459_v28 = vld [vmem:[#allocation5 + $0x80] sm:$0xff]  ;;  %v461_v29 = vld [vmem:[#allocation5 + $0x90] sm:$0xff]  ;;  %p2024_p4 = scmp.ne.s32.totalorder %s2821_s3, %s2023_s30  ;;  %p2030_p2 = scmp.lt.s32.totalorder %s2821_s3, %s2028_s18 }
  0xd6   : > { %v1679_v27 = vpack.c.bf16 %v462_v25, %v460_v24  ;;  %v464_v30 = vld [vmem:[#allocation5 + $0xa8] sm:$0xff]  ;;  %v466_v31 = vld [vmem:[#allocation5 + $0xb8] sm:$0xff]  ;;  %v463_v32 = vld [vmem:[#allocation5 + $0xa0] sm:$0xff]  ;;  %v1681_v34 = vpack.c.bf16 %v461_v29, %v459_v28 }
  0xd7   : > { %1670 = vmatpush1.bf16.msra.mxu0 %v1669_v14  ;;  %v465_v33 = vld [vmem:[#allocation5 + $0xb0] sm:$0xff]  ;;  %v468_v35 = vld [vmem:[#allocation5 + $0xc8] sm:$0xff]  ;;  %v470_v36 = vld [vmem:[#allocation5 + $0xd8] sm:$0xff]  ;;  %v1683_v39 = vpack.c.bf16 %v466_v31, %v464_v30  ;;  %s1572_s24 = sshll.u32 %s3179_s4, 4  ;;  %s1582_s15 = sshll.u32 %s3179_s4, 5 }
  0xd8   : > { %1672 = vmatprep.subr.bf16.mxu0 %v1671_v15  ;;  %v491_v37 = vld [vmem:[#allocation7 + $0x80] sm:$0xff]  ;;  %v492_v38 = vld [vmem:[#allocation7 + $0x88] sm:$0xff]  ;;  %v493_v43 = vld [vmem:[#allocation7 + $0x90] sm:$0xff]  ;;  %v1685_v51 = vpack.c.bf16 %v465_v33, %v463_v32  ;;  %v1687_v55 = vpack.c.bf16 %v470_v36, %v468_v35  ;;  %s1324_s14 = sadd.s32 %s3180_s16, %s1572_s24  ;;  %p2025_p6 = pnand %p2024_p4, %p2482_p10 }
  0xd9   : > { %v1695_v40 = vpack.c.bf16 %v492_v38, %v491_v37  ;;  %v475_v41 = vld [vmem:[#allocation7] sm:$0xff]  ;;  %v476_v42 = vld [vmem:[#allocation7 + $0x8] sm:$0xff]  ;;  %v494_v45 = vld [vmem:[#allocation7 + $0x98] sm:$0xff]  ;;  %s1574_s20 = sshll.u32 %s1324_s14, 7  ;;  %s2029_s24 = scalar_lea.vmem %s2028_s18, 4096 }
  0xda   : > { %v1697_v44 = vpack.c.bf16 %v476_v42, %v475_v41  ;;  %v477_v46 = vld [vmem:[#allocation7 + $0x10] sm:$0xff]  ;;  %v478_v47 = vld [vmem:[#allocation7 + $0x18] sm:$0xff]  ;;  %v1699_v48 = vpack.c.bf16 %v494_v45, %v493_v43  ;;  %v495_v49 = vld [vmem:[#allocation7 + $0xa0] sm:$0xff]  ;;  %s2818_s2 = scalar_lea.hbm %s3181_s17, %s1574_s20  ;;  %p2026_p8 = pneg %p2025_p6 }
  0xdb   : > { %1674 = vmatpush1.bf16.msra.mxu0 %v1673_v20  ;;  %1696 = vmatprep.subr.bf16.mxu1 %v1695_v40  ;;  %v496_v50 = vld [vmem:[#allocation7 + $0xa8] sm:$0xff]  ;;  %v467_v52 = vld [vmem:[#allocation5 + $0xc0] sm:$0xff]  ;;  %v469_v53 = vld [vmem:[#allocation5 + $0xd0] sm:$0xff]  ;;  %v1701_v54 = vpack.c.bf16 %v478_v47, %v477_v46  ;;  %p2031_p3 = scmp.lt.s32.totalorder %s2029_s24, %s2023_s30 }
  0xdc   : > { %1676 = vmatprep.subr.bf16.mxu0 %v1675_v21  ;;  %1698 = vmatpush3.bf16.msra.mxu1 %v1697_v44  ;;  %v472_v56 = vld [vmem:[#allocation5 + $0xe8] sm:$0xff]  ;;  %v1703_v57 = vpack.c.bf16 %v496_v50, %v495_v49  ;;  %v479_v58 = vld [vmem:[#allocation7 + $0x20] sm:$0xff]  ;;  %v474_v60 = vld [vmem:[#allocation5 + $0xf8] sm:$0xff]  ;;  %v1689_v63 = vpack.c.bf16 %v469_v53, %v467_v52 }
  0xdd   : > { %1700 = vmatprep.subr.bf16.mxu1 %v1699_v48  ;;  %v480_v59 = vld [vmem:[#allocation7 + $0x28] sm:$0xff]  ;;  %v497_v61 = vld [vmem:[#allocation7 + $0xb0] sm:$0xff]  ;;  %v498_v62 = vld [vmem:[#allocation7 + $0xb8] sm:$0xff]  ;;  %v1691_v3 = vpack.c.bf16 %v474_v60, %v472_v56  ;;  %p2032_p7 = por %p2031_p3, %p2030_p2 }
  0xde   : > { %v471_v1 = vld [vmem:[#allocation5 + $0xe0] sm:$0xff]  ;;  %v1705_v2 = vpack.c.bf16 %v480_v59, %v479_v58  ;;  %v473_v4 = vld [vmem:[#allocation5 + $0xf0] sm:$0xff]  ;;  %v1707_v5 = vpack.c.bf16 %v498_v62, %v497_v61  ;;  %v482_v7 = vld [vmem:[#allocation7 + $0x38] sm:$0xff] }
  0xdf   : > { %1678 = vmatpush1.bf16.msra.mxu0 %v1677_v26  ;;  %v481_v6 = vld [vmem:[#allocation7 + $0x30] sm:$0xff]  ;;  %v499_v8 = vld [vmem:[#allocation7 + $0xc0] sm:$0xff]  ;;  %v500_v9 = vld [vmem:[#allocation7 + $0xc8] sm:$0xff]  ;;  %v1693_v10 = vpack.c.bf16 %v473_v4, %v471_v1  ;;  %v530_v4 = vlaneseq  ;;  %p2033_p13 = pnand %p2032_p7, %p2026_p8 }
  0xe0   : > { %1680 = vmatprep.subr.bf16.mxu0 %v1679_v27  ;;  %1702 = vmatpush3.bf16.msra.mxu1 %v1701_v54  ;;  %v2571_v11 = vld [vmem:[%s2555_s22] sm:$0xff]  ;;  %v1709_v13 = vpack.c.bf16 %v482_v7, %v481_v6  ;;  %v1711_v14 = vpack.c.bf16 %v500_v9, %v499_v8  ;;  %v484_v16 = vld [vmem:[#allocation7 + $0x48] sm:$0xff]  ;;  %v501_v17 = vld [vmem:[#allocation7 + $0xd0] sm:$0xff] }
  0xe1   : > { %1704 = vmatprep.subr.bf16.mxu1 %v1703_v57  ;;  %v2573_v12 = vld [vmem:[#allocation10] ss:$0 sm:$0xff]  ;;  %v502_v18 = vld [vmem:[#allocation7 + $0xd8] sm:$0xff]  ;;  %v2578_v20 = vld [vmem:[%s2555_s22 + $0x8] sm:$0xff] }
  0xe2   : > { %v483_v15 = vld [vmem:[#allocation7 + $0x40] sm:$0xff]  ;;  %v513_v19 = vsub.f32 %v2571_v11, %v2573_v12  ;;  %v1715_v22 = vpack.c.bf16 %v502_v18, %v501_v17  ;;  %v485_v23 = vld [vmem:[#allocation7 + $0x50] sm:$0xff]  ;;  %v486_v24 = vld [vmem:[#allocation7 + $0x58] sm:$0xff]  ;;  %v514_v27 = vsub.f32 %v2578_v20, %v2573_v12 }
  0xe3   : > { %1682 = vmatpush1.bf16.msra.mxu0 %v1681_v34  ;;  %v1713_v21 = vpack.c.bf16 %v484_v16, %v483_v15  ;;  %v503_v25 = vld [vmem:[#allocation7 + $0xe0] sm:$0xff]  ;;  %v504_v26 = vld [vmem:[#allocation7 + $0xe8] sm:$0xff]  ;;  %v2584_v28 = vld [vmem:[%s2555_s22 + $0x10] sm:$0xff]  ;;  %v1717_v29 = vpack.c.bf16 %v486_v24, %v485_v23 }
  0xe4   : > { %1684 = vmatprep.subr.bf16.mxu0 %v1683_v39  ;;  %1706 = vmatpush3.bf16.msra.mxu1 %v1705_v2  ;;  %v1719_v30 = vpack.c.bf16 %v504_v26, %v503_v25  ;;  %v515_v31 = vsub.f32 %v2584_v28, %v2573_v12  ;;  %v2590_v32 = vld [vmem:[%s2555_s22 + $0x18] sm:$0xff]  ;;  %v2596_v34 = vld [vmem:[%s2555_s22 + $0x20] sm:$0xff]  ;;  %v2602_v36 = vld [vmem:[%s2555_s22 + $0x28] sm:$0xff] }
  0xe5   : > { %1708 = vmatprep.subr.bf16.mxu1 %v1707_v5  ;;  %v516_v33 = vsub.f32 %v2590_v32, %v2573_v12  ;;  %v517_v35 = vsub.f32 %v2596_v34, %v2573_v12  ;;  %v518_v37 = vsub.f32 %v2602_v36, %v2573_v12  ;;  %v2608_v38 = vld [vmem:[%s2555_s22 + $0x30] sm:$0xff]  ;;  %v2614_v40 = vld [vmem:[%s2555_s22 + $0x38] sm:$0xff]  ;;  %v2620_v42 = vld [vmem:[%s2555_s22 + $0x40] sm:$0xff]  ;;  %v2668_v5 = vshrl.u32 %v530_v4, 7 }
  0xe6   : > { %v519_v39 = vsub.f32 %v2608_v38, %v2573_v12  ;;  %v520_v41 = vsub.f32 %v2614_v40, %v2573_v12  ;;  %v521_v43 = vsub.f32 %v2620_v42, %v2573_v12  ;;  %v2626_v44 = vld [vmem:[%s2555_s22 + $0x48] sm:$0xff]  ;;  %v2632_v46 = vld [vmem:[%s2555_s22 + $0x50] sm:$0xff]  ;;  %v2638_v48 = vld [vmem:[%s2555_s22 + $0x58] sm:$0xff] }
  0xe7   : > { %1686 = vmatpush1.bf16.msra.mxu0 %v1685_v51  ;;  %v522_v45 = vsub.f32 %v2626_v44, %v2573_v12  ;;  %v523_v47 = vsub.f32 %v2632_v46, %v2573_v12  ;;  %v524_v49 = vsub.f32 %v2638_v48, %v2573_v12  ;;  %v2644_v50 = vld [vmem:[%s2555_s22 + $0x60] sm:$0xff]  ;;  %v2650_v52 = vld [vmem:[%s2555_s22 + $0x68] sm:$0xff]  ;;  %v2656_v54 = vld [vmem:[%s2555_s22 + $0x70] sm:$0xff]  ;;  %v536_v7 = vsub.s32 1, %v2668_v5 }
  0xe8   : > { %1688 = vmatprep.subr.bf16.mxu0 %v1687_v55  ;;  %1710 = vmatpush3.bf16.msra.mxu1 %v1709_v13  ;;  %v525_v51 = vsub.f32 %v2644_v50, %v2573_v12  ;;  %v526_v53 = vsub.f32 %v2650_v52, %v2573_v12  ;;  %v527_v55 = vsub.f32 %v2656_v54, %v2573_v12  ;;  %v2662_v56 = vld [vmem:[%s2555_s22 + $0x78] sm:$0xff]  ;;  %v487_v58 = vld [vmem:[#allocation7 + $0x60] sm:$0xff]  ;;  %v488_v59 = vld [vmem:[#allocation7 + $0x68] sm:$0xff]  ;;  %s2823_s22 = scalar_lea.sflag [#allocation13], %s1287_s23 }
  0xe9   : > { %1712 = vmatprep.subr.bf16.mxu1 %v1711_v14  ;;  %v528_v57 = vsub.f32 %v2662_v56, %v2573_v12  ;;  %v1721_v60 = vpack.c.bf16 %v488_v59, %v487_v58  ;;  %v505_v61 = vld [vmem:[#allocation7 + $0xf0] sm:$0xff]  ;;  %v506_v62 = vld [vmem:[#allocation7 + $0xf8] sm:$0xff]  ;;  %v441_v6 = vld [vmem:[#allocation8] sm:$0x3] }
  0xea   : > { %v489_v1 = vld [vmem:[#allocation7 + $0x70] sm:$0xff]  ;;  %v490_v2 = vld [vmem:[#allocation7 + $0x78] sm:$0xff]  ;;  %v2674_v9 = vrot.slane %v441_v6, %v536_v7 }
  0xeb   : > { %1690 = vmatpush1.bf16.msra.mxu0 %v1689_v63  ;;  %v1723_v63 = vpack.c.bf16 %v506_v62, %v505_v61 }
  0xec   : > { %1692 = vmatprep.subr.bf16.mxu0 %v1691_v3  ;;  %1714 = vmatpush3.bf16.msra.mxu1 %v1713_v21  ;;  %v1725_v3 = vpack.c.bf16 %v490_v2, %v489_v1 }
  0xed   : > { %1716 = vmatprep.subr.bf16.mxu1 %v1715_v22 }
  0xef   : > { %1694 = vmatpush1.bf16.msra.mxu0 %v1693_v10 }
  0xf0   : > { %1718 = vmatpush3.bf16.msra.mxu1 %v1717_v29 }
  0xf1   : > { %1720 = vmatprep.subr.bf16.mxu1 %v1719_v30 }
  0xf2   : > { %605 = vmatmul.mubr.f32.vlgmr.msra.gmra.mrb[0].mxu0 %v513_v19 }
  0xf3   : > { %610 = vmatprep.mubr.f32.mxu0 %v2224_v0 }
  0xf4   : > { %1722 = vmatpush3.bf16.msra.mxu1 %v1721_v60 }
  0xf5   : > { %1724 = vmatprep.subr.bf16.mxu1 %v1723_v63 }
  0xf6   : > { %611 = vmatmul.mubr.f32.gmra.mrb[2].mxu0 %v514_v27 }
  0xf7   : > { %616 = vmatprep.mubr.f32.mxu0 %v2224_v0 }
  0xf8   : > { %1726 = vmatpush3.bf16.msra.mxu1 %v1725_v3 }
  0xfa   : > { %617 = vmatmul.mubr.f32.gmra.mrb[4].mxu0 %v515_v31 }
  0xfb   : > { %622 = vmatprep.mubr.f32.mxu0 %v2224_v0 }
  0xfe   : > { %623 = vmatmul.mubr.f32.gmra.mrb[6].mxu0 %v516_v33 }
  0xff   : > { %628 = vmatprep.mubr.f32.mxu0 %v2224_v0 }
 0x102   : > { %629 = vmatmul.mubr.f32.gmra.mrb[8].mxu0 %v517_v35 }
 0x103   : > { %634 = vmatprep.mubr.f32.mxu0 %v2224_v0 }
 0x106   : > { %635 = vmatmul.mubr.f32.gmra.mrb[10].mxu0 %v518_v37 }
 0x107   : > { %640 = vmatprep.mubr.f32.mxu0 %v2224_v0 }
 0x10a   : > { %641 = vmatmul.mubr.f32.gmra.mrb[12].mxu0 %v519_v39 }
 0x10b   : > { %646 = vmatprep.mubr.f32.mxu0 %v2224_v0 }
 0x10e   : > { %647 = vmatmul.mubr.f32.gmra.mrb[14].mxu0 %v520_v41 }
 0x10f   : > { %652 = vmatprep.mubr.f32.mxu0 %v2224_v0 }
 0x112   : > { %653 = vmatmul.mubr.f32.gmra.mrb[16].mxu0 %v521_v43 }
 0x113   : > { %658 = vmatprep.mubr.f32.mxu0 %v2224_v0 }
 0x116   : > { %659 = vmatmul.mubr.f32.gmra.mrb[18].mxu0 %v522_v45 }
 0x117   : > { %664 = vmatprep.mubr.f32.mxu0 %v2224_v0 }
 0x11a   : > { %665 = vmatmul.mubr.f32.gmra.mrb[20].mxu0 %v523_v47 }
 0x11b   : > { %670 = vmatprep.mubr.f32.mxu0 %v2224_v0 }
 0x11e   : > { %671 = vmatmul.mubr.f32.gmra.mrb[22].mxu0 %v524_v49 }
 0x11f   : > { %676 = vmatprep.mubr.f32.mxu0 %v2224_v0 }
 0x122   : > { %677 = vmatmul.mubr.f32.gmra.mrb[24].mxu0 %v525_v51 }
 0x123   : > { %682 = vmatprep.mubr.f32.mxu0 %v2224_v0 }
 0x126   : > { %683 = vmatmul.mubr.f32.gmra.mrb[26].mxu0 %v526_v53 }
 0x127   : > { %688 = vmatprep.mubr.f32.mxu0 %v2224_v0 }
 0x12a   : > { %689 = vmatmul.mubr.f32.gmra.mrb[28].mxu0 %v527_v55 }
 0x12b   : > { %694 = vmatprep.mubr.f32.mxu0 %v2224_v0  ;;  %v532_v0 = vsub.s32 0, %v2668_v5 }
 0x12d   : > { %v2672_v8 = vrot.slane %v441_v6, %v532_v0 }
 0x12e   : > { %695 = vmatmul.mubr.f32.gmra.mrb[30].mxu0 %v528_v57 }
 0x1c5   : > { %v606_v10 = vpop.f32.mrb[0].mxu0 }
 0x1c6   : > { %v607_v13 = vadd.f32 %v606_v10, %v2672_v8  ;;  %v608_v14 = vpop.f32.mrb[1].mxu0 }
 0x1c7   : > { %v609_v15 = vadd.f32 %v608_v14, %v2674_v9 }
 0x1c8   : > { %v701_v16 = vmax.f32 %v607_v13, 0.0 }
 0x1c9   : > { %v702_v17 = vmax.f32 %v609_v15, 0.0  ;;  %v612_v18 = vpop.f32.mrb[2].mxu0 }
 0x1ca   : > { %878 = vst [vmem:[%s2679_s13] sm:$0xff] %v701_v16  ;;  %v613_v19 = vadd.f32 %v612_v18, %v2672_v8  ;;  %v614_v21 = vpop.f32.mrb[3].mxu0 }
 0x1cb   : > { %879 = vst [vmem:[%s2679_s13 + $0x8] sm:$0xff] %v702_v17  ;;  %v615_v22 = vadd.f32 %v614_v21, %v2674_v9  ;;  %797 = vmatprep.mubr.f32.mxu1 %v702_v17  ;;  %v942_v23 = vadd.f32 %v702_v17, %v701_v16 }
 0x1cc   : > { %v703_v24 = vmax.f32 %v613_v19, 0.0  ;;  %798 = vmatmul.mubr.f32.vlgmr.msra.gmra.mrb[0].mxu1 %v701_v16 }
 0x1cd   : > { %v704_v25 = vmax.f32 %v615_v22, 0.0  ;;  %v618_v26 = vpop.f32.mrb[4].mxu0  ;;  %943 = vadd.xlane.f32.xlu1 %v942_v23 }
 0x1ce   : > { %880 = vst [vmem:[%s2679_s13 + $0x10] sm:$0xff] %v703_v24  ;;  %v619_v27 = vadd.f32 %v618_v26, %v2672_v8  ;;  %v620_v29 = vpop.f32.mrb[5].mxu0 }
 0x1cf   : > { %881 = vst [vmem:[%s2679_s13 + $0x18] sm:$0xff] %v704_v25  ;;  %v621_v30 = vadd.f32 %v620_v29, %v2674_v9  ;;  %802 = vmatprep.mubr.f32.mxu1 %v704_v25  ;;  %v945_v31 = vadd.f32 %v704_v25, %v703_v24 }
 0x1d0   : > { %v705_v33 = vmax.f32 %v619_v27, 0.0  ;;  %803 = vmatmul.mubr.f32.gmra.mrb[2].mxu1 %v703_v24 }
 0x1d1   : > { %v706_v35 = vmax.f32 %v621_v30, 0.0  ;;  %v624_v37 = vpop.f32.mrb[6].mxu0  ;;  %946 = vadd.xlane.f32.xlu0 %v945_v31 }
 0x1d2   : > { %882 = vst [vmem:[%s2679_s13 + $0x20] sm:$0xff] %v705_v33  ;;  %v625_v39 = vadd.f32 %v624_v37, %v2672_v8  ;;  %v626_v41 = vpop.f32.mrb[7].mxu0 }
 0x1d3   : > { %883 = vst [vmem:[%s2679_s13 + $0x28] sm:$0xff] %v706_v35  ;;  %v627_v43 = vadd.f32 %v626_v41, %v2674_v9  ;;  %807 = vmatprep.mubr.f32.mxu1 %v706_v35  ;;  %v948_v45 = vadd.f32 %v706_v35, %v705_v33 }
 0x1d4   : > { %v707_v47 = vmax.f32 %v625_v39, 0.0  ;;  %808 = vmatmul.mubr.f32.gmra.mrb[4].mxu1 %v705_v33 }
 0x1d5   : > { %v708_v49 = vmax.f32 %v627_v43, 0.0  ;;  %v630_v51 = vpop.f32.mrb[8].mxu0  ;;  %949 = vadd.xlane.f32.xlu0 %v948_v45 }
 0x1d6   : > { %884 = vst [vmem:[%s2679_s13 + $0x30] sm:$0xff] %v707_v47  ;;  %v631_v53 = vadd.f32 %v630_v51, %v2672_v8  ;;  %v632_v55 = vpop.f32.mrb[9].mxu0 }
 0x1d7   : > { %885 = vst [vmem:[%s2679_s13 + $0x38] sm:$0xff] %v708_v49  ;;  %v633_v57 = vadd.f32 %v632_v55, %v2674_v9  ;;  %812 = vmatprep.mubr.f32.mxu1 %v708_v49  ;;  %v951_v58 = vadd.f32 %v708_v49, %v707_v47 }
 0x1d8   : > { %v709_v59 = vmax.f32 %v631_v53, 0.0  ;;  %813 = vmatmul.mubr.f32.gmra.mrb[6].mxu1 %v707_v47 }
 0x1d9   : > { %v710_v60 = vmax.f32 %v633_v57, 0.0  ;;  %v636_v61 = vpop.f32.mrb[10].mxu0  ;;  %952 = vadd.xlane.f32.xlu0 %v951_v58 }
 0x1da   : > { %886 = vst [vmem:[%s2679_s13 + $0x40] sm:$0xff] %v709_v59  ;;  %v637_v62 = vadd.f32 %v636_v61, %v2672_v8  ;;  %v638_v63 = vpop.f32.mrb[11].mxu0 }
 0x1db   : > { %887 = vst [vmem:[%s2679_s13 + $0x48] sm:$0xff] %v710_v60  ;;  %v639_v1 = vadd.f32 %v638_v63, %v2674_v9  ;;  %817 = vmatprep.mubr.f32.mxu1 %v710_v60  ;;  %v954_v2 = vadd.f32 %v710_v60, %v709_v59 }
 0x1dc   : > { %v711_v3 = vmax.f32 %v637_v62, 0.0  ;;  %818 = vmatmul.mubr.f32.gmra.mrb[8].mxu1 %v709_v59 }
 0x1dd   : > { %v712_v0 = vmax.f32 %v639_v1, 0.0  ;;  %v642_v6 = vpop.f32.mrb[12].mxu0  ;;  %955 = vadd.xlane.f32.xlu0 %v954_v2 }
 0x1de   : > { %888 = vst [vmem:[%s2679_s13 + $0x50] sm:$0xff] %v711_v3  ;;  %v643_v7 = vadd.f32 %v642_v6, %v2672_v8  ;;  %v644_v10 = vpop.f32.mrb[13].mxu0 }
 0x1df   : > { %889 = vst [vmem:[%s2679_s13 + $0x58] sm:$0xff] %v712_v0  ;;  %v645_v13 = vadd.f32 %v644_v10, %v2674_v9  ;;  %822 = vmatprep.mubr.f32.mxu1 %v712_v0  ;;  %v957_v14 = vadd.f32 %v712_v0, %v711_v3 }
 0x1e0   : > { %v713_v15 = vmax.f32 %v643_v7, 0.0  ;;  %823 = vmatmul.mubr.f32.gmra.mrb[10].mxu1 %v711_v3 }
 0x1e1   : > { %v714_v16 = vmax.f32 %v645_v13, 0.0  ;;  %v648_v17 = vpop.f32.mrb[14].mxu0  ;;  %958 = vadd.xlane.f32.xlu0 %v957_v14 }
 0x1e2   : > { %890 = vst [vmem:[%s2679_s13 + $0x60] sm:$0xff] %v713_v15  ;;  %v649_v18 = vadd.f32 %v648_v17, %v2672_v8  ;;  %v650_v19 = vpop.f32.mrb[15].mxu0 }
 0x1e3   : > { %891 = vst [vmem:[%s2679_s13 + $0x68] sm:$0xff] %v714_v16  ;;  %v651_v21 = vadd.f32 %v650_v19, %v2674_v9  ;;  %827 = vmatprep.mubr.f32.mxu1 %v714_v16  ;;  %v960_v22 = vadd.f32 %v714_v16, %v713_v15 }
 0x1e4   : > { %v715_v23 = vmax.f32 %v649_v18, 0.0  ;;  %828 = vmatmul.mubr.f32.gmra.mrb[12].mxu1 %v713_v15 }
 0x1e5   : > { %v716_v24 = vmax.f32 %v651_v21, 0.0  ;;  %v654_v25 = vpop.f32.mrb[16].mxu0  ;;  %961 = vadd.xlane.f32.xlu0 %v960_v22 }
 0x1e6   : > { %892 = vst [vmem:[%s2679_s13 + $0x70] sm:$0xff] %v715_v23  ;;  %v655_v26 = vadd.f32 %v654_v25, %v2672_v8  ;;  %v656_v27 = vpop.f32.mrb[17].mxu0 }
 0x1e7   : > { %893 = vst [vmem:[%s2679_s13 + $0x78] sm:$0xff] %v716_v24  ;;  %v657_v29 = vadd.f32 %v656_v27, %v2674_v9  ;;  %832 = vmatprep.mubr.f32.mxu1 %v716_v24  ;;  %v963_v30 = vadd.f32 %v716_v24, %v715_v23 }
 0x1e8   : > { %v717_v31 = vmax.f32 %v655_v26, 0.0  ;;  %833 = vmatmul.mubr.f32.gmra.mrb[14].mxu1 %v715_v23 }
 0x1e9   : > { %v718_v33 = vmax.f32 %v657_v29, 0.0  ;;  %v660_v35 = vpop.f32.mrb[18].mxu0  ;;  %964 = vadd.xlane.f32.xlu0 %v963_v30 }
 0x1ea   : > { %894 = vst [vmem:[%s2679_s13 + $0x80] sm:$0xff] %v717_v31  ;;  %v661_v37 = vadd.f32 %v660_v35, %v2672_v8  ;;  %v662_v39 = vpop.f32.mrb[19].mxu0 }
 0x1eb   : > { %895 = vst [vmem:[%s2679_s13 + $0x88] sm:$0xff] %v718_v33  ;;  %v663_v41 = vadd.f32 %v662_v39, %v2674_v9  ;;  %837 = vmatprep.mubr.f32.mxu1 %v718_v33  ;;  %v966_v43 = vadd.f32 %v718_v33, %v717_v31 }
 0x1ec   : > { %v719_v45 = vmax.f32 %v661_v37, 0.0  ;;  %838 = vmatmul.mubr.f32.gmra.mrb[16].mxu1 %v717_v31 }
 0x1ed   : > { %v720_v47 = vmax.f32 %v663_v41, 0.0  ;;  %v666_v49 = vpop.f32.mrb[20].mxu0  ;;  %967 = vadd.xlane.f32.xlu0 %v966_v43 }
 0x1ee   : > { %896 = vst [vmem:[%s2679_s13 + $0x90] sm:$0xff] %v719_v45  ;;  %v667_v51 = vadd.f32 %v666_v49, %v2672_v8  ;;  %v668_v53 = vpop.f32.mrb[21].mxu0 }
 0x1ef   : > { %897 = vst [vmem:[%s2679_s13 + $0x98] sm:$0xff] %v720_v47  ;;  %v669_v55 = vadd.f32 %v668_v53, %v2674_v9  ;;  %842 = vmatprep.mubr.f32.mxu1 %v720_v47  ;;  %v969_v57 = vadd.f32 %v720_v47, %v719_v45 }
 0x1f0   : > { %v721_v58 = vmax.f32 %v667_v51, 0.0  ;;  %843 = vmatmul.mubr.f32.gmra.mrb[18].mxu1 %v719_v45 }
 0x1f1   : > { %v722_v59 = vmax.f32 %v669_v55, 0.0  ;;  %v672_v60 = vpop.f32.mrb[22].mxu0  ;;  %970 = vadd.xlane.f32.xlu0 %v969_v57 }
 0x1f2   : > { %898 = vst [vmem:[%s2679_s13 + $0xa0] sm:$0xff] %v721_v58  ;;  %v673_v61 = vadd.f32 %v672_v60, %v2672_v8  ;;  %v674_v62 = vpop.f32.mrb[23].mxu0 }
 0x1f3   : > { %899 = vst [vmem:[%s2679_s13 + $0xa8] sm:$0xff] %v722_v59  ;;  %v675_v63 = vadd.f32 %v674_v62, %v2674_v9  ;;  %847 = vmatprep.mubr.f32.mxu1 %v722_v59  ;;  %v972_v1 = vadd.f32 %v722_v59, %v721_v58 }
 0x1f4   : > { %v723_v2 = vmax.f32 %v673_v61, 0.0  ;;  %848 = vmatmul.mubr.f32.gmra.mrb[20].mxu1 %v721_v58 }
 0x1f5   : > { %v724_v3 = vmax.f32 %v675_v63, 0.0  ;;  %v678_v0 = vpop.f32.mrb[24].mxu0  ;;  %973 = vadd.xlane.f32.xlu0 %v972_v1 }
 0x1f6   : > { %900 = vst [vmem:[%s2679_s13 + $0xb0] sm:$0xff] %v723_v2  ;;  %v679_v6 = vadd.f32 %v678_v0, %v2672_v8  ;;  %v680_v7 = vpop.f32.mrb[25].mxu0 }
 0x1f7   : > { %901 = vst [vmem:[%s2679_s13 + $0xb8] sm:$0xff] %v724_v3  ;;  %v681_v10 = vadd.f32 %v680_v7, %v2674_v9  ;;  %852 = vmatprep.mubr.f32.mxu1 %v724_v3  ;;  %v2729_v13 = vadd.f32 %v724_v3, %v723_v2 }
 0x1f8   : > { %v725_v14 = vmax.f32 %v679_v6, 0.0  ;;  %853 = vmatmul.mubr.f32.gmra.mrb[22].mxu1 %v723_v2 }
 0x1f9   : > { %v726_v15 = vmax.f32 %v681_v10, 0.0  ;;  %v684_v16 = vpop.f32.mrb[26].mxu0 }
 0x1fa   : > { %902 = vst [vmem:[%s2679_s13 + $0xc0] sm:$0xff] %v725_v14  ;;  %v685_v17 = vadd.f32 %v684_v16, %v2672_v8  ;;  %v686_v18 = vpop.f32.mrb[27].mxu0 }
 0x1fb   : > { %903 = vst [vmem:[%s2679_s13 + $0xc8] sm:$0xff] %v726_v15  ;;  %v687_v19 = vadd.f32 %v686_v18, %v2674_v9  ;;  %857 = vmatprep.mubr.f32.mxu1 %v726_v15  ;;  %v2735_v21 = vadd.f32 %v726_v15, %v725_v14 }
 0x1fc   : > { %v727_v22 = vmax.f32 %v685_v17, 0.0  ;;  %858 = vmatmul.mubr.f32.gmra.mrb[24].mxu1 %v725_v14 }
 0x1fd   : > { %v728_v23 = vmax.f32 %v687_v19, 0.0  ;;  %v690_v24 = vpop.f32.mrb[28].mxu0 }
 0x1fe   : > { %904 = vst [vmem:[%s2679_s13 + $0xd0] sm:$0xff] %v727_v22  ;;  %v691_v25 = vadd.f32 %v690_v24, %v2672_v8  ;;  %v692_v26 = vpop.f32.mrb[29].mxu0 }
 0x1ff   : > { %905 = vst [vmem:[%s2679_s13 + $0xd8] sm:$0xff] %v728_v23  ;;  %v693_v27 = vadd.f32 %v692_v26, %v2674_v9  ;;  %862 = vmatprep.mubr.f32.mxu1 %v728_v23  ;;  %v2741_v29 = vadd.f32 %v728_v23, %v727_v22 }
 0x200   : > { %v729_v30 = vmax.f32 %v691_v25, 0.0  ;;  %863 = vmatmul.mubr.f32.gmra.mrb[26].mxu1 %v727_v22 }
 0x201   : > { %v730_v31 = vmax.f32 %v693_v27, 0.0  ;;  %v696_v33 = vpop.f32.mrb[30].mxu0 }
 0x202   : > { %906 = vst [vmem:[%s2679_s13 + $0xe0] sm:$0xff] %v729_v30  ;;  %v697_v35 = vadd.f32 %v696_v33, %v2672_v8  ;;  %v698_v37 = vpop.f32.mrb[31].mxu0 }
 0x203   : > { %907 = vst [vmem:[%s2679_s13 + $0xe8] sm:$0xff] %v730_v31  ;;  %v699_v39 = vadd.f32 %v698_v37, %v2674_v9  ;;  %867 = vmatprep.mubr.f32.mxu1 %v730_v31  ;;  %v2747_v41 = vadd.f32 %v730_v31, %v729_v30 }
 0x204   : > { %v731_v43 = vmax.f32 %v697_v35, 0.0  ;;  %868 = vmatmul.mubr.f32.gmra.mrb[28].mxu1 %v729_v30 }
 0x205   : > { %v732_v45 = vmax.f32 %v699_v39, 0.0 }
 0x206   : > { %908 = vst [vmem:[%s2679_s13 + $0xf0] sm:$0xff] %v731_v43 }
 0x207   : > { %909 = vst [vmem:[%s2679_s13 + $0xf8] sm:$0xff] %v732_v45  ;;  %872 = vmatprep.mubr.f32.mxu1 %v732_v45  ;;  %v2751_v47 = vadd.f32 %v732_v45, %v731_v43 }
 0x208   : > { %873 = vmatmul.mubr.f32.gmra.mrb[30].mxu1 %v731_v43 }
 0x29f   : > { %v1615_v49 = vpop.f32.mrb[0].mxu1 }
 0x2a0   : > { %v1616_v51 = vpop.f32.mrb[1].mxu1 }
 0x2a1   : > { %v1617_v8 = vadd.f32 %v1616_v51, %v1615_v49 }
 0x2a3   : > { %v800_v53 = vadd.f32 %v1617_v8, %v2573_v12  ;;  %v1618_v55 = vpop.f32.mrb[2].mxu1 }
 0x2a4   : > { %v1619_v9 = vpop.f32.mrb[3].mxu1 }
 0x2a5   : > { %910 = vst [vmem:[%s2756_s7] sm:$0xff] %v800_v53  ;;  %v1620_v57 = vadd.f32 %v1619_v9, %v1618_v55  ;;  %v926_v58 = vsub.f32 %v800_v53, %v2571_v11 }
 0x2a7   : > { %v805_v59 = vadd.f32 %v1620_v57, %v2573_v12  ;;  %v1621_v60 = vpop.f32.mrb[4].mxu1  ;;  %v990_v61 = vmul.f32 %v926_v58, %v926_v58 }
 0x2a8   : > { %v1622_v62 = vpop.f32.mrb[5].mxu1 }
 0x2a9   : > { %911 = vst [vmem:[%s2756_s7 + $0x8] sm:$0xff] %v805_v59  ;;  %v1623_v63 = vadd.f32 %v1622_v62, %v1621_v60  ;;  %1006 = vadd.xlane.f32.xlu0 %v990_v61  ;;  %v927_v1 = vsub.f32 %v805_v59, %v2578_v20 }
 0x2ab   : > { %v810_v2 = vadd.f32 %v1623_v63, %v2573_v12  ;;  %v1624_v3 = vpop.f32.mrb[6].mxu1  ;;  %v991_v0 = vmul.f32 %v927_v1, %v927_v1 }
 0x2ac   : > { %v1625_v6 = vpop.f32.mrb[7].mxu1 }
 0x2ad   : > { %912 = vst [vmem:[%s2756_s7 + $0x10] sm:$0xff] %v810_v2  ;;  %v1626_v7 = vadd.f32 %v1625_v6, %v1624_v3  ;;  %1008 = vadd.xlane.f32.xlu0 %v991_v0  ;;  %v928_v11 = vsub.f32 %v810_v2, %v2584_v28 }
 0x2af   : > { %v815_v10 = vadd.f32 %v1626_v7, %v2573_v12  ;;  %v1627_v14 = vpop.f32.mrb[8].mxu1  ;;  %v992_v15 = vmul.f32 %v928_v11, %v928_v11 }
 0x2b0   : > { %v1628_v16 = vpop.f32.mrb[9].mxu1 }
 0x2b1   : > { %913 = vst [vmem:[%s2756_s7 + $0x18] sm:$0xff] %v815_v10  ;;  %v1629_v17 = vadd.f32 %v1628_v16, %v1627_v14  ;;  %1010 = vadd.xlane.f32.xlu1 %v992_v15  ;;  %976 = vadd.xlane.f32.xlu0 %v2729_v13  ;;  %v929_v20 = vsub.f32 %v815_v10, %v2590_v32 }
 0x2b3   : > { %v820_v18 = vadd.f32 %v1629_v17, %v2573_v12  ;;  %v1630_v19 = vpop.f32.mrb[10].mxu1  ;;  %v993_v22 = vmul.f32 %v929_v20, %v929_v20 }
 0x2b4   : > { %v1631_v23 = vpop.f32.mrb[11].mxu1 }
 0x2b5   : > { %914 = vst [vmem:[%s2756_s7 + $0x20] sm:$0xff] %v820_v18  ;;  %v1632_v28 = vadd.f32 %v1631_v23, %v1630_v19  ;;  %1012 = vadd.xlane.f32.xlu1 %v993_v22  ;;  %979 = vadd.xlane.f32.xlu0 %v2735_v21  ;;  %v930_v24 = vsub.f32 %v820_v18, %v2596_v34 }
 0x2b7   : > { %v825_v25 = vadd.f32 %v1632_v28, %v2573_v12  ;;  %v1633_v26 = vpop.f32.mrb[12].mxu1  ;;  %v994_v27 = vmul.f32 %v930_v24, %v930_v24 }
 0x2b8   : > { %v1634_v13 = vpop.f32.mrb[13].mxu1 }
 0x2b9   : > { %915 = vst [vmem:[%s2756_s7 + $0x28] sm:$0xff] %v825_v25  ;;  %v1635_v32 = vadd.f32 %v1634_v13, %v1633_v26  ;;  %1014 = vadd.xlane.f32.xlu1 %v994_v27  ;;  %982 = vadd.xlane.f32.xlu0 %v2741_v29  ;;  %v931_v30 = vsub.f32 %v825_v25, %v2602_v36 }
 0x2bb   : > { %v830_v31 = vadd.f32 %v1635_v32, %v2573_v12  ;;  %v1636_v33 = vpop.f32.mrb[14].mxu1  ;;  %v995_v35 = vmul.f32 %v931_v30, %v931_v30 }
 0x2bc   : > { %v1637_v21 = vpop.f32.mrb[15].mxu1 }
 0x2bd   : > { %916 = vst [vmem:[%s2756_s7 + $0x30] sm:$0xff] %v830_v31  ;;  %v1638_v34 = vadd.f32 %v1637_v21, %v1636_v33  ;;  %1016 = vadd.xlane.f32.xlu1 %v995_v35  ;;  %985 = vadd.xlane.f32.xlu0 %v2747_v41  ;;  %v932_v37 = vsub.f32 %v830_v31, %v2608_v38 }
 0x2bf   : > { %v835_v39 = vadd.f32 %v1638_v34, %v2573_v12  ;;  %v1639_v43 = vpop.f32.mrb[16].mxu1  ;;  %v996_v45 = vmul.f32 %v932_v37, %v932_v37 }
 0x2c0   : > { %v1640_v29 = vpop.f32.mrb[17].mxu1 }
 0x2c1   : > { %917 = vst [vmem:[%s2756_s7 + $0x38] sm:$0xff] %v835_v39  ;;  %v1641_v36 = vadd.f32 %v1640_v29, %v1639_v43  ;;  %1018 = vadd.xlane.f32.xlu1 %v996_v45  ;;  %v933_v49 = vsub.f32 %v835_v39, %v2614_v40 }
 0x2c3   : > { %v840_v51 = vadd.f32 %v1641_v36, %v2573_v12  ;;  %v1642_v8 = vpop.f32.mrb[18].mxu1  ;;  %v997_v53 = vmul.f32 %v933_v49, %v933_v49 }
 0x2c4   : > { %v1643_v55 = vpop.f32.mrb[19].mxu1 }
 0x2c5   : > { %918 = vst [vmem:[%s2756_s7 + $0x40] sm:$0xff] %v840_v51  ;;  %v1644_v41 = vadd.f32 %v1643_v55, %v1642_v8  ;;  %1020 = vadd.xlane.f32.xlu1 %v997_v53  ;;  %v934_v38 = vsub.f32 %v840_v51, %v2620_v42 }
 0x2c7   : > { %v845_v9 = vadd.f32 %v1644_v41, %v2573_v12  ;;  %v1645_v57 = vpop.f32.mrb[20].mxu1  ;;  %v998_v58 = vmul.f32 %v934_v38, %v934_v38 }
 0x2c8   : > { %v1646_v59 = vpop.f32.mrb[21].mxu1 }
 0x2c9   : > { %919 = vst [vmem:[%s2756_s7 + $0x48] sm:$0xff] %v845_v9  ;;  %v1647_v60 = vadd.f32 %v1646_v59, %v1645_v57  ;;  %1022 = vadd.xlane.f32.xlu1 %v998_v58  ;;  %v935_v40 = vsub.f32 %v845_v9, %v2626_v44 }
 0x2cb   : > { %v850_v61 = vadd.f32 %v1647_v60, %v2573_v12  ;;  %v1648_v62 = vpop.f32.mrb[22].mxu1  ;;  %v999_v63 = vmul.f32 %v935_v40, %v935_v40 }
 0x2cc   : > { %v1649_v1 = vpop.f32.mrb[23].mxu1 }
 0x2cd   : > { %920 = vst [vmem:[%s2756_s7 + $0x50] sm:$0xff] %v850_v61  ;;  %v1650_v2 = vadd.f32 %v1649_v1, %v1648_v62  ;;  %1024 = vadd.xlane.f32.xlu1 %v999_v63  ;;  %v936_v42 = vsub.f32 %v850_v61, %v2632_v46 }
 0x2cf   : > { %v855_v3 = vadd.f32 %v1650_v2, %v2573_v12  ;;  %v1651_v0 = vpop.f32.mrb[24].mxu1  ;;  %v1000_v6 = vmul.f32 %v936_v42, %v936_v42 }
 0x2d0   : > { %v1652_v7 = vpop.f32.mrb[25].mxu1 }
 0x2d1   : > { %921 = vst [vmem:[%s2756_s7 + $0x58] sm:$0xff] %v855_v3  ;;  %v1653_v11 = vadd.f32 %v1652_v7, %v1651_v0  ;;  %1026 = vadd.xlane.f32.xlu1 %v1000_v6  ;;  %v937_v44 = vsub.f32 %v855_v3, %v2638_v48 }
 0x2d3   : > { %v860_v10 = vadd.f32 %v1653_v11, %v2573_v12  ;;  %v1654_v14 = vpop.f32.mrb[26].mxu1  ;;  %v1001_v15 = vmul.f32 %v937_v44, %v937_v44 }
 0x2d4   : > { %v1655_v16 = vpop.f32.mrb[27].mxu1 }
 0x2d5   : > { %922 = vst [vmem:[%s2756_s7 + $0x60] sm:$0xff] %v860_v10  ;;  %v1656_v17 = vadd.f32 %v1655_v16, %v1654_v14  ;;  %1028 = vadd.xlane.f32.xlu1 %v1001_v15  ;;  %v938_v46 = vsub.f32 %v860_v10, %v2644_v50 }
 0x2d7   : > { %v865_v20 = vadd.f32 %v1656_v17, %v2573_v12  ;;  %v1657_v18 = vpop.f32.mrb[28].mxu1  ;;  %v1002_v19 = vmul.f32 %v938_v46, %v938_v46 }
 0x2d8   : > { %v1658_v22 = vpop.f32.mrb[29].mxu1 }
 0x2d9   : > { %923 = vst [vmem:[%s2756_s7 + $0x68] sm:$0xff] %v865_v20  ;;  %v1659_v23 = vadd.f32 %v1658_v22, %v1657_v18  ;;  %1030 = vadd.xlane.f32.xlu1 %v1002_v19  ;;  %v939_v48 = vsub.f32 %v865_v20, %v2650_v52 }
 0x2db   : > { %v870_v28 = vadd.f32 %v1659_v23, %v2573_v12  ;;  %v1660_v24 = vpop.f32.mrb[30].mxu1  ;;  %v1003_v25 = vmul.f32 %v939_v48, %v939_v48 }
 0x2dc   : > { %v1661_v26 = vpop.f32.mrb[31].mxu1 }
 0x2dd   : > { %924 = vst [vmem:[%s2756_s7 + $0x70] sm:$0xff] %v870_v28  ;;  %v1662_v50 = vadd.f32 %v1661_v26, %v1660_v24  ;;  %1032 = vadd.xlane.f32.xlu1 %v1003_v25  ;;  %v940_v27 = vsub.f32 %v870_v28, %v2656_v54 }
 0x2df   : > { %v875_v13 = vadd.f32 %v1662_v50, %v2573_v12  ;;  %v1004_v32 = vmul.f32 %v940_v27, %v940_v27 }
 0x2e1   : > { %925 = vst [vmem:[%s2756_s7 + $0x78] sm:$0xff] %v875_v13  ;;  %1034 = vadd.xlane.f32.xlu1 %v1004_v32  ;;  %v941_v52 = vsub.f32 %v875_v13, %v2662_v56 }
 0x2e3   : > { %v1005_v30 = vmul.f32 %v941_v52, %v941_v52 }
 0x2e5   : > { %1036 = vadd.xlane.f32.xlu1 %v1005_v30 }
 0x2e9   : > { %988 = vadd.xlane.f32.xlu1 %v2751_v47 }
 0x2ea   : > { %2036 = shalt.err (!%p2033_p13)
}
 0x2eb   : > { %s2037_s7 = scalar_lea.hbm %s2818_s2, 2048  ;;  %s2041_s23 = scalar_lea.hbm %s3181_s17, 8192 }
 0x2ec   : > { %p2038_p9 = scmp.ne.s32.totalorder %s2818_s2, %s2037_s7  ;;  %p2042_p1 = scmp.lt.u32.totalorder %s2818_s2, %s3181_s17 }
 0x2ed   : > { %p2043_p0 = scmp.lt.u32.totalorder %s2041_s23, %s2037_s7  ;;  %p2045_p4 = scmp.lt.u32.totalorder %s2037_s7, %s2818_s2 }
 0x2ee   : > { %p2039_p11 = pnand %p2038_p9, %p2482_p10 }
 0x2ef   : > { %p2044_p12 = por %p2043_p0, %p2042_p1 }
 0x2f0   : > { %p2040_p5 = pneg %p2039_p11 }
 0x2f1   : > { %p2046_p6 = por %p2045_p4, %p2044_p12 }
 0x2f3   : > { %p2047_p8 = pnand %p2046_p6, %p2040_p5 }
 0x2f5   : > { %2050 = shalt.err (!%p2047_p8)
}
 0x2f6   : > { %s2226_s25 = smov 128   ;;  %s2227_s30 = smov 8  }
 0x2f7   : > { %1738 = dma.vmem_to_hbm [thread:$0]  (%p2482_p10), %s2821_s3, 2048, %s2818_s2, %s2823_s22, %s2226_s25, %s2226_s25, %s2227_s30  }
 0x2f8   : > { %s1570_s12 = sshll.u32 %s2201_s8, 6  ;;  %s1309_s24 = sshll.u32 %s2679_s13, 4  ;;  %s2851_s24 = int_to_ptr.vmem [resolvable:$true] %s1309_s24 }
 0x2f9   : > { %s1306_s18 = sadd.s32 %s1582_s15, %s1570_s12  ;;  %s3182_s23 = sld [smem:[#allocation32_spill]] }
 0x2fa   : > { %s1571_s7 = sshll.u32 %s1306_s18, 7  ;;  %s1283_s5 = scalar_lea.sflag [#allocation4], %s2549_s19 }
 0x2fb   : > { %s2051_s0 = scalar_lea.vmem %s2851_s24, 4096  ;;  %s2228_s2 = smov [#allocation11]  }
 0x2fc   : > { %p2052_p2 = scmp.ne.s32.totalorder %s2851_s24, %s2051_s0  ;;  %s2055_s15 = sshll.u32 %s2228_s2, 4  ;;  %s2056_s15 = int_to_ptr.vmem [resolvable:$false] %s2055_s15 }
 0x2fd   : > { %s2057_s13 = scalar_lea.vmem %s2056_s15, 8192  ;;  %p2058_p13 = scmp.lt.s32.totalorder %s2851_s24, %s2056_s15 }
 0x2fe   : > { %p2053_p3 = pnand %p2052_p2, %p2482_p10  ;;  %p2059_p9 = scmp.lt.s32.totalorder %s2057_s13, %s2051_s0 }
 0x2ff   : > { %s2856_s20 = scalar_lea.hbm %s3182_s23, %s1571_s7 }
 0x300   : > { %p2054_p7 = pneg %p2053_p3  ;;  %p2060_p11 = por %p2059_p9, %p2058_p13 }
 0x302   : > { %p2061_p5 = pnand %p2060_p11, %p2054_p7 }
 0x304   : > { %2064 = shalt.err (!%p2061_p5)
}
 0x305   : > { %s2065_s3 = scalar_lea.hbm %s2856_s20, 4096  ;;  %s2069_s12 = scalar_lea.hbm %s3182_s23, 16384 }
 0x306   : > { %p2066_p1 = scmp.ne.s32.totalorder %s2856_s20, %s2065_s3  ;;  %p2070_p4 = scmp.lt.u32.totalorder %s2856_s20, %s3182_s23 }
 0x307   : > { %p2071_p6 = scmp.lt.u32.totalorder %s2069_s12, %s2065_s3  ;;  %p2073_p2 = scmp.lt.u32.totalorder %s2065_s3, %s2856_s20 }
 0x308   : > { %p2067_p0 = pnand %p2066_p1, %p2482_p10 }
 0x309   : > { %p2072_p8 = por %p2071_p6, %p2070_p4 }
 0x30a   : > { %p2068_p12 = pneg %p2067_p0 }
 0x30b   : > { %p2074_p3 = por %p2073_p2, %p2072_p8 }
 0x30d   : > { %p2075_p7 = pnand %p2074_p3, %p2068_p12 }
 0x30f   : > { %2078 = shalt.err (!%p2075_p7)
}
 0x310   : > { %s2229_s0 = smov 256   ;;  %s2230_s16 = smov 16   ;;  %v947_v12 = vpop.xlane.xlu0 %946  ;;  %v944_v35 = vpop.xlane.xlu1 %943  ;;  %v2905_v51 = vand.u32 127, %v530_v4  ;;  %vm1082_vm0 = vcmask 130112   ;;  %vm1089_vm1 = vcmask 195712   ;;  %vm1096_vm2 = vcmask 261312  }
 0x311   : > { %1737 = dma.vmem_to_hbm [thread:$0]  (%p2482_p10), %s2851_s24, 4096, %s2856_s20, %s1283_s5, %s2229_s0, %s2229_s0, %s2230_s16   ;;  %vm1103_vm3 = vcmask 326912   ;;  %vm1110_vm4 = vcmask 392512   ;;  %vm1117_vm5 = vcmask 458112   ;;  %vm1124_vm6 = vcmask 523712  }
 0x312   : > { %v1077_v53 = vadd.s32 4294967288, %v2905_v51  ;;  %v1084_v41 = vadd.s32 4294967280, %v2905_v51  ;;  %v1091_v38 = vadd.s32 4294967272, %v2905_v51  ;;  %v1098_v9 = vadd.s32 4294967264, %v2905_v51  ;;  %s1563_s24 = sshll.u32 %s2549_s19, 1  ;;  %s1575_s14 = sshll.u32 %s2201_s8, 1 }
 0x313   : > { %v1105_v59 = vadd.s32 4294967256, %v2905_v51  ;;  %v1112_v60 = vadd.s32 4294967248, %v2905_v51  ;;  %v2925_v40 = vsub.s32 %v2905_v51, %v2668_v5  ;;  %v1119_v62 = vadd.s32 4294967240, %v2905_v51  ;;  %s1341_s8 = sadd.s32 %s3179_s4, %s1575_s14  ;;  %s421_s4 = scalar_lea.vmem [#allocation14], %s1563_s24 }
 0x314   : > { %v950_v54 = vpop.xlane.xlu0 %949  ;;  %v2916_v58 = vsub.s32 %v1077_v53, %v2668_v5  ;;  %v2920_v4 = vsub.s32 %v1084_v41, %v2668_v5  ;;  %v2928_v61 = vsub.s32 %v1091_v38, %v2668_v5  ;;  %v2932_v1 = vsub.s32 %v1098_v9, %v2668_v5  ;;  %s1576_s20 = sshll.u32 %s1341_s8, 5  ;;  %s1345_s5 = sshll.u32 %s421_s4, 4  ;;  %s3045_s5 = int_to_ptr.vmem [resolvable:$true] %s1345_s5 }
 0x315   : > { %v1126_v2 = vadd.s32 4294967232, %v2905_v51  ;;  %v2939_v0 = vsub.s32 %v1105_v59, %v2668_v5  ;;  %v1133_v6 = vadd.s32 4294967224, %v2905_v51  ;;  %v2944_v11 = vsub.s32 %v1112_v60, %v2668_v5  ;;  %s3183_s13 = sld [smem:[#allocation34_spill]]  ;;  %s2079_s19 = scalar_lea.vmem %s3045_s5, 32 }
 0x316   : > { %v1081_v3 = vrot.slane %v947_v12, %v2916_v58  ;;  %v1088_v7 = vrot.slane %v950_v54, %v2920_v4  ;;  %v1140_v44 = vadd.s32 4294967216, %v2905_v51  ;;  %v1076_v10 = vrot.slane %v944_v35, %v2925_v40  ;;  %p2080_p13 = scmp.ne.s32.totalorder %s3045_s5, %s2079_s19  ;;  %s2231_s25 = smov [#allocation14]  }
 0x317   : > { %v2950_v15 = vsub.s32 %v1119_v62, %v2668_v5  ;;  %v2954_v17 = vsub.s32 %v1126_v2, %v2668_v5  ;;  %v2960_v19 = vsub.s32 %v1133_v6, %v2668_v5  ;;  %vm1131_vm7 = vcmask 589312   ;;  %s2083_s30 = sshll.u32 %s2231_s25, 4  ;;  %s2084_s30 = int_to_ptr.vmem [resolvable:$false] %s2083_s30 }
 0x318   : > { %v953_v56 = vpop.xlane.xlu0 %952  ;;  %v1083_v20 = vsel %vm1082_vm0, %v1081_v3, %v1076_v10  ;;  %v2968_v28 = vsub.s32 %v1140_v44, %v2668_v5  ;;  %vm1138_vm8 = vcmask 654912   ;;  %vm1145_vm9 = vcmask 720512   ;;  %p2081_p9 = pnand %p2080_p13, %p2482_p10  ;;  %s2085_s12 = scalar_lea.vmem %s2084_s30, 64 }
 0x319   : > { %v1095_v14 = vrot.slane %v953_v56, %v2928_v61  ;;  %v1090_v23 = vsel %vm1089_vm1, %v1088_v7, %v1083_v20  ;;  %vm1152_vm10 = vcmask 786112   ;;  %v1154_v60 = vadd.s32 4294967200, %v2905_v51  ;;  %p2086_p5 = scmp.lt.s32.totalorder %s3045_s5, %s2084_s30  ;;  %p2087_p1 = scmp.lt.s32.totalorder %s2085_s12, %s2079_s19 }
 0x31a   : > { %v1175_v44 = vadd.s32 4294967176, %v2905_v51  ;;  %vm1159_vm11 = vcmask 851712   ;;  %vm1166_vm12 = vcmask 917312   ;;  %vm1173_vm13 = vcmask 982912   ;;  %p2082_p11 = pneg %p2081_p9 }
 0x31b   : > { %v1097_v24 = vsel %vm1096_vm2, %v1095_v14, %v1090_v23  ;;  %vm1180_vm14 = vcmask 1048512   ;;  %vm1279_vm15 = vcmask 1040384   ;;  %s3043_s3 = scalar_lea.hbm %s3183_s13, %s1576_s20  ;;  %p2088_p0 = por %p2087_p1, %p2086_p5 }
 0x31c   : > { %v956_v47 = vpop.xlane.xlu0 %955 }
 0x31d   : > { %v1102_v16 = vrot.slane %v956_v47, %v2932_v1  ;;  %p2089_p12 = pnand %p2088_p0, %p2082_p11 }
 0x31f   : > { %v1104_v26 = vsel %vm1103_vm3, %v1102_v16, %v1097_v24 }
 0x320   : > { %v2882_v31 = vpop.xlane.xlu0 %958 }
 0x321   : > { %v1109_v18 = vrot.slane %v2882_v31, %v2939_v0  ;;  %v1147_v31 = vadd.s32 4294967208, %v2905_v51 }
 0x323   : > { %v1111_v13 = vsel %vm1110_vm4, %v1109_v18, %v1104_v26  ;;  %v1150_v9 = vsub.s32 %v1147_v31, %v2668_v5 }
 0x324   : > { %v2884_v33 = vpop.xlane.xlu0 %961 }
 0x325   : > { %v1116_v48 = vrot.slane %v2884_v33, %v2944_v11 }
 0x327   : > { %v1118_v30 = vsel %vm1117_vm5, %v1116_v48, %v1111_v13 }
 0x328   : > { %v2886_v21 = vpop.xlane.xlu0 %964 }
 0x329   : > { %v1123_v25 = vrot.slane %v2886_v21, %v2950_v15 }
 0x32b   : > { %v1125_v56 = vsel %vm1124_vm6, %v1123_v25, %v1118_v30 }
 0x32c   : > { %v2892_v39 = vpop.xlane.xlu0 %967 }
 0x32d   : > { %v1130_v50 = vrot.slane %v2892_v39, %v2954_v17 }
 0x32f   : > { %v1132_v21 = vsel %vm1131_vm7, %v1130_v50, %v1125_v56  ;;  %v1178_v50 = vsub.s32 %v1175_v44, %v2668_v5 }
 0x330   : > { %v2896_v45 = vpop.xlane.xlu0 %970 }
 0x331   : > { %v1137_v32 = vrot.slane %v2896_v45, %v2960_v19 }
 0x333   : > { %v1139_v53 = vsel %vm1138_vm8, %v1137_v32, %v1132_v21 }
 0x334   : > { %v2902_v49 = vpop.xlane.xlu0 %973 }
 0x335   : > { %v1144_v12 = vrot.slane %v2902_v49, %v2968_v28 }
 0x337   : > { %v1146_v41 = vsel %vm1145_vm9, %v1144_v12, %v1139_v53 }
 0x338   : > { %v1007_v55 = vpop.xlane.xlu0 %1006 }
 0x339   : > { %v1039_v47 = vmul.f32 0.0078125, %v1007_v55 }
 0x33c   : > { %v1009_v63 = vpop.xlane.xlu0 %1008 }
 0x33d   : > { %v1040_v52 = vmul.f32 0.0078125, %v1009_v63 }
 0x33e   : > { %v2888_v34 = vpop.xlane.xlu1 %1010 }
 0x33f   : > { %v1041_v54 = vmul.f32 0.0078125, %v2888_v34  ;;  %v1206_v49 = vrot.slane %v1040_v52, %v2916_v58 }
 0x340   : > { %v2962_v22 = vpop.xlane.xlu0 %976 }
 0x341   : > { %v1211_v55 = vrot.slane %v1041_v54, %v2920_v4 }
 0x342   : > { %v2890_v37 = vpop.xlane.xlu1 %1012 }
 0x343   : > { %v1042_v33 = vmul.f32 0.0078125, %v2890_v37  ;;  %v1202_v37 = vrot.slane %v1039_v47, %v2925_v40 }
 0x344   : > { %v2986_v35 = vpop.xlane.xlu0 %979 }
 0x345   : > { %v1216_v59 = vrot.slane %v1042_v33, %v2928_v61  ;;  %v1207_v4 = vsel %vm1082_vm0, %v1206_v49, %v1202_v37 }
 0x346   : > { %v2894_v43 = vpop.xlane.xlu1 %1014  ;;  %v1212_v61 = vsel %vm1089_vm1, %v1211_v55, %v1207_v4 }
 0x347   : > { %v1043_v39 = vmul.f32 0.0078125, %v2894_v43 }
 0x348   : > { %v983_v63 = vpop.xlane.xlu0 %982 }
 0x349   : > { %v1221_v58 = vrot.slane %v1043_v39, %v2932_v1  ;;  %v1217_v1 = vsel %vm1096_vm2, %v1216_v59, %v1212_v61 }
 0x34a   : > { %v2898_v29 = vpop.xlane.xlu1 %1016 }
 0x34b   : > { %v1044_v34 = vmul.f32 0.0078125, %v2898_v29 }
 0x34c   : > { %v986_v24 = vpop.xlane.xlu0 %985 }
 0x34d   : > { %v1226_v40 = vrot.slane %v1044_v34, %v2939_v0  ;;  %v1157_v0 = vsub.s32 %v1154_v60, %v2668_v5 }
 0x34e   : > { %v2900_v36 = vpop.xlane.xlu1 %1018 }
 0x34f   : > { %v1045_v38 = vmul.f32 0.0078125, %v2900_v36  ;;  %v1161_v36 = vadd.s32 4294967192, %v2905_v51 }
 0x351   : > { %v1231_v3 = vrot.slane %v1045_v38, %v2944_v11  ;;  %v1164_v11 = vsub.s32 %v1161_v36, %v2668_v5 }
 0x352   : > { %v2907_v8 = vpop.xlane.xlu1 %1020 }
 0x353   : > { %v1046_v43 = vmul.f32 0.0078125, %v2907_v8  ;;  %v1168_v8 = vadd.s32 4294967184, %v2905_v51 }
 0x355   : > { %v1171_v18 = vsub.s32 %v1168_v8, %v2668_v5 }
 0x356   : > { %v2913_v57 = vpop.xlane.xlu1 %1022 }
 0x357   : > { %v1047_v29 = vmul.f32 0.0078125, %v2913_v57  ;;  %v1236_v57 = vrot.slane %v1046_v43, %v2950_v15 }
 0x359   : > { %v1241_v10 = vrot.slane %v1047_v29, %v2954_v17  ;;  %v1151_v17 = vrot.slane %v2962_v22, %v1150_v9  ;;  %v1172_v22 = vrot.slane %v986_v24, %v1171_v18 }
 0x35a   : > { %v2935_v42 = vpop.xlane.xlu1 %1024 }
 0x35b   : > { %v1048_v2 = vmul.f32 0.0078125, %v2935_v42  ;;  %v1222_v42 = vsel %vm1103_vm3, %v1221_v58, %v1217_v1  ;;  %v1153_v5 = vsel %vm1152_vm10, %v1151_v17, %v1146_v41 }
 0x35d   : > { %v1246_v20 = vrot.slane %v1048_v2, %v2960_v19  ;;  %v1158_v19 = vrot.slane %v2986_v35, %v1157_v0 }
 0x35e   : > { %v1027_v46 = vpop.xlane.xlu1 %1026 }
 0x35f   : > { %v1049_v6 = vmul.f32 0.0078125, %v1027_v46  ;;  %v1227_v46 = vsel %vm1110_vm4, %v1226_v40, %v1222_v42  ;;  %v1160_v33 = vsel %vm1159_vm11, %v1158_v19, %v1153_v5 }
 0x360   : > { %v1232_v23 = vsel %vm1117_vm5, %v1231_v3, %v1227_v46 }
 0x361   : > { %v1251_v51 = vrot.slane %v1049_v6, %v2968_v28  ;;  %v1237_v25 = vsel %vm1124_vm6, %v1236_v57, %v1232_v23  ;;  %v1165_v28 = vrot.slane %v983_v63, %v1164_v11 }
 0x362   : > { %v1029_v27 = vpop.xlane.xlu1 %1028 }
 0x363   : > { %v1050_v7 = vmul.f32 0.0078125, %v1029_v27  ;;  %v1242_v27 = vsel %vm1131_vm7, %v1241_v10, %v1237_v25  ;;  %v1167_v39 = vsel %vm1166_vm12, %v1165_v28, %v1160_v33 }
 0x364   : > { %v1247_v52 = vsel %vm1138_vm8, %v1246_v20, %v1242_v27  ;;  %v1174_v49 = vsel %vm1173_vm13, %v1172_v22, %v1167_v39 }
 0x365   : > { %v1256_v26 = vrot.slane %v1050_v7, %v1150_v9  ;;  %v1252_v54 = vsel %vm1145_vm9, %v1251_v51, %v1247_v52 }
 0x366   : > { %v1031_v45 = vpop.xlane.xlu1 %1030 }
 0x367   : > { %v1051_v14 = vmul.f32 0.0078125, %v1031_v45  ;;  %v1257_v47 = vsel %vm1152_vm10, %v1256_v26, %v1252_v54 }
 0x369   : > { %v1261_v13 = vrot.slane %v1051_v14, %v1157_v0 }
 0x36a   : > { %v1033_v62 = vpop.xlane.xlu1 %1032 }
 0x36b   : > { %v1052_v15 = vmul.f32 0.0078125, %v1033_v62  ;;  %v1262_v35 = vsel %vm1159_vm11, %v1261_v13, %v1257_v47 }
 0x36d   : > { %v1266_v30 = vrot.slane %v1052_v15, %v1164_v11 }
 0x36e   : > { %v1035_v16 = vpop.xlane.xlu1 %1034 }
 0x36f   : > { %v1053_v48 = vmul.f32 0.0078125, %v1035_v16  ;;  %v1267_v45 = vsel %vm1166_vm12, %v1266_v30, %v1262_v35 }
 0x371   : > { %v1271_v56 = vrot.slane %v1053_v48, %v1171_v18 }
 0x372   : > { %v1037_v32 = vpop.xlane.xlu1 %1036 }
 0x373   : > { %v1054_v12 = vmul.f32 0.0078125, %v1037_v32  ;;  %v1272_v34 = vsel %vm1173_vm13, %v1271_v56, %v1267_v45 }
 0x375   : > { %v1276_v31 = vrot.slane %v1054_v12, %v1178_v50 }
 0x376   : > { %v989_v21 = vpop.xlane.xlu1 %988 }
 0x377   : > { %v1179_v53 = vrot.slane %v989_v21, %v1178_v50  ;;  %v1277_v41 = vsel %vm1180_vm14, %v1276_v31, %v1272_v34 }
 0x379   : > { %v1181_v55 = vsel %vm1180_vm14, %v1179_v53, %v1174_v49 }
 0x37a   : > { %v1280_v38 = vsel %vm1279_vm15, %v1181_v55, %v1277_v41 }
 0x37b   : > { %1281 = vst [vmem:[%s421_s4] sm:$0x3] %v1280_v38 }
 0x37c   : > { %2092 = shalt.err (!%p2089_p12)
}
 0x37d   : > { %s2093_s18 = scalar_lea.hbm %s3043_s3, 32  ;;  %s2097_s16 = scalar_lea.hbm %s3183_s13, 128 }
 0x37e   : > { %p2094_p4 = scmp.ne.s32.totalorder %s3043_s3, %s2093_s18  ;;  %p2098_p2 = scmp.lt.u32.totalorder %s3043_s3, %s3183_s13 }
 0x37f   : > { %p2099_p3 = scmp.lt.u32.totalorder %s2097_s16, %s2093_s18  ;;  %p2101_p13 = scmp.lt.u32.totalorder %s2093_s18, %s3043_s3 }
 0x380   : > { %p2095_p6 = pnand %p2094_p4, %p2482_p10 }
 0x381   : > { %p2100_p7 = por %p2099_p3, %p2098_p2 }
 0x382   : > { %p2096_p8 = pneg %p2095_p6 }
 0x383   : > { %p2102_p9 = por %p2101_p13, %p2100_p7 }
 0x385   : > { %p2103_p11 = pnand %p2102_p9, %p2096_p8 }
 0x387   : > { %2106 = shalt.err (!%p2103_p11)
}
 0x388   : > { %1739 = dma.vmem_to_hbm [thread:$0]  (%p2482_p10), %s3045_s5, 32, %s3043_s3, %s2823_s22  }
 0x389 PF: > { %s3184_s8 = sld [smem:[#allocation21_spill]]  ;;  %s3185_s20 = sld [smem:[#allocation25_spill]] }
 0x38a   : > { %p1771_p5 = scmp.ge.s32.totalorder %s2213_s11, 2 }
 0x38f   : > { %s1357_s4 = sand.u32 1, %s3184_s8   ;;  %p3186_p1 = scmp.ne.s32.totalorder %s3185_s20, 0 }
 0x390   : > { %s1358_s2 = scalar_lea.sflag [#allocation4], %s1357_s4 }
 0x391   : > { %p1761_p0 = pnand %p1771_p5, %p3186_p1 }
 0x393   : > { %2164 = dma.done.wait (!%p1761_p0), %s1358_s2, 4096  }
 0x394   : > { %2166 = vsyncadd (!%p1761_p0), %s1358_s2, 4294963200  ;;  %s3187_s15 = sadd.s32 4294967294, %s2213_s11  }
 0x395   : > { %s1366_s19 = sand.u32 1, %s3187_s15  }
 0x396   : > { %s1367_s25 = scalar_lea.sflag [#allocation13], %s1366_s19 }
 0x397   : > { %2168 = dma.done.wait (!%p1761_p0), %s1367_s25, 2080  }
 0x398   : > { %2170 = vsyncadd (!%p1761_p0), %s1367_s25, 4294965216  ;;  %s29_s11 = sadd.s32 1, %s2213_s11   ;;  %s3188_s24 = sld [smem:[#allocation20_spill]] }
 0x399   : > { %p26_p10 = scmp.ge.s32.totalorder %s29_s11, 6   ;;  %s3189_s21 = smov %s2497_s27 }
 0x39a   : > { %s3190_s22 = sld [smem:[#allocation26_spill]]  ;;  %s3191_s25 = smov %s2181_s26 }
 0x39b   : > { %s3192_s26 = smov %s2494_s6  ;;  %s3193_s27 = smov %s2189_s28 }
 0x39c   : > { %s3194_s28 = smov %s2193_s29  ;;  %s3195_s29 = smov %s3189_s21 }
 0x39d   : > { %s3196_s30 = smov %s2205_s9  ;;  %s3197_s8 = smov %s2209_s10 }
 0x39e   : > { %s3199_s10 = smov %s3205_s1  ;;  %28 = sbr.rel (!%p26_p10) target bundleno = 22 (0x16), region = 137 }
 0x3a0   : > { %s3198_s9 = smov %s3190_s22 }
 0x3a5   :  { %1381 = vsyncpa [#allocation3], 1 }
 0x3a6   :  { %1383 = vsyncpa [#allocation3 + $0x1], 1 }
 0x3a7   :  { %1384 = vsyncpa [#allocation6], 1 }
 0x3a8   :  { %1385 = vsyncpa [#allocation9], 1 }
 0x3a9   :  { %1386 = vsyncpa [#allocation4], 1 }
 0x3aa   :  { %1388 = vsyncpa [#allocation4 + $0x1], 1 }
 0x3ab   :  { %1389 = vsyncpa [#allocation13], 1 }
 0x3ac   :  { %1391 = vsyncpa [#allocation13 + $0x1], 1 }

// kernel: tpu_custom_call.1
= control target key start
LH: loop header
LB: loop body
LE: loop exit
PB: predicated region body
PF: predicated region fallthrough
CT: control target
= control target key end

     0   :  { %s3339_s0 = inlined_call_operand.hbm [shape: f32[2,256,128], index: 0, kind: input, shape index: {}]   ;;  %s3340_s1 = inlined_call_operand.hbm [shape: f32[2,128,256], index: 1, kind: input, shape index: {}]   ;;  %s3341_s2 = inlined_call_operand.hbm [shape: f32[2,256,128], index: 2, kind: input, shape index: {}]   ;;  %s3342_s3 = inlined_call_operand.hbm [shape: f32[2,1,256], index: 3, kind: input, shape index: {}]   ;;  %s3343_s4 = inlined_call_operand.hbm [shape: f32[2,1,128], index: 4, kind: input, shape index: {}]   ;;  %s3344_s5 = inlined_call_operand.hbm [shape: f32[2,256,256], index: 5, kind: output, shape index: {0}]   ;;  %s3345_s6 = inlined_call_operand.hbm [shape: f32[2,256,128], index: 6, kind: output, shape index: {1}]   ;;  %s3346_s7 = inlined_call_operand.hbm [shape: f32[2,2,256], index: 7, kind: output, shape index: {2}]  }
   0x1   :  { %3371 = sst [smem:[#allocation31_spill]] %s3339_s0 }
   0x2   :  { %3372 = sst [smem:[#allocation32_spill]] %s3340_s1 }
   0x3   :  { %3373 = sst [smem:[#allocation33_spill]] %s3342_s3 }
   0x4   :  { %3374 = sst [smem:[#allocation34_spill]] %s3343_s4 }
   0x5   :  { %3375 = sst [smem:[#allocation35_spill]] %s3344_s5 }
   0x6   :  { %3376 = sst [smem:[#allocation36_spill]] %s3345_s6 }
   0x7   :  { %3377 = sst [smem:[#allocation37_spill]] %s3346_s7 }
   0x8   :  { %13 = vsyncpa [#allocation3], 0 }
   0x9   :  { %15 = vsyncpa [#allocation3 + $0x1], 0 }
   0xa   :  { %16 = vsyncpa [#allocation6], 0 }
   0xb   :  { %18 = vsyncpa [#allocation6 + $0x1], 0 }
   0xc   :  { %19 = vsyncpa [#allocation9], 0 }
   0xd   :  { %21 = vsyncpa [#allocation9 + $0x1], 0 }
   0xe   :  { %22 = vsyncpa [#allocation4], 0 }
   0xf   :  { %24 = vsyncpa [#allocation4 + $0x1], 0 }
  0x10   :  { %25 = vsyncpa [#allocation13], 0 }
  0x11   :  { %27 = vsyncpa [#allocation13 + $0x1], 0  ;;  %s2371_s24 = smov 0   ;;  %s2373_s25 = smov 0  }
  0x12   :  { %s2375_s26 = smov 0   ;;  %s2377_s27 = smov 0  }
  0x13   :  { %s2379_s28 = smov 0   ;;  %s2381_s29 = smov 0  }
  0x14   :  { %s2383_s30 = smov 0   ;;  %s2385_s8 = smov 0  }
  0x15   :  { %s2387_s9 = smov 0   ;;  %s2389_s10 = smov 0  }
  0x16   :  { %s2391_s11 = smov 0  }
  0x17 LB: > { %3378 = sst [smem:[#allocation20_spill]] %s2280_s26  ;;  %p3352_p0 = scmp.eq.s32.totalorder %s2312_s11, 0  ;;  %s2312_s11 = sphi %s2391_s11, %s33_s11   ;;  %s2308_s10 = sphi %s2389_s10, %s3439_s10   ;;  %s2304_s9 = sphi %s2387_s9, %s3438_s9   ;;  %s2300_s8 = sphi %s2385_s8, %s3437_s8   ;;  %s2296_s30 = sphi %s2383_s30, %s3430_s30   ;;  %s2292_s29 = sphi %s2381_s29, %s3429_s29   ;;  %s2288_s28 = sphi %s2379_s28, %s3436_s28   ;;  %s2284_s27 = sphi %s2377_s27, %s3435_s27   ;;  %s2280_s26 = sphi %s2375_s26, %s3427_s26   ;;  %s2276_s25 = sphi %s2373_s25, %s3434_s25   ;;  %s2272_s24 = sphi %s2371_s24, %s3433_s24  }
  0x18   : > { %3379 = sst [smem:[#allocation21_spill]] %s2292_s29  ;;  %p87_p1 = scmp.ne.s32.totalorder %s2280_s26, %s2276_s25 }
  0x19   : > { %3380 = sst [smem:[#allocation22_spill]] %s2296_s30  ;;  %p3351_p3 = scmp.lt.s32.totalorder %s2312_s11, 4 }
  0x1a   : > { %3381 = sst [smem:[#allocation23_spill]] %s2300_s8  ;;  %p89_p4 = por %p87_p1, %p3352_p0 }
  0x1b   : > { %3382 = sst [smem:[#allocation24_spill]] %s2304_s9  ;;  %s3350_s13 = sand.u32 1, %s2312_s11  }
  0x1c   : > { %s2437_s14 = sand.u32 1, %s2280_s26   ;;  %s3348_s16 = sshll.u32 %s2308_s10, 12 }
  0x1d   : > { %s3347_s15 = sshll.u32 %s2437_s14, 8  ;;  %s3383_s1 = sld [smem:[#allocation32_spill]] }
  0x1e   : > { %s306_s20 = scalar_lea.vmem [#allocation5], %s3347_s15  ;;  %p2452_p5 = pnand %p3351_p3, %p89_p4 }
  0x1f   : > { %s313_s21 = sshll.u32 %s306_s20, 4  ;;  %s2460_s23 = scalar_lea.sflag [#allocation6], %s3350_s13  ;;  %s2456_s21 = int_to_ptr.vmem [resolvable:$true] %s313_s21 }
  0x20   : > { %s3384_s22 = scalar_select %p2452_p5, 1, 0 }
  0x21   : > { %p2466_p7 = pneg %p2452_p5 }
  0x23   : > { %s2446_s19 = scalar_lea.hbm %s3383_s1, %s3348_s16  ;;  %s1977_s15 = scalar_lea.hbm %s3383_s1, 8192 }
  0x24   : > { %s1972_s17 = scalar_lea.hbm %s2446_s19, 4096  ;;  %p1978_p10 = scmp.lt.u32.totalorder %s2446_s19, %s3383_s1 }
  0x25   : > { %p1973_p6 = scmp.ne.s32.totalorder %s2446_s19, %s1972_s17  ;;  %p1979_p11 = scmp.lt.u32.totalorder %s1977_s15, %s1972_s17 }
  0x26   : > { %p1981_p13 = scmp.lt.u32.totalorder %s1972_s17, %s2446_s19 }
  0x27   : > { %p1975_p8 = pnand %p2466_p7, %p1973_p6  ;;  %p1980_p12 = por %p1979_p11, %p1978_p10 }
  0x29   : > { %p1976_p9 = pneg %p1975_p8  ;;  %p1982_p1 = por %p1981_p13, %p1980_p12 }
  0x2b   : > { %p1983_p4 = pnand %p1982_p1, %p1976_p9 }
  0x2d   : > { %1986 = shalt.err (!%p1983_p4)
}
  0x2e   : > { %s1987_s13 = scalar_lea.vmem %s2456_s21, 4096  ;;  %s2314_s12 = smov [#allocation5]  }
  0x2f   : > { %p1988_p6 = scmp.ne.s32.totalorder %s2456_s21, %s1987_s13  ;;  %s1992_s20 = sshll.u32 %s2314_s12, 4  ;;  %s1993_s20 = int_to_ptr.vmem [resolvable:$false] %s1992_s20 }
  0x30   : > { %s1994_s7 = scalar_lea.vmem %s1993_s20, 8192  ;;  %p1995_p2 = scmp.lt.s32.totalorder %s2456_s21, %s1993_s20 }
  0x31   : > { %p1990_p8 = pnand %p1988_p6, %p2466_p7  ;;  %p1996_p0 = scmp.lt.s32.totalorder %s1994_s7, %s1987_s13 }
  0x33   : > { %p1991_p3 = pneg %p1990_p8  ;;  %p1997_p10 = por %p1996_p0, %p1995_p2 }
  0x35   : > { %p1998_p11 = pnand %p1997_p10, %p1991_p3 }
  0x37   : > { %2001 = shalt.err (!%p1998_p11)
}
  0x38   : > { %s2315_s15 = smov 256   ;;  %s2316_s16 = smov 16  }
  0x39   : > { %1853 = dma.hbm_to_vmem [thread:$0]  (!%p2452_p5), %s2446_s19, 4096, %s2456_s21, %s2460_s23, %s2315_s15, %s2315_s15, %s2316_s16  }
  0x3a   : > { %s3386_s13 = sshll.u32 %s2308_s10, 12  ;;  %s3387_s7 = sshll.u32 %s2437_s14, 8 }
  0x3b   : > { %s2495_s20 = scalar_lea.hbm %s3341_s2, %s3386_s13  ;;  %s327_s1 = scalar_lea.vmem [#allocation7], %s3387_s7 }
  0x3c   : > { %s334_s5 = sshll.u32 %s327_s1, 4  ;;  %p1660_p0 = scmp.ge.s32.totalorder %s2312_s11, 1  ;;  %s2500_s5 = int_to_ptr.vmem [resolvable:$true] %s334_s5 }
  0x3d   : > { %p378_p2 = scmp.lt.s32.totalorder %s2312_s11, 5  ;;  %s45_s6 = sadd.s32 1, %s2308_s10 }
  0x3e   : > { %s42_s19 = sadd.s32 1, %s2304_s9  ;;  %s1647_s21 = sshll.u32 %s2304_s9, 4 }
  0x3f   : > { %p2504_p3 = pnand %p1660_p0, %p378_p2  ;;  %p43_p9 = scmp.ge.s32.totalorder %s42_s19, 2 }
  0x40   : > { %s1648_s15 = sshll.u32 %s2308_s10, 5  ;;  %s3391_s0 = sld [smem:[#allocation31_spill]] }
  0x41   : > { %s3388_s8 = scalar_select %p2504_p3, 1, 0 }
  0x42   : > { %s289_s16 = sadd.s32 %s1648_s15, %s1647_s21  ;;  %s3441_s19 = smov (%p43_p9, %s42_s19), 0 }
  0x43   : > { %3389 = sst [smem:[#allocation25_spill]] %s3388_s8  ;;  %s3443_s6 = smov (!%p43_p9, %s45_s6), %s2308_s10 }
  0x44   : > { %3390 = sst [smem:[#allocation26_spill]] %s3441_s19  ;;  %s50_s1 = ssub.s32 %s2304_s9, %s3441_s19 }
  0x45   : > { %s1649_s13 = sshll.u32 %s289_s16, 7  ;;  %p47_p12 = scmp.ge.s32.totalorder %s3443_s6, 2 }
  0x46   : > { %s2519_s7 = scalar_lea.hbm %s3391_s0, %s1649_s13  ;;  %s1656_s30 = sshll.u32 %s2437_s14, 1 }
  0x47   : > { %s3392_s3 = sld [smem:[#allocation33_spill]]  ;;  %s3445_s6 = smov (%p47_p12, %s3443_s6), 0 }
  0x48   : > { %3393 = sst [smem:[#allocation27_spill]] %s3445_s6  ;;  %s49_s16 = ssub.s32 %s2308_s10, %s3445_s6 }
  0x49   : > { %s348_s19 = scalar_lea.vmem [#allocation8], %s1656_s30  ;;  %s2531_s17 = sor.u32 %s50_s1, %s49_s16 }
  0x4a   : > { %s356_s9 = sshll.u32 %s348_s19, 4  ;;  %p78_p13 = scmp.eq.s32.totalorder %s49_s16, 0  ;;  %s2534_s9 = int_to_ptr.vmem [resolvable:$true] %s356_s9 }
  0x4b   : > { %s3394_s4 = sadd.s32 1, %s2280_s26 }
  0x4c   : > { %s2539_s8 = scalar_select %p78_p13, %s2280_s26, %s3394_s4  }
  0x4d   : > { %s2525_s21 = scalar_lea.hbm %s3392_s3, %s1648_s15  ;;  %s3396_s15 = sand.u32 1, %s2312_s11  }
  0x4e   : > { %3395 = sst [smem:[#allocation28_spill]] %s2539_s8  ;;  %s2543_s13 = scalar_lea.sflag [#allocation9], %s3396_s15 }
  0x4f   : > { %s2002_s12 = scalar_lea.hbm %s2525_s21, 32  ;;  %s2007_s1 = scalar_lea.hbm %s3392_s3, 64 }
  0x50   : > { %p2003_p4 = scmp.ne.s32.totalorder %s2525_s21, %s2002_s12  ;;  %p2008_p10 = scmp.lt.u32.totalorder %s2525_s21, %s3392_s3 }
  0x51   : > { %p2009_p11 = scmp.lt.u32.totalorder %s2007_s1, %s2002_s12  ;;  %p2011_p2 = scmp.lt.u32.totalorder %s2002_s12, %s2525_s21 }
  0x52   : > { %p2005_p6 = pnand %p2003_p4, %p2466_p7 }
  0x53   : > { %p2010_p0 = por %p2009_p11, %p2008_p10 }
  0x54   : > { %p2006_p8 = pneg %p2005_p6 }
  0x55   : > { %p2012_p9 = por %p2011_p2, %p2010_p0 }
  0x57   : > { %p2013_p12 = pnand %p2012_p9, %p2006_p8 }
  0x59   : > { %2016 = shalt.err (!%p2013_p12)
}
  0x5a   : > { %s2017_s4 = scalar_lea.vmem %s2534_s9, 32  ;;  %s2317_s15 = smov [#allocation8]  }
  0x5b   : > { %p2018_p13 = scmp.ne.s32.totalorder %s2534_s9, %s2017_s4  ;;  %s2022_s30 = sshll.u32 %s2317_s15, 4  ;;  %s2023_s30 = int_to_ptr.vmem [resolvable:$false] %s2022_s30 }
  0x5c   : > { %s2024_s6 = scalar_lea.vmem %s2023_s30, 64  ;;  %p2025_p1 = scmp.lt.s32.totalorder %s2534_s9, %s2023_s30 }
  0x5d   : > { %p2020_p4 = pnand %p2018_p13, %p2466_p7  ;;  %p2026_p3 = scmp.lt.s32.totalorder %s2024_s6, %s2017_s4 }
  0x5f   : > { %p2021_p6 = pneg %p2020_p4  ;;  %p2027_p10 = por %p2026_p3, %p2025_p1 }
  0x61   : > { %p2028_p11 = pnand %p2027_p10, %p2021_p6 }
  0x63   : > { %2031 = shalt.err (!%p2028_p11)
}
  0x64   : > { %1859 = dma.hbm_to_vmem [thread:$0]  (!%p2452_p5), %s2525_s21, 32, %s2534_s9, %s2543_s13  }
  0x65   : > { %s2568_s12 = sadd.s32 4294967295, %s2312_s11   ;;  %s3364_s19 = sadd.s32 4294967294, %s2312_s11  }
  0x66   : > { %s54_s1 = sadd.s32 1, %s2292_s29  ;;  %p3397_p3 = scmp.eq.s32.totalorder %s2531_s17, 0 }
  0x67   : > { %p61_p1 = scmp.ne.s32.totalorder %s2292_s29, %s2288_s28  ;;  %p67_p8 = scmp.ne.s32.totalorder %s2288_s28, %s2284_s27 }
  0x68   : > { %s2575_s16 = scalar_select %p3397_p3, %s2292_s29, %s54_s1  }
  0x69   : > { %p68_p0 = scmp.eq.s32.totalorder %s2568_s12, 0  ;;  %p197_p2 = scmp.eq.s32.totalorder %s2568_s12, 3 }
  0x6a   : > { %3398 = sst [smem:[#allocation29_spill]] %s2575_s16  ;;  %p3399_p9 = scmp.eq.s32.totalorder %s2312_s11, 0 }
  0x6b   : > { %p203_p13 = scmp.eq.s32.totalorder %s3364_s19, 3  ;;  %p2587_p4 = por %p68_p0, %p67_p8 }
  0x6c   : > { %p63_p12 = por %p3399_p9, %p61_p1  ;;  %p3401_p6 = scmp.ne.s32.totalorder %s2276_s25, %s2272_s24 }
  0x6d   : > { %s3400_s9 = scalar_select %p2587_p4, 1, 0 }
  0x6e   : > { %p2594_p10 = por %p3401_p6, %p68_p0  ;;  %p2598_p11 = por %p197_p2, %p61_p1 }
  0x6f   : > { %p2602_p3 = por %p203_p13, %p67_p8  ;;  %s279_s15 = sand.u32 1, %s2292_s29  }
  0x70   : > { %s3402_s21 = scalar_select %p2594_p10, 1, 0 }
  0x71   : > { %s3403_s17 = scalar_select %p2598_p11, 1, 0 }
  0x72   : > { %s3404_s4 = scalar_select %p2602_p3, 1, 0 }
  0x73   : > { %p3406_p9 = scmp.lt.s32.totalorder %s2312_s11, 4  ;;  %s1646_s24 = sshll.u32 %s279_s15, 7 }
  0x74   : > { %3405 = sst [smem:[#allocation30_spill]] %s3404_s4  ;;  %s283_s6 = scalar_lea.vmem [#allocation2], %s1646_s24 }
  0x75   : > { %p2609_p5 = pnand %p3406_p9, %p63_p12  ;;  %s292_s1 = sshll.u32 %s283_s6, 4  ;;  %s2613_s1 = int_to_ptr.vmem [resolvable:$true] %s292_s1 }
  0x76   : > { %s2615_s19 = scalar_lea.sflag [#allocation3], %s279_s15  ;;  %s2032_s3 = scalar_lea.hbm %s2519_s7, 2048 }
  0x77   : > { %p2033_p1 = scmp.ne.s32.totalorder %s2519_s7, %s2032_s3  ;;  %p2034_p8 = pneg %p2609_p5 }
  0x78   : > { %s2037_s8 = scalar_lea.hbm %s3391_s0, 8192  ;;  %p2038_p12 = scmp.lt.u32.totalorder %s2519_s7, %s3391_s0 }
  0x79   : > { %p2035_p0 = pnand %p2034_p8, %p2033_p1  ;;  %p2039_p13 = scmp.lt.u32.totalorder %s2037_s8, %s2032_s3 }
  0x7a   : > { %p2041_p9 = scmp.lt.u32.totalorder %s2032_s3, %s2519_s7 }
  0x7b   : > { %p2036_p2 = pneg %p2035_p0  ;;  %p2040_p6 = por %p2039_p13, %p2038_p12 }
  0x7d   : > { %p2042_p3 = por %p2041_p9, %p2040_p6 }
  0x7f   : > { %p2043_p11 = pnand %p2042_p3, %p2036_p2 }
  0x81   : > { %2046 = shalt.err (!%p2043_p11)
}
  0x82   : > { %s2047_s15 = scalar_lea.vmem %s2613_s1, 2048  ;;  %s2318_s29 = smov [#allocation2]  }
  0x83   : > { %p2048_p1 = scmp.ne.s32.totalorder %s2613_s1, %s2047_s15  ;;  %s2052_s16 = sshll.u32 %s2318_s29, 4  ;;  %s2053_s16 = int_to_ptr.vmem [resolvable:$false] %s2052_s16 }
  0x84   : > { %s2054_s26 = scalar_lea.vmem %s2053_s16, 4096  ;;  %p2055_p4 = scmp.lt.s32.totalorder %s2613_s1, %s2053_s16 }
  0x85   : > { %p2050_p0 = pnand %p2048_p1, %p2034_p8  ;;  %p2056_p12 = scmp.lt.s32.totalorder %s2054_s26, %s2047_s15 }
  0x87   : > { %p2051_p10 = pneg %p2050_p0  ;;  %p2057_p13 = por %p2056_p12, %p2055_p4 }
  0x89   : > { %p2058_p6 = pnand %p2057_p13, %p2051_p10 }
  0x8b   : > { %2061 = shalt.err (!%p2058_p6)
}
  0x8c   : > { %s2319_s3 = smov 128   ;;  %s2320_s8 = smov 8  }
  0x8d   : > { %1850 = dma.hbm_to_vmem [thread:$0]  (!%p2609_p5), %s2519_s7, 2048, %s2613_s1, %s2615_s19, %s2319_s3, %s2319_s3, %s2320_s8  }
  0x8e   : > { %s2062_s4 = scalar_lea.hbm %s2495_s20, 4096  ;;  %s2067_s15 = scalar_lea.hbm %s3341_s2, 8192 }
  0x8f   : > { %p2063_p4 = scmp.ne.s32.totalorder %s2495_s20, %s2062_s4  ;;  %p2068_p3 = scmp.lt.u32.totalorder %s2495_s20, %s3341_s2 }
  0x90   : > { %p2069_p8 = scmp.lt.u32.totalorder %s2067_s15, %s2062_s4  ;;  %p2071_p9 = scmp.lt.u32.totalorder %s2062_s4, %s2495_s20 }
  0x91   : > { %p2065_p10 = pnand %p2063_p4, %p2466_p7 }
  0x92   : > { %p2070_p2 = por %p2069_p8, %p2068_p3 }
  0x93   : > { %p2066_p11 = pneg %p2065_p10 }
  0x94   : > { %p2072_p1 = por %p2071_p9, %p2070_p2 }
  0x96   : > { %p2073_p0 = pnand %p2072_p1, %p2066_p11 }
  0x98   : > { %2076 = shalt.err (!%p2073_p0)
}
  0x99   : > { %s2077_s7 = scalar_lea.vmem %s2500_s5, 4096  ;;  %s2321_s19 = smov [#allocation7]  }
  0x9a   : > { %p2078_p5 = scmp.ne.s32.totalorder %s2500_s5, %s2077_s7  ;;  %s2082_s30 = sshll.u32 %s2321_s19, 4  ;;  %s2083_s30 = int_to_ptr.vmem [resolvable:$false] %s2082_s30 }
  0x9b   : > { %s2084_s1 = scalar_lea.vmem %s2083_s30, 8192  ;;  %p2085_p6 = scmp.lt.s32.totalorder %s2500_s5, %s2083_s30 }
  0x9c   : > { %p2080_p12 = pnand %p2078_p5, %p2466_p7  ;;  %p2086_p4 = scmp.lt.s32.totalorder %s2084_s1, %s2077_s7 }
  0x9e   : > { %p2081_p13 = pneg %p2080_p12  ;;  %p2087_p10 = por %p2086_p4, %p2085_p6 }
  0xa0   : > { %p2088_p3 = pnand %p2087_p10, %p2081_p13 }
  0xa2   : > { %2091 = shalt.err (!%p2088_p3)
}
  0xa3   : > { %p3408_p11 = scmp.ne.s32.totalorder %s3384_s22, 0  ;;  %s1659_s26 = sshll.u32 %s2308_s10, 4 }
  0xa4   : > { %s3409_s6 = sld [smem:[#allocation34_spill]]  ;;  %s366_s29 = scalar_lea.vmem [#allocation10], %s2437_s14 }
  0xa5   : > { %1856 = dma.hbm_to_vmem [thread:$0]  (!%p3408_p11), %s2495_s20, 4096, %s2500_s5, %s2460_s23, %s2319_s3, %s2319_s3, %s2320_s8  }
  0xa6   : > { %s373_s16 = sshll.u32 %s366_s29, 4  ;;  %s374_s16 = int_to_ptr.vmem [resolvable:$true] %s373_s16 }
  0xaa   : > { %s2675_s15 = scalar_lea.hbm %s3409_s6, %s1659_s26  ;;  %s2097_s23 = scalar_lea.hbm %s3409_s6, 32 }
  0xab   : > { %s2092_s7 = scalar_lea.hbm %s2675_s15, 16  ;;  %p2098_p1 = scmp.lt.u32.totalorder %s2675_s15, %s3409_s6 }
  0xac   : > { %p2093_p8 = scmp.ne.s32.totalorder %s2675_s15, %s2092_s7  ;;  %p2099_p0 = scmp.lt.u32.totalorder %s2097_s23, %s2092_s7 }
  0xad   : > { %p2101_p12 = scmp.lt.u32.totalorder %s2092_s7, %s2675_s15 }
  0xae   : > { %p2095_p2 = pnand %p2093_p8, %p2466_p7  ;;  %p2100_p5 = por %p2099_p0, %p2098_p1 }
  0xb0   : > { %p2096_p9 = pneg %p2095_p2  ;;  %p2102_p13 = por %p2101_p12, %p2100_p5 }
  0xb2   : > { %p2103_p6 = pnand %p2102_p13, %p2096_p9 }
  0xb4   : > { %2106 = shalt.err (!%p2103_p6)
}
  0xb5   : > { %s2107_s14 = scalar_lea.vmem %s374_s16, 16  ;;  %s2322_s8 = smov [#allocation10]  }
  0xb6   : > { %p2108_p4 = scmp.ne.s32.totalorder %s374_s16, %s2107_s14  ;;  %s2112_s30 = sshll.u32 %s2322_s8, 4  ;;  %s2113_s30 = int_to_ptr.vmem [resolvable:$false] %s2112_s30 }
  0xb7   : > { %s2114_s1 = scalar_lea.vmem %s2113_s30, 32  ;;  %p2115_p8 = scmp.lt.s32.totalorder %s374_s16, %s2113_s30 }
  0xb8   : > { %p2110_p10 = pnand %p2108_p4, %p2466_p7  ;;  %p2116_p2 = scmp.lt.s32.totalorder %s2114_s1, %s2107_s14 }
  0xba   : > { %p2111_p3 = pneg %p2110_p10  ;;  %p2117_p11 = por %p2116_p2, %p2115_p8 }
  0xbc   : > { %p2118_p0 = pnand %p2117_p11, %p2111_p3 }
  0xbe   : > { %2121 = shalt.err (!%p2118_p0)
}
  0xbf   : > { %p3410_p1 = scmp.ne.s32.totalorder %s3384_s22, 0  ;;  %s3411_s26 = sld [smem:[#allocation25_spill]] }
  0xc1   : > { %1862 = dma.hbm_to_vmem [thread:$0]  (!%p3410_p1), %s2675_s15, 16, %s374_s16, %s2543_s13  }
  0xc5   : > { %p3412_p9 = scmp.ne.s32.totalorder %s3411_s26, 0 }
  0xc6   : > { %s2699_s18 = sand.u32 (!%p3412_p9), 1, %s2288_s28   ;;  %p3413_p7 = scmp.ne.s32.totalorder (!%p3412_p9), %s3400_s9, 0 }
  0xc7   : > { %382 = sbr.rel (%p3412_p9) target bundleno = 913 (0x391), region = 40  ;;  %s1661_s4 = sshll.u32 (!%p3412_p9), %s2699_s18, 7 }
  0xc8   : > { %s385_s24 = scalar_lea.sflag (!%p3412_p9), [#allocation3], %s2699_s18  ;;  %s2705_s29 = scalar_lea.vmem (!%p3412_p9), [#allocation2], %s1661_s4 }
  0xce   : > { %2251 = dma.done.wait (%p3413_p7), %s385_s24, 2048  }
  0xcf   : > { %2253 = vsyncadd (%p3413_p7), %s385_s24, 4294965248  ;;  %s2712_s22 = sand.u32 1, %s2568_s12   ;;  %s2715_s13 = sand.u32 1, %s2276_s25  }
  0xd0   : > { %s1662_s15 = sshll.u32 %s2715_s13, 8  ;;  %s394_s16 = scalar_lea.sflag [#allocation6], %s2712_s22 }
  0xd1   : > { %s2719_s7 = scalar_lea.vmem [#allocation5], %s1662_s15  ;;  %p3414_p11 = scmp.ne.s32.totalorder %s3402_s21, 0 }
  0xd3   : > { %2255 = dma.done.wait (%p3414_p11), %s394_s16, 8192  }
  0xd4   : > { %2257 = vsyncadd (%p3414_p11), %s394_s16, 4294959104  ;;  %s1664_s9 = sshll.u32 %s2715_s13, 1  ;;  %s2726_s19 = scalar_lea.vmem [#allocation7], %s1662_s15 }
  0xd5   : > { %s412_s12 = scalar_lea.sflag [#allocation9], %s2712_s22  ;;  %s2729_s5 = scalar_lea.vmem [#allocation8], %s1664_s9 }
  0xd6   : > { %2259 = dma.done.wait (%p3414_p11), %s412_s12, 48  }
  0xd7   : > { %2261 = vsyncadd (%p3414_p11), %s412_s12, 4294967248  ;;  %v2323_v0 = vmov 0.0   ;;  %v505_v1 = vld [vmem:[%s2719_s7 + $0x8] sm:$0xff]  ;;  %v507_v2 = vld [vmem:[%s2719_s7 + $0x18] sm:$0xff]  ;;  %s423_s21 = scalar_lea.vmem [#allocation10], %s2715_s13  ;;  %s1665_s23 = sshll.u32 %s2699_s18, 8 }
  0xd8   : > { %665 = vmatprep.mubr.f32.mxu0 %v2323_v0  ;;  %v504_v3 = vld [vmem:[%s2719_s7] sm:$0xff]  ;;  %v1767_v4 = vpack.c.bf16 %v507_v2, %v505_v1  ;;  %v506_v5 = vld [vmem:[%s2719_s7 + $0x10] sm:$0xff]  ;;  %v509_v6 = vld [vmem:[%s2719_s7 + $0x28] sm:$0xff]  ;;  %s2911_s20 = scalar_lea.vmem [#allocation11], %s1665_s23  ;;  %s2988_s3 = scalar_lea.vmem [#allocation12], %s1661_s4 }
  0xd9   : > { %v511_v7 = vld [vmem:[%s2719_s7 + $0x38] sm:$0xff]  ;;  %v1769_v8 = vpack.c.bf16 %v506_v5, %v504_v3  ;;  %v508_v10 = vld [vmem:[%s2719_s7 + $0x20] sm:$0xff]  ;;  %v510_v11 = vld [vmem:[%s2719_s7 + $0x30] sm:$0xff]  ;;  %s3415_s14 = sld [smem:[#allocation22_spill]]  ;;  %s3416_s8 = sld [smem:[#allocation23_spill]] }
  0xda   : > { %v1771_v9 = vpack.c.bf16 %v511_v7, %v509_v6  ;;  %v513_v12 = vld [vmem:[%s2719_s7 + $0x48] sm:$0xff]  ;;  %1768 = vmatprep.subr.bf16.mxu0 %v1767_v4  ;;  %v515_v13 = vld [vmem:[%s2719_s7 + $0x58] sm:$0xff]  ;;  %v1773_v14 = vpack.c.bf16 %v510_v11, %v508_v10  ;;  %v512_v16 = vld [vmem:[%s2719_s7 + $0x40] sm:$0xff]  ;;  %s3417_s16 = sld [smem:[#allocation36_spill]]  ;;  %s1349_s9 = scalar_lea.sflag [#allocation13], %s2712_s22 }
  0xdb   : > { %1770 = vmatpush1.bf16.msra.mxu0 %v1769_v8  ;;  %v1775_v15 = vpack.c.bf16 %v515_v13, %v513_v12  ;;  %v514_v17 = vld [vmem:[%s2719_s7 + $0x50] sm:$0xff]  ;;  %v517_v18 = vld [vmem:[%s2719_s7 + $0x68] sm:$0xff]  ;;  %v519_v19 = vld [vmem:[%s2719_s7 + $0x78] sm:$0xff]  ;;  %p3418_p12 = scmp.ne.s32.totalorder %s3403_s17, 0  ;;  %s2324_s12 = smov [#allocation12]  }
  0xdc   : > { %1772 = vmatprep.subr.bf16.mxu0 %v1771_v9  ;;  %v1777_v20 = vpack.c.bf16 %v514_v17, %v512_v16  ;;  %v1779_v21 = vpack.c.bf16 %v519_v19, %v517_v18  ;;  %v516_v22 = vld [vmem:[%s2719_s7 + $0x60] sm:$0xff]  ;;  %v518_v23 = vld [vmem:[%s2719_s7 + $0x70] sm:$0xff]  ;;  %v521_v24 = vld [vmem:[%s2719_s7 + $0x88] sm:$0xff] }
  0xdd   : > { %v523_v25 = vld [vmem:[%s2719_s7 + $0x98] sm:$0xff]  ;;  %v1781_v26 = vpack.c.bf16 %v518_v23, %v516_v22  ;;  %v520_v28 = vld [vmem:[%s2719_s7 + $0x80] sm:$0xff]  ;;  %v522_v29 = vld [vmem:[%s2719_s7 + $0x90] sm:$0xff] }
  0xde   : > { %v1783_v27 = vpack.c.bf16 %v523_v25, %v521_v24  ;;  %v525_v30 = vld [vmem:[%s2719_s7 + $0xa8] sm:$0xff]  ;;  %v527_v31 = vld [vmem:[%s2719_s7 + $0xb8] sm:$0xff]  ;;  %v524_v32 = vld [vmem:[%s2719_s7 + $0xa0] sm:$0xff]  ;;  %v1785_v34 = vpack.c.bf16 %v522_v29, %v520_v28 }
  0xdf   : > { %1774 = vmatpush1.bf16.msra.mxu0 %v1773_v14  ;;  %v526_v33 = vld [vmem:[%s2719_s7 + $0xb0] sm:$0xff]  ;;  %v529_v35 = vld [vmem:[%s2719_s7 + $0xc8] sm:$0xff]  ;;  %v531_v36 = vld [vmem:[%s2719_s7 + $0xd8] sm:$0xff]  ;;  %v1787_v39 = vpack.c.bf16 %v527_v31, %v525_v30  ;;  %s1676_s30 = sshll.u32 %s3415_s14, 4  ;;  %s1677_s1 = sshll.u32 %s3416_s8, 5 }
  0xe0   : > { %1776 = vmatprep.subr.bf16.mxu0 %v1775_v15  ;;  %v552_v37 = vld [vmem:[%s2726_s19 + $0x80] sm:$0xff]  ;;  %v553_v38 = vld [vmem:[%s2726_s19 + $0x88] sm:$0xff]  ;;  %v554_v43 = vld [vmem:[%s2726_s19 + $0x90] sm:$0xff]  ;;  %v1789_v51 = vpack.c.bf16 %v526_v33, %v524_v32  ;;  %v1791_v55 = vpack.c.bf16 %v531_v36, %v529_v35  ;;  %s1385_s26 = sadd.s32 %s1677_s1, %s1676_s30  ;;  %s1686_s4 = sshll.u32 %s3415_s14, 5 }
  0xe1   : > { %v1799_v40 = vpack.c.bf16 %v553_v38, %v552_v37  ;;  %v536_v41 = vld [vmem:[%s2726_s19] sm:$0xff]  ;;  %v537_v42 = vld [vmem:[%s2726_s19 + $0x8] sm:$0xff]  ;;  %v555_v45 = vld [vmem:[%s2726_s19 + $0x98] sm:$0xff]  ;;  %s1678_s24 = sshll.u32 %s1385_s26, 7 }
  0xe2   : > { %v1801_v44 = vpack.c.bf16 %v537_v42, %v536_v41  ;;  %v538_v46 = vld [vmem:[%s2726_s19 + $0x10] sm:$0xff]  ;;  %v539_v47 = vld [vmem:[%s2726_s19 + $0x18] sm:$0xff]  ;;  %v1803_v48 = vpack.c.bf16 %v555_v45, %v554_v43  ;;  %v556_v49 = vld [vmem:[%s2726_s19 + $0xa0] sm:$0xff] }
  0xe3   : > { %1778 = vmatpush1.bf16.msra.mxu0 %v1777_v20  ;;  %1800 = vmatprep.subr.bf16.mxu1 %v1799_v40  ;;  %v557_v50 = vld [vmem:[%s2726_s19 + $0xa8] sm:$0xff]  ;;  %v528_v52 = vld [vmem:[%s2719_s7 + $0xc0] sm:$0xff]  ;;  %v530_v53 = vld [vmem:[%s2719_s7 + $0xd0] sm:$0xff]  ;;  %v1805_v54 = vpack.c.bf16 %v539_v47, %v538_v46 }
  0xe4   : > { %1780 = vmatprep.subr.bf16.mxu0 %v1779_v21  ;;  %1802 = vmatpush3.bf16.msra.mxu1 %v1801_v44  ;;  %v533_v56 = vld [vmem:[%s2719_s7 + $0xe8] sm:$0xff]  ;;  %v1807_v57 = vpack.c.bf16 %v557_v50, %v556_v49  ;;  %v540_v58 = vld [vmem:[%s2726_s19 + $0x20] sm:$0xff]  ;;  %v535_v60 = vld [vmem:[%s2719_s7 + $0xf8] sm:$0xff]  ;;  %v1793_v63 = vpack.c.bf16 %v530_v53, %v528_v52 }
  0xe5   : > { %1804 = vmatprep.subr.bf16.mxu1 %v1803_v48  ;;  %v541_v59 = vld [vmem:[%s2726_s19 + $0x28] sm:$0xff]  ;;  %v558_v61 = vld [vmem:[%s2726_s19 + $0xb0] sm:$0xff]  ;;  %v559_v62 = vld [vmem:[%s2726_s19 + $0xb8] sm:$0xff]  ;;  %v1795_v3 = vpack.c.bf16 %v535_v60, %v533_v56 }
  0xe6   : > { %v532_v1 = vld [vmem:[%s2719_s7 + $0xe0] sm:$0xff]  ;;  %v1809_v2 = vpack.c.bf16 %v541_v59, %v540_v58  ;;  %v534_v4 = vld [vmem:[%s2719_s7 + $0xf0] sm:$0xff]  ;;  %v1811_v5 = vpack.c.bf16 %v559_v62, %v558_v61  ;;  %v543_v7 = vld [vmem:[%s2726_s19 + $0x38] sm:$0xff]  ;;  %s3049_s7 = scalar_lea.hbm %s3417_s16, %s1678_s24 }
  0xe7   : > { %1782 = vmatpush1.bf16.msra.mxu0 %v1781_v26  ;;  %v542_v6 = vld [vmem:[%s2726_s19 + $0x30] sm:$0xff]  ;;  %v560_v8 = vld [vmem:[%s2726_s19 + $0xc0] sm:$0xff]  ;;  %v561_v9 = vld [vmem:[%s2726_s19 + $0xc8] sm:$0xff]  ;;  %v1797_v10 = vpack.c.bf16 %v534_v4, %v532_v1  ;;  %v591_v4 = vlaneseq }
  0xe8   : > { %1784 = vmatprep.subr.bf16.mxu0 %v1783_v27  ;;  %1806 = vmatpush3.bf16.msra.mxu1 %v1805_v54  ;;  %v2787_v11 = vld [vmem:[%s2705_s29] sm:$0xff]  ;;  %v1813_v13 = vpack.c.bf16 %v543_v7, %v542_v6  ;;  %v1815_v14 = vpack.c.bf16 %v561_v9, %v560_v8  ;;  %v545_v16 = vld [vmem:[%s2726_s19 + $0x48] sm:$0xff]  ;;  %v562_v17 = vld [vmem:[%s2726_s19 + $0xd0] sm:$0xff] }
  0xe9   : > { %1808 = vmatprep.subr.bf16.mxu1 %v1807_v57  ;;  %v2790_v12 = vld [vmem:[%s423_s21] ss:$0 sm:$0xff]  ;;  %v563_v18 = vld [vmem:[%s2726_s19 + $0xd8] sm:$0xff]  ;;  %v2799_v20 = vld [vmem:[%s2705_s29 + $0x8] sm:$0xff] }
  0xea   : > { %v544_v15 = vld [vmem:[%s2726_s19 + $0x40] sm:$0xff]  ;;  %v574_v19 = vsub.f32 %v2787_v11, %v2790_v12  ;;  %v1819_v22 = vpack.c.bf16 %v563_v18, %v562_v17  ;;  %v546_v23 = vld [vmem:[%s2726_s19 + $0x50] sm:$0xff]  ;;  %v547_v24 = vld [vmem:[%s2726_s19 + $0x58] sm:$0xff]  ;;  %v575_v27 = vsub.f32 %v2799_v20, %v2790_v12 }
  0xeb   : > { %1786 = vmatpush1.bf16.msra.mxu0 %v1785_v34  ;;  %v1817_v21 = vpack.c.bf16 %v545_v16, %v544_v15  ;;  %v564_v25 = vld [vmem:[%s2726_s19 + $0xe0] sm:$0xff]  ;;  %v565_v26 = vld [vmem:[%s2726_s19 + $0xe8] sm:$0xff]  ;;  %v2809_v28 = vld [vmem:[%s2705_s29 + $0x10] sm:$0xff]  ;;  %v1821_v29 = vpack.c.bf16 %v547_v24, %v546_v23 }
  0xec   : > { %1788 = vmatprep.subr.bf16.mxu0 %v1787_v39  ;;  %1810 = vmatpush3.bf16.msra.mxu1 %v1809_v2  ;;  %v1823_v30 = vpack.c.bf16 %v565_v26, %v564_v25  ;;  %v576_v31 = vsub.f32 %v2809_v28, %v2790_v12  ;;  %v2815_v32 = vld [vmem:[%s2705_s29 + $0x18] sm:$0xff]  ;;  %v2821_v34 = vld [vmem:[%s2705_s29 + $0x20] sm:$0xff]  ;;  %v2827_v36 = vld [vmem:[%s2705_s29 + $0x28] sm:$0xff] }
  0xed   : > { %1812 = vmatprep.subr.bf16.mxu1 %v1811_v5  ;;  %v577_v33 = vsub.f32 %v2815_v32, %v2790_v12  ;;  %v578_v35 = vsub.f32 %v2821_v34, %v2790_v12  ;;  %v579_v37 = vsub.f32 %v2827_v36, %v2790_v12  ;;  %v2833_v38 = vld [vmem:[%s2705_s29 + $0x30] sm:$0xff]  ;;  %v2839_v40 = vld [vmem:[%s2705_s29 + $0x38] sm:$0xff]  ;;  %v2845_v42 = vld [vmem:[%s2705_s29 + $0x40] sm:$0xff]  ;;  %v2899_v5 = vshrl.u32 %v591_v4, 7 }
  0xee   : > { %v580_v39 = vsub.f32 %v2833_v38, %v2790_v12  ;;  %v581_v41 = vsub.f32 %v2839_v40, %v2790_v12  ;;  %v582_v43 = vsub.f32 %v2845_v42, %v2790_v12  ;;  %v2851_v44 = vld [vmem:[%s2705_s29 + $0x48] sm:$0xff]  ;;  %v2857_v46 = vld [vmem:[%s2705_s29 + $0x50] sm:$0xff]  ;;  %v2863_v48 = vld [vmem:[%s2705_s29 + $0x58] sm:$0xff] }
  0xef   : > { %1790 = vmatpush1.bf16.msra.mxu0 %v1789_v51  ;;  %v583_v45 = vsub.f32 %v2851_v44, %v2790_v12  ;;  %v584_v47 = vsub.f32 %v2857_v46, %v2790_v12  ;;  %v585_v49 = vsub.f32 %v2863_v48, %v2790_v12  ;;  %v2869_v50 = vld [vmem:[%s2705_s29 + $0x60] sm:$0xff]  ;;  %v2875_v52 = vld [vmem:[%s2705_s29 + $0x68] sm:$0xff]  ;;  %v2881_v54 = vld [vmem:[%s2705_s29 + $0x70] sm:$0xff]  ;;  %v597_v7 = vsub.s32 1, %v2899_v5 }
  0xf0   : > { %1792 = vmatprep.subr.bf16.mxu0 %v1791_v55  ;;  %1814 = vmatpush3.bf16.msra.mxu1 %v1813_v13  ;;  %v586_v51 = vsub.f32 %v2869_v50, %v2790_v12  ;;  %v587_v53 = vsub.f32 %v2875_v52, %v2790_v12  ;;  %v588_v55 = vsub.f32 %v2881_v54, %v2790_v12  ;;  %v2887_v56 = vld [vmem:[%s2705_s29 + $0x78] sm:$0xff]  ;;  %v548_v58 = vld [vmem:[%s2726_s19 + $0x60] sm:$0xff]  ;;  %v549_v59 = vld [vmem:[%s2726_s19 + $0x68] sm:$0xff]  ;;  %s1388_s29 = sshll.u32 %s2988_s3, 4  ;;  %s3051_s29 = int_to_ptr.vmem [resolvable:$true] %s1388_s29 }
  0xf1   : > { %1816 = vmatprep.subr.bf16.mxu1 %v1815_v14  ;;  %v589_v57 = vsub.f32 %v2887_v56, %v2790_v12  ;;  %v1825_v60 = vpack.c.bf16 %v549_v59, %v548_v58  ;;  %v566_v61 = vld [vmem:[%s2726_s19 + $0xf0] sm:$0xff]  ;;  %v567_v62 = vld [vmem:[%s2726_s19 + $0xf8] sm:$0xff]  ;;  %v502_v6 = vld [vmem:[%s2729_s5] sm:$0x3]  ;;  %s2126_s5 = sshll.u32 %s2324_s12, 4  ;;  %s2127_s5 = int_to_ptr.vmem [resolvable:$false] %s2126_s5 }
  0xf2   : > { %v550_v1 = vld [vmem:[%s2726_s19 + $0x70] sm:$0xff]  ;;  %v551_v2 = vld [vmem:[%s2726_s19 + $0x78] sm:$0xff]  ;;  %v2906_v9 = vrot.slane %v502_v6, %v597_v7  ;;  %s2122_s19 = scalar_lea.vmem %s3051_s29, 2048  ;;  %s2128_s21 = scalar_lea.vmem %s2127_s5, 4096 }
  0xf3   : > { %1794 = vmatpush1.bf16.msra.mxu0 %v1793_v63  ;;  %v1827_v63 = vpack.c.bf16 %v567_v62, %v566_v61  ;;  %p2123_p5 = scmp.ne.s32.totalorder %s3051_s29, %s2122_s19  ;;  %p2129_p4 = scmp.lt.s32.totalorder %s3051_s29, %s2127_s5 }
  0xf4   : > { %1796 = vmatprep.subr.bf16.mxu0 %v1795_v3  ;;  %1818 = vmatpush3.bf16.msra.mxu1 %v1817_v21  ;;  %v1829_v3 = vpack.c.bf16 %v551_v2, %v550_v1  ;;  %p2130_p10 = scmp.lt.s32.totalorder %s2128_s21, %s2122_s19 }
  0xf5   : > { %1820 = vmatprep.subr.bf16.mxu1 %v1819_v22  ;;  %p2124_p13 = pnand %p2123_p5, %p3418_p12 }
  0xf6   : > { %p2131_p3 = por %p2130_p10, %p2129_p4 }
  0xf7   : > { %1798 = vmatpush1.bf16.msra.mxu0 %v1797_v10  ;;  %p2125_p6 = pneg %p2124_p13 }
  0xf8   : > { %1822 = vmatpush3.bf16.msra.mxu1 %v1821_v29 }
  0xf9   : > { %1824 = vmatprep.subr.bf16.mxu1 %v1823_v30  ;;  %p2132_p8 = pnand %p2131_p3, %p2125_p6 }
  0xfa   : > { %666 = vmatmul.mubr.f32.vlgmr.msra.gmra.mrb[0].mxu0 %v574_v19 }
  0xfb   : > { %671 = vmatprep.mubr.f32.mxu0 %v2323_v0 }
  0xfc   : > { %1826 = vmatpush3.bf16.msra.mxu1 %v1825_v60 }
  0xfd   : > { %1828 = vmatprep.subr.bf16.mxu1 %v1827_v63 }
  0xfe   : > { %672 = vmatmul.mubr.f32.gmra.mrb[2].mxu0 %v575_v27 }
  0xff   : > { %677 = vmatprep.mubr.f32.mxu0 %v2323_v0 }
 0x100   : > { %1830 = vmatpush3.bf16.msra.mxu1 %v1829_v3 }
 0x102   : > { %678 = vmatmul.mubr.f32.gmra.mrb[4].mxu0 %v576_v31 }
 0x103   : > { %683 = vmatprep.mubr.f32.mxu0 %v2323_v0 }
 0x106   : > { %684 = vmatmul.mubr.f32.gmra.mrb[6].mxu0 %v577_v33 }
 0x107   : > { %689 = vmatprep.mubr.f32.mxu0 %v2323_v0 }
 0x10a   : > { %690 = vmatmul.mubr.f32.gmra.mrb[8].mxu0 %v578_v35 }
 0x10b   : > { %695 = vmatprep.mubr.f32.mxu0 %v2323_v0 }
 0x10e   : > { %696 = vmatmul.mubr.f32.gmra.mrb[10].mxu0 %v579_v37 }
 0x10f   : > { %701 = vmatprep.mubr.f32.mxu0 %v2323_v0 }
 0x112   : > { %702 = vmatmul.mubr.f32.gmra.mrb[12].mxu0 %v580_v39 }
 0x113   : > { %707 = vmatprep.mubr.f32.mxu0 %v2323_v0 }
 0x116   : > { %708 = vmatmul.mubr.f32.gmra.mrb[14].mxu0 %v581_v41 }
 0x117   : > { %713 = vmatprep.mubr.f32.mxu0 %v2323_v0 }
 0x11a   : > { %714 = vmatmul.mubr.f32.gmra.mrb[16].mxu0 %v582_v43 }
 0x11b   : > { %719 = vmatprep.mubr.f32.mxu0 %v2323_v0 }
 0x11e   : > { %720 = vmatmul.mubr.f32.gmra.mrb[18].mxu0 %v583_v45 }
 0x11f   : > { %725 = vmatprep.mubr.f32.mxu0 %v2323_v0 }
 0x122   : > { %726 = vmatmul.mubr.f32.gmra.mrb[20].mxu0 %v584_v47 }
 0x123   : > { %731 = vmatprep.mubr.f32.mxu0 %v2323_v0 }
 0x126   : > { %732 = vmatmul.mubr.f32.gmra.mrb[22].mxu0 %v585_v49 }
 0x127   : > { %737 = vmatprep.mubr.f32.mxu0 %v2323_v0 }
 0x12a   : > { %738 = vmatmul.mubr.f32.gmra.mrb[24].mxu0 %v586_v51 }
 0x12b   : > { %743 = vmatprep.mubr.f32.mxu0 %v2323_v0 }
 0x12e   : > { %744 = vmatmul.mubr.f32.gmra.mrb[26].mxu0 %v587_v53 }
 0x12f   : > { %749 = vmatprep.mubr.f32.mxu0 %v2323_v0 }
 0x132   : > { %750 = vmatmul.mubr.f32.gmra.mrb[28].mxu0 %v588_v55 }
 0x133   : > { %755 = vmatprep.mubr.f32.mxu0 %v2323_v0  ;;  %v593_v0 = vsub.s32 0, %v2899_v5 }
 0x135   : > { %v2904_v8 = vrot.slane %v502_v6, %v593_v0 }
 0x136   : > { %756 = vmatmul.mubr.f32.gmra.mrb[30].mxu0 %v589_v57 }
 0x1cd   : > { %v667_v10 = vpop.f32.mrb[0].mxu0 }
 0x1ce   : > { %v668_v13 = vadd.f32 %v667_v10, %v2904_v8  ;;  %v669_v14 = vpop.f32.mrb[1].mxu0 }
 0x1cf   : > { %v670_v15 = vadd.f32 %v669_v14, %v2906_v9 }
 0x1d0   : > { %v762_v16 = vmax.f32 %v668_v13, 0.0 }
 0x1d1   : > { %v763_v17 = vmax.f32 %v670_v15, 0.0  ;;  %v673_v18 = vpop.f32.mrb[2].mxu0 }
 0x1d2   : > { %939 = vst [vmem:[%s2911_s20] sm:$0xff] %v762_v16  ;;  %v674_v19 = vadd.f32 %v673_v18, %v2904_v8  ;;  %v675_v21 = vpop.f32.mrb[3].mxu0 }
 0x1d3   : > { %940 = vst [vmem:[%s2911_s20 + $0x8] sm:$0xff] %v763_v17  ;;  %v676_v22 = vadd.f32 %v675_v21, %v2906_v9  ;;  %858 = vmatprep.mubr.f32.mxu1 %v763_v17  ;;  %v1003_v23 = vadd.f32 %v763_v17, %v762_v16 }
 0x1d4   : > { %v764_v24 = vmax.f32 %v674_v19, 0.0  ;;  %859 = vmatmul.mubr.f32.vlgmr.msra.gmra.mrb[0].mxu1 %v762_v16 }
 0x1d5   : > { %v765_v25 = vmax.f32 %v676_v22, 0.0  ;;  %v679_v26 = vpop.f32.mrb[4].mxu0  ;;  %1004 = vadd.xlane.f32.xlu1 %v1003_v23 }
 0x1d6   : > { %941 = vst [vmem:[%s2911_s20 + $0x10] sm:$0xff] %v764_v24  ;;  %v680_v27 = vadd.f32 %v679_v26, %v2904_v8  ;;  %v681_v29 = vpop.f32.mrb[5].mxu0 }
 0x1d7   : > { %942 = vst [vmem:[%s2911_s20 + $0x18] sm:$0xff] %v765_v25  ;;  %v682_v30 = vadd.f32 %v681_v29, %v2906_v9  ;;  %863 = vmatprep.mubr.f32.mxu1 %v765_v25  ;;  %v1006_v31 = vadd.f32 %v765_v25, %v764_v24 }
 0x1d8   : > { %v766_v33 = vmax.f32 %v680_v27, 0.0  ;;  %864 = vmatmul.mubr.f32.gmra.mrb[2].mxu1 %v764_v24 }
 0x1d9   : > { %v767_v35 = vmax.f32 %v682_v30, 0.0  ;;  %v685_v37 = vpop.f32.mrb[6].mxu0  ;;  %1007 = vadd.xlane.f32.xlu0 %v1006_v31 }
 0x1da   : > { %943 = vst [vmem:[%s2911_s20 + $0x20] sm:$0xff] %v766_v33  ;;  %v686_v39 = vadd.f32 %v685_v37, %v2904_v8  ;;  %v687_v41 = vpop.f32.mrb[7].mxu0 }
 0x1db   : > { %944 = vst [vmem:[%s2911_s20 + $0x28] sm:$0xff] %v767_v35  ;;  %v688_v43 = vadd.f32 %v687_v41, %v2906_v9  ;;  %868 = vmatprep.mubr.f32.mxu1 %v767_v35  ;;  %v1009_v45 = vadd.f32 %v767_v35, %v766_v33 }
 0x1dc   : > { %v768_v47 = vmax.f32 %v686_v39, 0.0  ;;  %869 = vmatmul.mubr.f32.gmra.mrb[4].mxu1 %v766_v33 }
 0x1dd   : > { %v769_v49 = vmax.f32 %v688_v43, 0.0  ;;  %v691_v51 = vpop.f32.mrb[8].mxu0  ;;  %1010 = vadd.xlane.f32.xlu0 %v1009_v45 }
 0x1de   : > { %945 = vst [vmem:[%s2911_s20 + $0x30] sm:$0xff] %v768_v47  ;;  %v692_v53 = vadd.f32 %v691_v51, %v2904_v8  ;;  %v693_v55 = vpop.f32.mrb[9].mxu0 }
 0x1df   : > { %946 = vst [vmem:[%s2911_s20 + $0x38] sm:$0xff] %v769_v49  ;;  %v694_v57 = vadd.f32 %v693_v55, %v2906_v9  ;;  %873 = vmatprep.mubr.f32.mxu1 %v769_v49  ;;  %v1012_v58 = vadd.f32 %v769_v49, %v768_v47 }
 0x1e0   : > { %v770_v59 = vmax.f32 %v692_v53, 0.0  ;;  %874 = vmatmul.mubr.f32.gmra.mrb[6].mxu1 %v768_v47 }
 0x1e1   : > { %v771_v60 = vmax.f32 %v694_v57, 0.0  ;;  %v697_v61 = vpop.f32.mrb[10].mxu0  ;;  %1013 = vadd.xlane.f32.xlu0 %v1012_v58 }
 0x1e2   : > { %947 = vst [vmem:[%s2911_s20 + $0x40] sm:$0xff] %v770_v59  ;;  %v698_v62 = vadd.f32 %v697_v61, %v2904_v8  ;;  %v699_v63 = vpop.f32.mrb[11].mxu0 }
 0x1e3   : > { %948 = vst [vmem:[%s2911_s20 + $0x48] sm:$0xff] %v771_v60  ;;  %v700_v1 = vadd.f32 %v699_v63, %v2906_v9  ;;  %878 = vmatprep.mubr.f32.mxu1 %v771_v60  ;;  %v1015_v2 = vadd.f32 %v771_v60, %v770_v59 }
 0x1e4   : > { %v772_v3 = vmax.f32 %v698_v62, 0.0  ;;  %879 = vmatmul.mubr.f32.gmra.mrb[8].mxu1 %v770_v59 }
 0x1e5   : > { %v773_v0 = vmax.f32 %v700_v1, 0.0  ;;  %v703_v6 = vpop.f32.mrb[12].mxu0  ;;  %1016 = vadd.xlane.f32.xlu0 %v1015_v2 }
 0x1e6   : > { %949 = vst [vmem:[%s2911_s20 + $0x50] sm:$0xff] %v772_v3  ;;  %v704_v7 = vadd.f32 %v703_v6, %v2904_v8  ;;  %v705_v10 = vpop.f32.mrb[13].mxu0 }
 0x1e7   : > { %950 = vst [vmem:[%s2911_s20 + $0x58] sm:$0xff] %v773_v0  ;;  %v706_v13 = vadd.f32 %v705_v10, %v2906_v9  ;;  %883 = vmatprep.mubr.f32.mxu1 %v773_v0  ;;  %v1018_v14 = vadd.f32 %v773_v0, %v772_v3 }
 0x1e8   : > { %v774_v15 = vmax.f32 %v704_v7, 0.0  ;;  %884 = vmatmul.mubr.f32.gmra.mrb[10].mxu1 %v772_v3 }
 0x1e9   : > { %v775_v16 = vmax.f32 %v706_v13, 0.0  ;;  %v709_v17 = vpop.f32.mrb[14].mxu0  ;;  %1019 = vadd.xlane.f32.xlu0 %v1018_v14 }
 0x1ea   : > { %951 = vst [vmem:[%s2911_s20 + $0x60] sm:$0xff] %v774_v15  ;;  %v710_v18 = vadd.f32 %v709_v17, %v2904_v8  ;;  %v711_v19 = vpop.f32.mrb[15].mxu0 }
 0x1eb   : > { %952 = vst [vmem:[%s2911_s20 + $0x68] sm:$0xff] %v775_v16  ;;  %v712_v21 = vadd.f32 %v711_v19, %v2906_v9  ;;  %888 = vmatprep.mubr.f32.mxu1 %v775_v16  ;;  %v1021_v22 = vadd.f32 %v775_v16, %v774_v15 }
 0x1ec   : > { %v776_v23 = vmax.f32 %v710_v18, 0.0  ;;  %889 = vmatmul.mubr.f32.gmra.mrb[12].mxu1 %v774_v15 }
 0x1ed   : > { %v777_v24 = vmax.f32 %v712_v21, 0.0  ;;  %v715_v25 = vpop.f32.mrb[16].mxu0  ;;  %1022 = vadd.xlane.f32.xlu0 %v1021_v22 }
 0x1ee   : > { %953 = vst [vmem:[%s2911_s20 + $0x70] sm:$0xff] %v776_v23  ;;  %v716_v26 = vadd.f32 %v715_v25, %v2904_v8  ;;  %v717_v27 = vpop.f32.mrb[17].mxu0 }
 0x1ef   : > { %954 = vst [vmem:[%s2911_s20 + $0x78] sm:$0xff] %v777_v24  ;;  %v718_v29 = vadd.f32 %v717_v27, %v2906_v9  ;;  %893 = vmatprep.mubr.f32.mxu1 %v777_v24  ;;  %v1024_v30 = vadd.f32 %v777_v24, %v776_v23 }
 0x1f0   : > { %v778_v31 = vmax.f32 %v716_v26, 0.0  ;;  %894 = vmatmul.mubr.f32.gmra.mrb[14].mxu1 %v776_v23 }
 0x1f1   : > { %v779_v33 = vmax.f32 %v718_v29, 0.0  ;;  %v721_v35 = vpop.f32.mrb[18].mxu0  ;;  %1025 = vadd.xlane.f32.xlu0 %v1024_v30 }
 0x1f2   : > { %955 = vst [vmem:[%s2911_s20 + $0x80] sm:$0xff] %v778_v31  ;;  %v722_v37 = vadd.f32 %v721_v35, %v2904_v8  ;;  %v723_v39 = vpop.f32.mrb[19].mxu0 }
 0x1f3   : > { %956 = vst [vmem:[%s2911_s20 + $0x88] sm:$0xff] %v779_v33  ;;  %v724_v41 = vadd.f32 %v723_v39, %v2906_v9  ;;  %898 = vmatprep.mubr.f32.mxu1 %v779_v33  ;;  %v1027_v43 = vadd.f32 %v779_v33, %v778_v31 }
 0x1f4   : > { %v780_v45 = vmax.f32 %v722_v37, 0.0  ;;  %899 = vmatmul.mubr.f32.gmra.mrb[16].mxu1 %v778_v31 }
 0x1f5   : > { %v781_v47 = vmax.f32 %v724_v41, 0.0  ;;  %v727_v49 = vpop.f32.mrb[20].mxu0  ;;  %1028 = vadd.xlane.f32.xlu0 %v1027_v43 }
 0x1f6   : > { %957 = vst [vmem:[%s2911_s20 + $0x90] sm:$0xff] %v780_v45  ;;  %v728_v51 = vadd.f32 %v727_v49, %v2904_v8  ;;  %v729_v53 = vpop.f32.mrb[21].mxu0 }
 0x1f7   : > { %958 = vst [vmem:[%s2911_s20 + $0x98] sm:$0xff] %v781_v47  ;;  %v730_v55 = vadd.f32 %v729_v53, %v2906_v9  ;;  %903 = vmatprep.mubr.f32.mxu1 %v781_v47  ;;  %v1030_v57 = vadd.f32 %v781_v47, %v780_v45 }
 0x1f8   : > { %v782_v58 = vmax.f32 %v728_v51, 0.0  ;;  %904 = vmatmul.mubr.f32.gmra.mrb[18].mxu1 %v780_v45 }
 0x1f9   : > { %v783_v59 = vmax.f32 %v730_v55, 0.0  ;;  %v733_v60 = vpop.f32.mrb[22].mxu0  ;;  %1031 = vadd.xlane.f32.xlu0 %v1030_v57 }
 0x1fa   : > { %959 = vst [vmem:[%s2911_s20 + $0xa0] sm:$0xff] %v782_v58  ;;  %v734_v61 = vadd.f32 %v733_v60, %v2904_v8  ;;  %v735_v62 = vpop.f32.mrb[23].mxu0 }
 0x1fb   : > { %960 = vst [vmem:[%s2911_s20 + $0xa8] sm:$0xff] %v783_v59  ;;  %v736_v63 = vadd.f32 %v735_v62, %v2906_v9  ;;  %908 = vmatprep.mubr.f32.mxu1 %v783_v59  ;;  %v1033_v1 = vadd.f32 %v783_v59, %v782_v58 }
 0x1fc   : > { %v784_v2 = vmax.f32 %v734_v61, 0.0  ;;  %909 = vmatmul.mubr.f32.gmra.mrb[20].mxu1 %v782_v58 }
 0x1fd   : > { %v785_v3 = vmax.f32 %v736_v63, 0.0  ;;  %v739_v0 = vpop.f32.mrb[24].mxu0  ;;  %1034 = vadd.xlane.f32.xlu0 %v1033_v1 }
 0x1fe   : > { %961 = vst [vmem:[%s2911_s20 + $0xb0] sm:$0xff] %v784_v2  ;;  %v740_v6 = vadd.f32 %v739_v0, %v2904_v8  ;;  %v741_v7 = vpop.f32.mrb[25].mxu0 }
 0x1ff   : > { %962 = vst [vmem:[%s2911_s20 + $0xb8] sm:$0xff] %v785_v3  ;;  %v742_v10 = vadd.f32 %v741_v7, %v2906_v9  ;;  %913 = vmatprep.mubr.f32.mxu1 %v785_v3  ;;  %v2961_v13 = vadd.f32 %v785_v3, %v784_v2 }
 0x200   : > { %v786_v14 = vmax.f32 %v740_v6, 0.0  ;;  %914 = vmatmul.mubr.f32.gmra.mrb[22].mxu1 %v784_v2 }
 0x201   : > { %v787_v15 = vmax.f32 %v742_v10, 0.0  ;;  %v745_v16 = vpop.f32.mrb[26].mxu0 }
 0x202   : > { %963 = vst [vmem:[%s2911_s20 + $0xc0] sm:$0xff] %v786_v14  ;;  %v746_v17 = vadd.f32 %v745_v16, %v2904_v8  ;;  %v747_v18 = vpop.f32.mrb[27].mxu0 }
 0x203   : > { %964 = vst [vmem:[%s2911_s20 + $0xc8] sm:$0xff] %v787_v15  ;;  %v748_v19 = vadd.f32 %v747_v18, %v2906_v9  ;;  %918 = vmatprep.mubr.f32.mxu1 %v787_v15  ;;  %v2967_v21 = vadd.f32 %v787_v15, %v786_v14 }
 0x204   : > { %v788_v22 = vmax.f32 %v746_v17, 0.0  ;;  %919 = vmatmul.mubr.f32.gmra.mrb[24].mxu1 %v786_v14 }
 0x205   : > { %v789_v23 = vmax.f32 %v748_v19, 0.0  ;;  %v751_v24 = vpop.f32.mrb[28].mxu0 }
 0x206   : > { %965 = vst [vmem:[%s2911_s20 + $0xd0] sm:$0xff] %v788_v22  ;;  %v752_v25 = vadd.f32 %v751_v24, %v2904_v8  ;;  %v753_v26 = vpop.f32.mrb[29].mxu0 }
 0x207   : > { %966 = vst [vmem:[%s2911_s20 + $0xd8] sm:$0xff] %v789_v23  ;;  %v754_v27 = vadd.f32 %v753_v26, %v2906_v9  ;;  %923 = vmatprep.mubr.f32.mxu1 %v789_v23  ;;  %v2973_v29 = vadd.f32 %v789_v23, %v788_v22 }
 0x208   : > { %v790_v30 = vmax.f32 %v752_v25, 0.0  ;;  %924 = vmatmul.mubr.f32.gmra.mrb[26].mxu1 %v788_v22 }
 0x209   : > { %v791_v31 = vmax.f32 %v754_v27, 0.0  ;;  %v757_v33 = vpop.f32.mrb[30].mxu0 }
 0x20a   : > { %967 = vst [vmem:[%s2911_s20 + $0xe0] sm:$0xff] %v790_v30  ;;  %v758_v35 = vadd.f32 %v757_v33, %v2904_v8  ;;  %v759_v37 = vpop.f32.mrb[31].mxu0 }
 0x20b   : > { %968 = vst [vmem:[%s2911_s20 + $0xe8] sm:$0xff] %v791_v31  ;;  %v760_v39 = vadd.f32 %v759_v37, %v2906_v9  ;;  %928 = vmatprep.mubr.f32.mxu1 %v791_v31  ;;  %v2979_v41 = vadd.f32 %v791_v31, %v790_v30 }
 0x20c   : > { %v792_v43 = vmax.f32 %v758_v35, 0.0  ;;  %929 = vmatmul.mubr.f32.gmra.mrb[28].mxu1 %v790_v30 }
 0x20d   : > { %v793_v45 = vmax.f32 %v760_v39, 0.0 }
 0x20e   : > { %969 = vst [vmem:[%s2911_s20 + $0xf0] sm:$0xff] %v792_v43 }
 0x20f   : > { %970 = vst [vmem:[%s2911_s20 + $0xf8] sm:$0xff] %v793_v45  ;;  %933 = vmatprep.mubr.f32.mxu1 %v793_v45  ;;  %v2983_v47 = vadd.f32 %v793_v45, %v792_v43 }
 0x210   : > { %934 = vmatmul.mubr.f32.gmra.mrb[30].mxu1 %v792_v43 }
 0x2a7   : > { %v1719_v49 = vpop.f32.mrb[0].mxu1 }
 0x2a8   : > { %v1720_v51 = vpop.f32.mrb[1].mxu1 }
 0x2a9   : > { %v1721_v8 = vadd.f32 %v1720_v51, %v1719_v49 }
 0x2ab   : > { %v861_v53 = vadd.f32 %v1721_v8, %v2790_v12  ;;  %v1722_v55 = vpop.f32.mrb[2].mxu1 }
 0x2ac   : > { %v1723_v9 = vpop.f32.mrb[3].mxu1 }
 0x2ad   : > { %971 = vst [vmem:[%s2988_s3] sm:$0xff] %v861_v53  ;;  %v1724_v57 = vadd.f32 %v1723_v9, %v1722_v55  ;;  %v987_v58 = vsub.f32 %v861_v53, %v2787_v11 }
 0x2af   : > { %v866_v59 = vadd.f32 %v1724_v57, %v2790_v12  ;;  %v1725_v60 = vpop.f32.mrb[4].mxu1  ;;  %v1051_v61 = vmul.f32 %v987_v58, %v987_v58 }
 0x2b0   : > { %v1726_v62 = vpop.f32.mrb[5].mxu1 }
 0x2b1   : > { %972 = vst [vmem:[%s2988_s3 + $0x8] sm:$0xff] %v866_v59  ;;  %v1727_v63 = vadd.f32 %v1726_v62, %v1725_v60  ;;  %1067 = vadd.xlane.f32.xlu0 %v1051_v61  ;;  %v988_v1 = vsub.f32 %v866_v59, %v2799_v20 }
 0x2b3   : > { %v871_v2 = vadd.f32 %v1727_v63, %v2790_v12  ;;  %v1728_v3 = vpop.f32.mrb[6].mxu1  ;;  %v1052_v0 = vmul.f32 %v988_v1, %v988_v1 }
 0x2b4   : > { %v1729_v6 = vpop.f32.mrb[7].mxu1 }
 0x2b5   : > { %973 = vst [vmem:[%s2988_s3 + $0x10] sm:$0xff] %v871_v2  ;;  %v1730_v7 = vadd.f32 %v1729_v6, %v1728_v3  ;;  %1069 = vadd.xlane.f32.xlu0 %v1052_v0  ;;  %v989_v11 = vsub.f32 %v871_v2, %v2809_v28 }
 0x2b7   : > { %v876_v10 = vadd.f32 %v1730_v7, %v2790_v12  ;;  %v1731_v14 = vpop.f32.mrb[8].mxu1  ;;  %v1053_v15 = vmul.f32 %v989_v11, %v989_v11 }
 0x2b8   : > { %v1732_v16 = vpop.f32.mrb[9].mxu1 }
 0x2b9   : > { %974 = vst [vmem:[%s2988_s3 + $0x18] sm:$0xff] %v876_v10  ;;  %v1733_v17 = vadd.f32 %v1732_v16, %v1731_v14  ;;  %1071 = vadd.xlane.f32.xlu1 %v1053_v15  ;;  %1037 = vadd.xlane.f32.xlu0 %v2961_v13  ;;  %v990_v20 = vsub.f32 %v876_v10, %v2815_v32 }
 0x2bb   : > { %v881_v18 = vadd.f32 %v1733_v17, %v2790_v12  ;;  %v1734_v19 = vpop.f32.mrb[10].mxu1  ;;  %v1054_v22 = vmul.f32 %v990_v20, %v990_v20 }
 0x2bc   : > { %v1735_v23 = vpop.f32.mrb[11].mxu1 }
 0x2bd   : > { %975 = vst [vmem:[%s2988_s3 + $0x20] sm:$0xff] %v881_v18  ;;  %v1736_v28 = vadd.f32 %v1735_v23, %v1734_v19  ;;  %1073 = vadd.xlane.f32.xlu1 %v1054_v22  ;;  %1040 = vadd.xlane.f32.xlu0 %v2967_v21  ;;  %v991_v24 = vsub.f32 %v881_v18, %v2821_v34 }
 0x2bf   : > { %v886_v25 = vadd.f32 %v1736_v28, %v2790_v12  ;;  %v1737_v26 = vpop.f32.mrb[12].mxu1  ;;  %v1055_v27 = vmul.f32 %v991_v24, %v991_v24 }
 0x2c0   : > { %v1738_v13 = vpop.f32.mrb[13].mxu1 }
 0x2c1   : > { %976 = vst [vmem:[%s2988_s3 + $0x28] sm:$0xff] %v886_v25  ;;  %v1739_v32 = vadd.f32 %v1738_v13, %v1737_v26  ;;  %1075 = vadd.xlane.f32.xlu1 %v1055_v27  ;;  %1043 = vadd.xlane.f32.xlu0 %v2973_v29  ;;  %v992_v30 = vsub.f32 %v886_v25, %v2827_v36 }
 0x2c3   : > { %v891_v31 = vadd.f32 %v1739_v32, %v2790_v12  ;;  %v1740_v33 = vpop.f32.mrb[14].mxu1  ;;  %v1056_v35 = vmul.f32 %v992_v30, %v992_v30 }
 0x2c4   : > { %v1741_v21 = vpop.f32.mrb[15].mxu1 }
 0x2c5   : > { %977 = vst [vmem:[%s2988_s3 + $0x30] sm:$0xff] %v891_v31  ;;  %v1742_v34 = vadd.f32 %v1741_v21, %v1740_v33  ;;  %1077 = vadd.xlane.f32.xlu1 %v1056_v35  ;;  %1046 = vadd.xlane.f32.xlu0 %v2979_v41  ;;  %v993_v37 = vsub.f32 %v891_v31, %v2833_v38 }
 0x2c7   : > { %v896_v39 = vadd.f32 %v1742_v34, %v2790_v12  ;;  %v1743_v43 = vpop.f32.mrb[16].mxu1  ;;  %v1057_v45 = vmul.f32 %v993_v37, %v993_v37 }
 0x2c8   : > { %v1744_v29 = vpop.f32.mrb[17].mxu1 }
 0x2c9   : > { %978 = vst [vmem:[%s2988_s3 + $0x38] sm:$0xff] %v896_v39  ;;  %v1745_v36 = vadd.f32 %v1744_v29, %v1743_v43  ;;  %1079 = vadd.xlane.f32.xlu1 %v1057_v45  ;;  %v994_v49 = vsub.f32 %v896_v39, %v2839_v40 }
 0x2cb   : > { %v901_v51 = vadd.f32 %v1745_v36, %v2790_v12  ;;  %v1746_v8 = vpop.f32.mrb[18].mxu1  ;;  %v1058_v53 = vmul.f32 %v994_v49, %v994_v49 }
 0x2cc   : > { %v1747_v55 = vpop.f32.mrb[19].mxu1 }
 0x2cd   : > { %979 = vst [vmem:[%s2988_s3 + $0x40] sm:$0xff] %v901_v51  ;;  %v1748_v41 = vadd.f32 %v1747_v55, %v1746_v8  ;;  %1081 = vadd.xlane.f32.xlu1 %v1058_v53  ;;  %v995_v38 = vsub.f32 %v901_v51, %v2845_v42 }
 0x2cf   : > { %v906_v9 = vadd.f32 %v1748_v41, %v2790_v12  ;;  %v1749_v57 = vpop.f32.mrb[20].mxu1  ;;  %v1059_v58 = vmul.f32 %v995_v38, %v995_v38 }
 0x2d0   : > { %v1750_v59 = vpop.f32.mrb[21].mxu1 }
 0x2d1   : > { %980 = vst [vmem:[%s2988_s3 + $0x48] sm:$0xff] %v906_v9  ;;  %v1751_v60 = vadd.f32 %v1750_v59, %v1749_v57  ;;  %1083 = vadd.xlane.f32.xlu1 %v1059_v58  ;;  %v996_v40 = vsub.f32 %v906_v9, %v2851_v44 }
 0x2d3   : > { %v911_v61 = vadd.f32 %v1751_v60, %v2790_v12  ;;  %v1752_v62 = vpop.f32.mrb[22].mxu1  ;;  %v1060_v63 = vmul.f32 %v996_v40, %v996_v40 }
 0x2d4   : > { %v1753_v1 = vpop.f32.mrb[23].mxu1 }
 0x2d5   : > { %981 = vst [vmem:[%s2988_s3 + $0x50] sm:$0xff] %v911_v61  ;;  %v1754_v2 = vadd.f32 %v1753_v1, %v1752_v62  ;;  %1085 = vadd.xlane.f32.xlu1 %v1060_v63  ;;  %v997_v42 = vsub.f32 %v911_v61, %v2857_v46 }
 0x2d7   : > { %v916_v3 = vadd.f32 %v1754_v2, %v2790_v12  ;;  %v1755_v0 = vpop.f32.mrb[24].mxu1  ;;  %v1061_v6 = vmul.f32 %v997_v42, %v997_v42 }
 0x2d8   : > { %v1756_v7 = vpop.f32.mrb[25].mxu1 }
 0x2d9   : > { %982 = vst [vmem:[%s2988_s3 + $0x58] sm:$0xff] %v916_v3  ;;  %v1757_v11 = vadd.f32 %v1756_v7, %v1755_v0  ;;  %1087 = vadd.xlane.f32.xlu1 %v1061_v6  ;;  %v998_v44 = vsub.f32 %v916_v3, %v2863_v48 }
 0x2db   : > { %v921_v10 = vadd.f32 %v1757_v11, %v2790_v12  ;;  %v1758_v14 = vpop.f32.mrb[26].mxu1  ;;  %v1062_v15 = vmul.f32 %v998_v44, %v998_v44 }
 0x2dc   : > { %v1759_v16 = vpop.f32.mrb[27].mxu1 }
 0x2dd   : > { %983 = vst [vmem:[%s2988_s3 + $0x60] sm:$0xff] %v921_v10  ;;  %v1760_v17 = vadd.f32 %v1759_v16, %v1758_v14  ;;  %1089 = vadd.xlane.f32.xlu1 %v1062_v15  ;;  %v999_v46 = vsub.f32 %v921_v10, %v2869_v50 }
 0x2df   : > { %v926_v20 = vadd.f32 %v1760_v17, %v2790_v12  ;;  %v1761_v18 = vpop.f32.mrb[28].mxu1  ;;  %v1063_v19 = vmul.f32 %v999_v46, %v999_v46 }
 0x2e0   : > { %v1762_v22 = vpop.f32.mrb[29].mxu1 }
 0x2e1   : > { %984 = vst [vmem:[%s2988_s3 + $0x68] sm:$0xff] %v926_v20  ;;  %v1763_v23 = vadd.f32 %v1762_v22, %v1761_v18  ;;  %1091 = vadd.xlane.f32.xlu1 %v1063_v19  ;;  %v1000_v48 = vsub.f32 %v926_v20, %v2875_v52 }
 0x2e3   : > { %v931_v28 = vadd.f32 %v1763_v23, %v2790_v12  ;;  %v1764_v24 = vpop.f32.mrb[30].mxu1  ;;  %v1064_v25 = vmul.f32 %v1000_v48, %v1000_v48 }
 0x2e4   : > { %v1765_v26 = vpop.f32.mrb[31].mxu1 }
 0x2e5   : > { %985 = vst [vmem:[%s2988_s3 + $0x70] sm:$0xff] %v931_v28  ;;  %v1766_v50 = vadd.f32 %v1765_v26, %v1764_v24  ;;  %1093 = vadd.xlane.f32.xlu1 %v1064_v25  ;;  %v1001_v27 = vsub.f32 %v931_v28, %v2881_v54 }
 0x2e7   : > { %v936_v13 = vadd.f32 %v1766_v50, %v2790_v12  ;;  %v1065_v32 = vmul.f32 %v1001_v27, %v1001_v27 }
 0x2e9   : > { %986 = vst [vmem:[%s2988_s3 + $0x78] sm:$0xff] %v936_v13  ;;  %1095 = vadd.xlane.f32.xlu1 %v1065_v32  ;;  %v1002_v52 = vsub.f32 %v936_v13, %v2887_v56 }
 0x2eb   : > { %v1066_v30 = vmul.f32 %v1002_v52, %v1002_v52 }
 0x2ed   : > { %1097 = vadd.xlane.f32.xlu1 %v1066_v30 }
 0x2f1   : > { %1049 = vadd.xlane.f32.xlu1 %v2983_v47 }
 0x2f2   : > { %2135 = shalt.err (!%p2132_p8)
}
 0x2f3   : > { %s2136_s23 = scalar_lea.hbm %s3049_s7, 2048  ;;  %s2140_s1 = scalar_lea.hbm %s3417_s16, 8192 }
 0x2f4   : > { %p2137_p2 = scmp.ne.s32.totalorder %s3049_s7, %s2136_s23  ;;  %p2141_p9 = scmp.lt.u32.totalorder %s3049_s7, %s3417_s16 }
 0x2f5   : > { %p2142_p7 = scmp.lt.u32.totalorder %s2140_s1, %s2136_s23  ;;  %p2144_p5 = scmp.lt.u32.totalorder %s2136_s23, %s3049_s7 }
 0x2f6   : > { %p2138_p0 = pnand %p2137_p2, %p3418_p12 }
 0x2f7   : > { %p2143_p11 = por %p2142_p7, %p2141_p9 }
 0x2f8   : > { %p2139_p1 = pneg %p2138_p0 }
 0x2f9   : > { %p2145_p13 = por %p2144_p5, %p2143_p11 }
 0x2fb   : > { %p2146_p6 = pnand %p2145_p13, %p2139_p1 }
 0x2fd   : > { %2149 = shalt.err (!%p2146_p6)
}
 0x2fe   : > { %s2325_s13 = smov 128   ;;  %s2326_s15 = smov 8  }
 0x2ff   : > { %1842 = dma.vmem_to_hbm [thread:$0]  (%p3418_p12), %s3051_s29, 2048, %s3049_s7, %s1349_s9, %s2325_s13, %s2325_s13, %s2326_s15  }
 0x300   : > { %s1674_s19 = sshll.u32 %s3416_s8, 6  ;;  %s1370_s12 = sshll.u32 %s2911_s20, 4  ;;  %s3081_s12 = int_to_ptr.vmem [resolvable:$true] %s1370_s12 }
 0x301   : > { %s1367_s5 = sadd.s32 %s1686_s4, %s1674_s19  ;;  %s3419_s30 = sld [smem:[#allocation35_spill]] }
 0x302   : > { %s1675_s21 = sshll.u32 %s1367_s5, 7  ;;  %s1344_s24 = scalar_lea.sflag [#allocation4], %s2699_s18 }
 0x303   : > { %s2150_s0 = scalar_lea.vmem %s3081_s12, 4096  ;;  %s2327_s20 = smov [#allocation11]  }
 0x304   : > { %p2151_p4 = scmp.ne.s32.totalorder %s3081_s12, %s2150_s0  ;;  %s2154_s29 = sshll.u32 %s2327_s20, 4  ;;  %s2155_s29 = int_to_ptr.vmem [resolvable:$false] %s2154_s29 }
 0x305   : > { %s2156_s4 = scalar_lea.vmem %s2155_s29, 8192  ;;  %p2157_p8 = scmp.lt.s32.totalorder %s3081_s12, %s2155_s29 }
 0x306   : > { %p2152_p10 = pnand %p2151_p4, %p3418_p12  ;;  %p2158_p2 = scmp.lt.s32.totalorder %s2156_s4, %s2150_s0 }
 0x307   : > { %s3420_s1 = smov %s3419_s30  ;;  %s3086_s26 = scalar_lea.hbm %s3419_s30, %s1675_s21 }
 0x308   : > { %p2153_p3 = pneg %p2152_p10  ;;  %p2159_p0 = por %p2158_p2, %p2157_p8 }
 0x30a   : > { %p2160_p1 = pnand %p2159_p0, %p2153_p3 }
 0x30c   : > { %2163 = shalt.err (!%p2160_p1)
}
 0x30d   : > { %s2164_s7 = scalar_lea.hbm %s3086_s26, 4096  ;;  %s2168_s19 = scalar_lea.hbm %s3420_s1, 16384 }
 0x30e   : > { %p2165_p9 = scmp.ne.s32.totalorder %s3086_s26, %s2164_s7  ;;  %p2169_p5 = scmp.lt.u32.totalorder %s3086_s26, %s3420_s1 }
 0x30f   : > { %p2170_p13 = scmp.lt.u32.totalorder %s2168_s19, %s2164_s7  ;;  %p2172_p4 = scmp.lt.u32.totalorder %s2164_s7, %s3086_s26 }
 0x310   : > { %p2166_p7 = pnand %p2165_p9, %p3418_p12 }
 0x311   : > { %p2171_p6 = por %p2170_p13, %p2169_p5 }
 0x312   : > { %p2167_p11 = pneg %p2166_p7 }
 0x313   : > { %p2173_p10 = por %p2172_p4, %p2171_p6 }
 0x315   : > { %p2174_p3 = pnand %p2173_p10, %p2167_p11 }
 0x317   : > { %2177 = shalt.err (!%p2174_p3)
}
 0x318   : > { %s2328_s0 = smov 256   ;;  %s2329_s23 = smov 16   ;;  %v1008_v12 = vpop.xlane.xlu0 %1007  ;;  %v1005_v35 = vpop.xlane.xlu1 %1004  ;;  %v3135_v51 = vand.u32 127, %v591_v4  ;;  %vm1143_vm0 = vcmask 130112   ;;  %vm1150_vm1 = vcmask 195712   ;;  %vm1157_vm2 = vcmask 261312  }
 0x319   : > { %1841 = dma.vmem_to_hbm [thread:$0]  (%p3418_p12), %s3081_s12, 4096, %s3086_s26, %s1344_s24, %s2328_s0, %s2328_s0, %s2329_s23   ;;  %vm1164_vm3 = vcmask 326912   ;;  %vm1171_vm4 = vcmask 392512   ;;  %vm1178_vm5 = vcmask 458112   ;;  %vm1185_vm6 = vcmask 523712  }
 0x31a   : > { %v1138_v53 = vadd.s32 4294967288, %v3135_v51  ;;  %v1145_v41 = vadd.s32 4294967280, %v3135_v51  ;;  %v1152_v38 = vadd.s32 4294967272, %v3135_v51  ;;  %v1159_v9 = vadd.s32 4294967264, %v3135_v51  ;;  %s1667_s12 = sshll.u32 %s2699_s18, 1  ;;  %s1679_s3 = sshll.u32 %s3416_s8, 1 }
 0x31b   : > { %v1166_v59 = vadd.s32 4294967256, %v3135_v51  ;;  %v1173_v60 = vadd.s32 4294967248, %v3135_v51  ;;  %v3155_v40 = vsub.s32 %v3135_v51, %v2899_v5  ;;  %v1180_v62 = vadd.s32 4294967240, %v3135_v51  ;;  %s1402_s8 = sadd.s32 %s3415_s14, %s1679_s3  ;;  %s482_s14 = scalar_lea.vmem [#allocation14], %s1667_s12 }
 0x31c   : > { %v1011_v54 = vpop.xlane.xlu0 %1010  ;;  %v3146_v58 = vsub.s32 %v1138_v53, %v2899_v5  ;;  %v3150_v4 = vsub.s32 %v1145_v41, %v2899_v5  ;;  %v3158_v61 = vsub.s32 %v1152_v38, %v2899_v5  ;;  %v3162_v1 = vsub.s32 %v1159_v9, %v2899_v5  ;;  %s1680_s30 = sshll.u32 %s1402_s8, 5  ;;  %s1406_s26 = sshll.u32 %s482_s14, 4  ;;  %s3275_s26 = int_to_ptr.vmem [resolvable:$true] %s1406_s26 }
 0x31d   : > { %v1187_v2 = vadd.s32 4294967232, %v3135_v51  ;;  %v3169_v0 = vsub.s32 %v1166_v59, %v2899_v5  ;;  %v1194_v6 = vadd.s32 4294967224, %v3135_v51  ;;  %v3174_v11 = vsub.s32 %v1173_v60, %v2899_v5  ;;  %s3421_s29 = sld [smem:[#allocation37_spill]]  ;;  %s2178_s18 = scalar_lea.vmem %s3275_s26, 32 }
 0x31e   : > { %v1142_v3 = vrot.slane %v1008_v12, %v3146_v58  ;;  %v1149_v7 = vrot.slane %v1011_v54, %v3150_v4  ;;  %v1201_v44 = vadd.s32 4294967216, %v3135_v51  ;;  %v1137_v10 = vrot.slane %v1005_v35, %v3155_v40  ;;  %p2179_p8 = scmp.ne.s32.totalorder %s3275_s26, %s2178_s18  ;;  %s2330_s13 = smov [#allocation14]  }
 0x31f   : > { %v3180_v15 = vsub.s32 %v1180_v62, %v2899_v5  ;;  %v3184_v17 = vsub.s32 %v1187_v2, %v2899_v5  ;;  %v3190_v19 = vsub.s32 %v1194_v6, %v2899_v5  ;;  %vm1192_vm7 = vcmask 589312   ;;  %s2182_s15 = sshll.u32 %s2330_s13, 4  ;;  %s2183_s15 = int_to_ptr.vmem [resolvable:$false] %s2182_s15 }
 0x320   : > { %v1014_v56 = vpop.xlane.xlu0 %1013  ;;  %v1144_v20 = vsel %vm1143_vm0, %v1142_v3, %v1137_v10  ;;  %v3198_v28 = vsub.s32 %v1201_v44, %v2899_v5  ;;  %vm1199_vm8 = vcmask 654912   ;;  %vm1206_vm9 = vcmask 720512   ;;  %p2180_p2 = pnand %p2179_p8, %p3418_p12  ;;  %s2184_s19 = scalar_lea.vmem %s2183_s15, 64 }
 0x321   : > { %v1156_v14 = vrot.slane %v1014_v56, %v3158_v61  ;;  %v1151_v23 = vsel %vm1150_vm1, %v1149_v7, %v1144_v20  ;;  %vm1213_vm10 = vcmask 786112   ;;  %v1215_v60 = vadd.s32 4294967200, %v3135_v51  ;;  %p2185_p1 = scmp.lt.s32.totalorder %s3275_s26, %s2183_s15  ;;  %p2186_p9 = scmp.lt.s32.totalorder %s2184_s19, %s2178_s18 }
 0x322   : > { %v1236_v44 = vadd.s32 4294967176, %v3135_v51  ;;  %vm1220_vm11 = vcmask 851712   ;;  %vm1227_vm12 = vcmask 917312   ;;  %vm1234_vm13 = vcmask 982912   ;;  %p2181_p0 = pneg %p2180_p2 }
 0x323   : > { %v1158_v24 = vsel %vm1157_vm2, %v1156_v14, %v1151_v23  ;;  %vm1241_vm14 = vcmask 1048512   ;;  %vm1340_vm15 = vcmask 1040384   ;;  %s3422_s4 = smov %s3421_s29  ;;  %s3273_s7 = scalar_lea.hbm %s3421_s29, %s1680_s30 }
 0x324   : > { %v1017_v47 = vpop.xlane.xlu0 %1016  ;;  %p2187_p7 = por %p2186_p9, %p2185_p1 }
 0x325   : > { %v1163_v16 = vrot.slane %v1017_v47, %v3162_v1 }
 0x326   : > { %p2188_p11 = pnand %p2187_p7, %p2181_p0 }
 0x327   : > { %v1165_v26 = vsel %vm1164_vm3, %v1163_v16, %v1158_v24 }
 0x328   : > { %v3112_v31 = vpop.xlane.xlu0 %1019 }
 0x329   : > { %v1170_v18 = vrot.slane %v3112_v31, %v3169_v0  ;;  %v1208_v31 = vadd.s32 4294967208, %v3135_v51 }
 0x32b   : > { %v1172_v13 = vsel %vm1171_vm4, %v1170_v18, %v1165_v26  ;;  %v1211_v9 = vsub.s32 %v1208_v31, %v2899_v5 }
 0x32c   : > { %v3114_v33 = vpop.xlane.xlu0 %1022 }
 0x32d   : > { %v1177_v48 = vrot.slane %v3114_v33, %v3174_v11 }
 0x32f   : > { %v1179_v30 = vsel %vm1178_vm5, %v1177_v48, %v1172_v13 }
 0x330   : > { %v3116_v21 = vpop.xlane.xlu0 %1025 }
 0x331   : > { %v1184_v25 = vrot.slane %v3116_v21, %v3180_v15 }
 0x333   : > { %v1186_v56 = vsel %vm1185_vm6, %v1184_v25, %v1179_v30 }
 0x334   : > { %v3122_v39 = vpop.xlane.xlu0 %1028 }
 0x335   : > { %v1191_v50 = vrot.slane %v3122_v39, %v3184_v17 }
 0x337   : > { %v1193_v21 = vsel %vm1192_vm7, %v1191_v50, %v1186_v56  ;;  %v1239_v50 = vsub.s32 %v1236_v44, %v2899_v5 }
 0x338   : > { %v3126_v45 = vpop.xlane.xlu0 %1031 }
 0x339   : > { %v1198_v32 = vrot.slane %v3126_v45, %v3190_v19 }
 0x33b   : > { %v1200_v53 = vsel %vm1199_vm8, %v1198_v32, %v1193_v21 }
 0x33c   : > { %v3132_v49 = vpop.xlane.xlu0 %1034 }
 0x33d   : > { %v1205_v12 = vrot.slane %v3132_v49, %v3198_v28 }
 0x33f   : > { %v1207_v41 = vsel %vm1206_vm9, %v1205_v12, %v1200_v53 }
 0x340   : > { %v1068_v55 = vpop.xlane.xlu0 %1067 }
 0x341   : > { %v1100_v47 = vmul.f32 0.0078125, %v1068_v55 }
 0x344   : > { %v1070_v63 = vpop.xlane.xlu0 %1069 }
 0x345   : > { %v1101_v52 = vmul.f32 0.0078125, %v1070_v63 }
 0x346   : > { %v3118_v34 = vpop.xlane.xlu1 %1071 }
 0x347   : > { %v1102_v54 = vmul.f32 0.0078125, %v3118_v34  ;;  %v1267_v49 = vrot.slane %v1101_v52, %v3146_v58 }
 0x348   : > { %v3192_v22 = vpop.xlane.xlu0 %1037 }
 0x349   : > { %v1272_v55 = vrot.slane %v1102_v54, %v3150_v4 }
 0x34a   : > { %v3120_v37 = vpop.xlane.xlu1 %1073 }
 0x34b   : > { %v1103_v33 = vmul.f32 0.0078125, %v3120_v37  ;;  %v1263_v37 = vrot.slane %v1100_v47, %v3155_v40 }
 0x34c   : > { %v3216_v35 = vpop.xlane.xlu0 %1040 }
 0x34d   : > { %v1277_v59 = vrot.slane %v1103_v33, %v3158_v61  ;;  %v1268_v4 = vsel %vm1143_vm0, %v1267_v49, %v1263_v37 }
 0x34e   : > { %v3124_v43 = vpop.xlane.xlu1 %1075  ;;  %v1273_v61 = vsel %vm1150_vm1, %v1272_v55, %v1268_v4 }
 0x34f   : > { %v1104_v39 = vmul.f32 0.0078125, %v3124_v43 }
 0x350   : > { %v1044_v63 = vpop.xlane.xlu0 %1043 }
 0x351   : > { %v1282_v58 = vrot.slane %v1104_v39, %v3162_v1  ;;  %v1278_v1 = vsel %vm1157_vm2, %v1277_v59, %v1273_v61 }
 0x352   : > { %v3128_v29 = vpop.xlane.xlu1 %1077 }
 0x353   : > { %v1105_v34 = vmul.f32 0.0078125, %v3128_v29 }
 0x354   : > { %v1047_v24 = vpop.xlane.xlu0 %1046 }
 0x355   : > { %v1287_v40 = vrot.slane %v1105_v34, %v3169_v0  ;;  %v1218_v0 = vsub.s32 %v1215_v60, %v2899_v5 }
 0x356   : > { %v3130_v36 = vpop.xlane.xlu1 %1079 }
 0x357   : > { %v1106_v38 = vmul.f32 0.0078125, %v3130_v36  ;;  %v1222_v36 = vadd.s32 4294967192, %v3135_v51 }
 0x359   : > { %v1292_v3 = vrot.slane %v1106_v38, %v3174_v11  ;;  %v1225_v11 = vsub.s32 %v1222_v36, %v2899_v5 }
 0x35a   : > { %v3137_v8 = vpop.xlane.xlu1 %1081 }
 0x35b   : > { %v1107_v43 = vmul.f32 0.0078125, %v3137_v8  ;;  %v1229_v8 = vadd.s32 4294967184, %v3135_v51 }
 0x35d   : > { %v1232_v18 = vsub.s32 %v1229_v8, %v2899_v5 }
 0x35e   : > { %v3143_v57 = vpop.xlane.xlu1 %1083 }
 0x35f   : > { %v1108_v29 = vmul.f32 0.0078125, %v3143_v57  ;;  %v1297_v57 = vrot.slane %v1107_v43, %v3180_v15 }
 0x361   : > { %v1302_v10 = vrot.slane %v1108_v29, %v3184_v17  ;;  %v1212_v17 = vrot.slane %v3192_v22, %v1211_v9  ;;  %v1233_v22 = vrot.slane %v1047_v24, %v1232_v18 }
 0x362   : > { %v3165_v42 = vpop.xlane.xlu1 %1085 }
 0x363   : > { %v1109_v2 = vmul.f32 0.0078125, %v3165_v42  ;;  %v1283_v42 = vsel %vm1164_vm3, %v1282_v58, %v1278_v1  ;;  %v1214_v5 = vsel %vm1213_vm10, %v1212_v17, %v1207_v41 }
 0x365   : > { %v1307_v20 = vrot.slane %v1109_v2, %v3190_v19  ;;  %v1219_v19 = vrot.slane %v3216_v35, %v1218_v0 }
 0x366   : > { %v1088_v46 = vpop.xlane.xlu1 %1087 }
 0x367   : > { %v1110_v6 = vmul.f32 0.0078125, %v1088_v46  ;;  %v1288_v46 = vsel %vm1171_vm4, %v1287_v40, %v1283_v42  ;;  %v1221_v33 = vsel %vm1220_vm11, %v1219_v19, %v1214_v5 }
 0x368   : > { %v1293_v23 = vsel %vm1178_vm5, %v1292_v3, %v1288_v46 }
 0x369   : > { %v1312_v51 = vrot.slane %v1110_v6, %v3198_v28  ;;  %v1298_v25 = vsel %vm1185_vm6, %v1297_v57, %v1293_v23  ;;  %v1226_v28 = vrot.slane %v1044_v63, %v1225_v11 }
 0x36a   : > { %v1090_v27 = vpop.xlane.xlu1 %1089 }
 0x36b   : > { %v1111_v7 = vmul.f32 0.0078125, %v1090_v27  ;;  %v1303_v27 = vsel %vm1192_vm7, %v1302_v10, %v1298_v25  ;;  %v1228_v39 = vsel %vm1227_vm12, %v1226_v28, %v1221_v33 }
 0x36c   : > { %v1308_v52 = vsel %vm1199_vm8, %v1307_v20, %v1303_v27  ;;  %v1235_v49 = vsel %vm1234_vm13, %v1233_v22, %v1228_v39 }
 0x36d   : > { %v1317_v26 = vrot.slane %v1111_v7, %v1211_v9  ;;  %v1313_v54 = vsel %vm1206_vm9, %v1312_v51, %v1308_v52 }
 0x36e   : > { %v1092_v45 = vpop.xlane.xlu1 %1091 }
 0x36f   : > { %v1112_v14 = vmul.f32 0.0078125, %v1092_v45  ;;  %v1318_v47 = vsel %vm1213_vm10, %v1317_v26, %v1313_v54 }
 0x371   : > { %v1322_v13 = vrot.slane %v1112_v14, %v1218_v0 }
 0x372   : > { %v1094_v62 = vpop.xlane.xlu1 %1093 }
 0x373   : > { %v1113_v15 = vmul.f32 0.0078125, %v1094_v62  ;;  %v1323_v35 = vsel %vm1220_vm11, %v1322_v13, %v1318_v47 }
 0x375   : > { %v1327_v30 = vrot.slane %v1113_v15, %v1225_v11 }
 0x376   : > { %v1096_v16 = vpop.xlane.xlu1 %1095 }
 0x377   : > { %v1114_v48 = vmul.f32 0.0078125, %v1096_v16  ;;  %v1328_v45 = vsel %vm1227_vm12, %v1327_v30, %v1323_v35 }
 0x379   : > { %v1332_v56 = vrot.slane %v1114_v48, %v1232_v18 }
 0x37a   : > { %v1098_v32 = vpop.xlane.xlu1 %1097 }
 0x37b   : > { %v1115_v12 = vmul.f32 0.0078125, %v1098_v32  ;;  %v1333_v34 = vsel %vm1234_vm13, %v1332_v56, %v1328_v45 }
 0x37d   : > { %v1337_v31 = vrot.slane %v1115_v12, %v1239_v50 }
 0x37e   : > { %v1050_v21 = vpop.xlane.xlu1 %1049 }
 0x37f   : > { %v1240_v53 = vrot.slane %v1050_v21, %v1239_v50  ;;  %v1338_v41 = vsel %vm1241_vm14, %v1337_v31, %v1333_v34 }
 0x381   : > { %v1242_v55 = vsel %vm1241_vm14, %v1240_v53, %v1235_v49 }
 0x382   : > { %v1341_v38 = vsel %vm1340_vm15, %v1242_v55, %v1338_v41 }
 0x383   : > { %1342 = vst [vmem:[%s482_s14] sm:$0x3] %v1341_v38 }
 0x384   : > { %2191 = shalt.err (!%p2188_p11)
}
 0x385   : > { %s2192_s5 = scalar_lea.hbm %s3273_s7, 32  ;;  %s2196_s23 = scalar_lea.hbm %s3422_s4, 128 }
 0x386   : > { %p2193_p5 = scmp.ne.s32.totalorder %s3273_s7, %s2192_s5  ;;  %p2197_p4 = scmp.lt.u32.totalorder %s3273_s7, %s3422_s4 }
 0x387   : > { %p2198_p10 = scmp.lt.u32.totalorder %s2196_s23, %s2192_s5  ;;  %p2200_p8 = scmp.lt.u32.totalorder %s2192_s5, %s3273_s7 }
 0x388   : > { %p2194_p13 = pnand %p2193_p5, %p3418_p12 }
 0x389   : > { %p2199_p3 = por %p2198_p10, %p2197_p4 }
 0x38a   : > { %p2195_p6 = pneg %p2194_p13 }
 0x38b   : > { %p2201_p2 = por %p2200_p8, %p2199_p3 }
 0x38d   : > { %p2202_p0 = pnand %p2201_p2, %p2195_p6 }
 0x38f   : > { %2205 = shalt.err (!%p2202_p0)
}
 0x390   : > { %1843 = dma.vmem_to_hbm [thread:$0]  (%p3418_p12), %s3275_s26, 32, %s3273_s7, %s1349_s9  }
 0x391 PF: > { %s3423_s8 = sld [smem:[#allocation30_spill]]  ;;  %p1874_p1 = scmp.ge.s32.totalorder %s2312_s11, 2 }
 0x392   : > { %s1418_s30 = sand.u32 1, %s2284_s27  }
 0x393   : > { %s1419_s14 = scalar_lea.sflag [#allocation4], %s1418_s30 }
 0x397   : > { %p3424_p9 = scmp.ne.s32.totalorder %s3423_s8, 0 }
 0x399   : > { %p1864_p7 = pnand %p1874_p1, %p3424_p9 }
 0x39b   : > { %2263 = dma.done.wait (!%p1864_p7), %s1419_s14, 4096  }
 0x39c   : > { %2265 = vsyncadd (!%p1864_p7), %s1419_s14, 4294963200  ;;  %s3425_s24 = sadd.s32 4294967294, %s2312_s11  }
 0x39d   : > { %s1427_s20 = sand.u32 1, %s3425_s24  }
 0x39e   : > { %s1428_s17 = scalar_lea.sflag [#allocation13], %s1427_s20 }
 0x39f   : > { %2267 = dma.done.wait (!%p1864_p7), %s1428_s17, 2080  }
 0x3a0   : > { %2269 = vsyncadd (!%p1864_p7), %s1428_s17, 4294965216  ;;  %s33_s11 = sadd.s32 1, %s2312_s11   ;;  %s3426_s22 = sld [smem:[#allocation20_spill]] }
 0x3a1   : > { %p30_p12 = scmp.ge.s32.totalorder %s33_s11, 6   ;;  %s3427_s26 = sld [smem:[#allocation28_spill]] }
 0x3a2   : > { %s3428_s9 = sld [smem:[#allocation21_spill]]  ;;  %s3429_s29 = sld [smem:[#allocation29_spill]] }
 0x3a3   : > { %s3430_s30 = sld [smem:[#allocation24_spill]]  ;;  %s3431_s7 = sld [smem:[#allocation26_spill]] }
 0x3a4   : > { %s3432_s18 = sld [smem:[#allocation27_spill]]  ;;  %s3433_s24 = smov %s2276_s25 }
 0x3a5   : > { %s3435_s27 = smov %s2288_s28  ;;  %s3437_s8 = smov %s2308_s10 }
 0x3a6   : > { %s3434_s25 = smov %s3426_s22  ;;  %32 = sbr.rel (!%p30_p12) target bundleno = 23 (0x17), region = 165 }
 0x3a8   : > { %s3436_s28 = smov %s3428_s9 }
 0x3a9   : > { %s3438_s9 = smov %s3431_s7 }
 0x3aa   : > { %s3439_s10 = smov %s3432_s18 }
 0x3ad   :  { %1442 = vsyncpa [#allocation3], 1 }
 0x3ae   :  { %1444 = vsyncpa [#allocation3 + $0x1], 1 }
 0x3af   :  { %1445 = vsyncpa [#allocation6], 1 }
 0x3b0   :  { %1447 = vsyncpa [#allocation6 + $0x1], 1 }
 0x3b1   :  { %1448 = vsyncpa [#allocation9], 1 }
 0x3b2   :  { %1450 = vsyncpa [#allocation9 + $0x1], 1 }
 0x3b3   :  { %1451 = vsyncpa [#allocation4], 1 }
 0x3b4   :  { %1453 = vsyncpa [#allocation4 + $0x1], 1 }
 0x3b5   :  { %1454 = vsyncpa [#allocation13], 1 }
 0x3b6   :  { %1456 = vsyncpa [#allocation13 + $0x1], 1 }

</bundles_post_ra>
